<compile_context>
chip_gen: v7x
topology: tpu7x:2x2x1
jax: 0.10.0
libtpu: 0.0.40
codegen_flags: <defaults>
</compile_context>

<pallas_src>
import jax
import jax.numpy as jnp
from jax.experimental import pallas as pl
from jax.experimental.pallas import tpu as pltpu

_BN_EPS = 1e-5


# ----------------------------------------------------------------------------- fused kernel
def _cnn2_kernel(x_ref, w1_ref, sh1_ref, se1_ref, so1_ref,
                 w2_ref, sh2_ref, se2_ref, so2_ref,
                 w3_ref, sh3_ref, fcw_ref, fcb_ref, o_ref):
    f32, bf16 = jnp.float32, jnp.bfloat16
    x = x_ref[0]                                                 # (62, 128) bf16, W zero-padded

    # ---- conv1 (3x3, 1->8) + BN scale + 2x2 pool : single deep-K matmul, even|odd fused in N
    lhs = jnp.concatenate([x[0:60, :], x[1:61, :], x[2:62, :]], axis=1)        # (60, 384)
    acc = jnp.dot(lhs, w1_ref[...], preferred_element_type=f32)                # (60, 512)
    wmax = jnp.maximum(acc[:, 0:256], acc[:, 256:512]).astype(bf16)            # W-pool  (60, 256)
    hev = jnp.dot(se1_ref[...], wmax, preferred_element_type=f32)              # rows 2r   (30, 256)
    hod = jnp.dot(so1_ref[...], wmax, preferred_element_type=f32)              # rows 2r+1
    x1 = jnp.maximum(jnp.maximum(hev, hod) + sh1_ref[...], 0.0).astype(bf16)   # (30, 256)

    # ---- conv2 (5x5, 8->16) + BN + 2x2 pool ----
    lhs = jnp.concatenate([x1[kh:kh + 26, :] for kh in range(5)], axis=1)      # (26, 1280)
    acc = jnp.dot(lhs, w2_ref[...], preferred_element_type=f32)                # (26, 512)
    wmax = jnp.maximum(acc[:, 0:256], acc[:, 256:512]).astype(bf16)            # (26, 256)
    hev = jnp.dot(se2_ref[...], wmax, preferred_element_type=f32)              # (13, 256)
    hod = jnp.dot(so2_ref[...], wmax, preferred_element_type=f32)
    x2 = jnp.maximum(jnp.maximum(hev, hod) + sh2_ref[...], 0.0).astype(bf16)   # (13, 256)

    # ---- conv3 (7x7, 16->32) + BN + ReLU (no pool) ----
    lhs = jnp.concatenate([x2[kh:kh + 7, :] for kh in range(7)], axis=1)       # (7, 1792)
    acc = jnp.dot(lhs, w3_ref[...], preferred_element_type=f32)                # (7, 256)
    x3 = jnp.maximum(acc + sh3_ref[...], 0.0).astype(bf16)                     # (7, 256) lanes=w*32+c

    # ---- fc1: C,H,W flatten folded into fc_w row permutation + padding at init ----
    # TODO(synk): nn.Dropout() is identity in eval(); train-mode (p=0.5) masking not modeled.
    logits = fcb_ref[...] + jnp.dot(x3[0:1, :], fcw_ref[0:256, :],
                                    preferred_element_type=f32)                # (1, 15)
    for r in range(1, 7):
        logits = logits + jnp.dot(x3[r:r + 1, :], fcw_ref[r * 256:(r + 1) * 256, :],
                                  preferred_element_type=f32)
    o_ref[0] = logits.astype(o_ref.dtype)


_WEIGHT_KEYS = ('w1', 'sh1', 'se1', 'so1',
                'w2', 'sh2', 'se2', 'so2',
                'w3', 'sh3', 'fcw', 'fcb')


def cnn2_forward(x_nchw, params):
    N = x_nchw.shape[0]
    # squeeze Cin=1, zero-pad W 62->128 (lane-aligned im2col offsets), cast once to bf16
    x = x_nchw.reshape(N, 62, 62)
    x = jnp.pad(x, ((0, 0), (0, 0), (0, 128 - 62))).astype(jnp.bfloat16)
    weights = [params[k] for k in _WEIGHT_KEYS]

    def _full_spec(a):
        nd = a.ndim
        return pl.BlockSpec(a.shape, lambda n, _nd=nd: (0,) * _nd)   # constant -> no re-DMA

    out = pl.pallas_call(
        _cnn2_kernel,
        out_shape=jax.ShapeDtypeStruct((N, 1, 15), jnp.float32),
        grid=(N,),
        in_specs=[pl.BlockSpec((1, 62, 128), lambda n: (n, 0, 0))]
                 + [_full_spec(a) for a in weights],
        out_specs=pl.BlockSpec((1, 1, 15), lambda n: (n, 0, 0)),
        compiler_params=pltpu.CompilerParams(dimension_semantics=("parallel",)),
    )(x, *weights)
    return out.reshape(N, 15)


# ----------------------------------------------------------------------------- init helpers
def _fold_bn(conv_bias, gamma, beta, mean, var):
    scale = gamma / jnp.sqrt(var + _BN_EPS)
    shift = beta + (conv_bias - mean) * scale
    return scale, shift


def _toeplitz(w, scale, w_in):
    """Banded block-Toeplitz matrices for a valid stride-1 conv along W (BN scale folded).

    w: (KH, KW, Cin, Cout).  Returns M of shape (KH, w_in*Cin, w_out*Cout) with
    M[kh, w*Cin+ci, ow*Cout+co] = scale[co] * w[kh, w-ow, ci, co]  if 0 <= w-ow < KW else 0.
    """
    KH, KW, Cin, Cout = w.shape
    w_out = w_in - KW + 1
    ws = w * scale[None, None, None, :]
    kw_idx = jnp.arange(w_in)[:, None] - jnp.arange(w_out)[None, :]      # (w_in, w_out)
    valid = (kw_idx >= 0) & (kw_idx < KW)
    m = ws[:, jnp.clip(kw_idx, 0, KW - 1), :, :]                         # (KH, w_in, w_out, Cin, Cout)
    m = m * valid[None, :, :, None, None].astype(ws.dtype)
    m = jnp.transpose(m, (0, 1, 3, 2, 4))                                # (KH, w_in, Cin, w_out, Cout)
    return m.reshape(KH, w_in * Cin, w_out * Cout)


def _split_even_odd(m, cout):
    """Split conv output columns into even / odd ow (for the 2x2 max-pool along W)."""
    KH, K, WC = m.shape
    w_out = WC // cout
    m4 = m.reshape(KH, K, w_out, cout)
    even = m4[:, :, 0::2, :].reshape(KH, K, (w_out // 2) * cout)
    odd = m4[:, :, 1::2, :].reshape(KH, K, (w_out // 2) * cout)
    return even, odd


def _pad_last(a, n):
    return jnp.pad(a, [(0, 0)] * (a.ndim - 1) + [(0, n - a.shape[-1])])


def _pack_conv_pool(w, scale, w_in, cout, k_pad, n_half_pad):
    """(KH*k_pad, 2*n_half_pad) weight: [even|odd] W-pool halves, kh Toeplitz blocks stacked in K."""
    m = _toeplitz(w, scale, w_in)                                  # (KH, K, w_out*cout)
    even, odd = _split_even_odd(m, cout)
    big = jnp.concatenate([_pad_last(even, n_half_pad), _pad_last(odd, n_half_pad)], axis=2)
    big = jnp.pad(big, ((0, 0), (0, k_pad - big.shape[1]), (0, 0)))
    return big.reshape(big.shape[0] * k_pad, 2 * n_half_pad)


def _pack_conv(w, scale, w_in, k_pad, n_pad):
    """(KH*k_pad, n_pad) weight for a conv with no W-pool (kh blocks stacked in K)."""
    m = _toeplitz(w, scale, w_in)
    m = _pad_last(m, n_pad)
    m = jnp.pad(m, ((0, 0), (0, k_pad - m.shape[1]), (0, 0)))
    return m.reshape(m.shape[0] * k_pad, n_pad)


def _row_selectors(h_pool):
    """Exact 0/1 bf16 matrices picking even / odd rows (H max-pool decimation via bf16 MXU)."""
    se = jax.nn.one_hot(jnp.arange(0, 2 * h_pool, 2), 2 * h_pool, dtype=jnp.bfloat16)
    so = jax.nn.one_hot(jnp.arange(1, 2 * h_pool, 2), 2 * h_pool, dtype=jnp.bfloat16)
    return se, so


def init_params(key):
    ks = jax.random.split(key, 11)

    def conv_init(kw_key, kb_key, kh, kw, cin, cout):
        bound = 1.0 / (cin * kh * kw) ** 0.5
        w = jax.random.uniform(kw_key, (kh, kw, cin, cout), jnp.float32, -bound, bound)
        b = jax.random.uniform(kb_key, (cout,), jnp.float32, -bound, bound)
        return w, b

    def bn_init(k, c):
        k1, k2, k3, k4 = jax.random.split(k, 4)
        gamma = 1.0 + 0.1 * jax.random.normal(k1, (c,), jnp.float32)
        beta = 0.1 * jax.random.normal(k2, (c,), jnp.float32)
        mean = 0.1 * jax.random.normal(k3, (c,), jnp.float32)
        var = 0.5 + jnp.abs(jax.random.normal(k4, (c,), jnp.float32))
        return gamma, beta, mean, var

    w1, b1 = conv_init(ks[0], ks[1], 3, 3, 1, 8)
    bn1 = bn_init(ks[2], 8)
    w2, b2 = conv_init(ks[3], ks[4], 5, 5, 8, 16)
    bn2 = bn_init(ks[5], 16)
    w3, b3 = conv_init(ks[6], ks[7], 7, 7, 16, 32)
    bn3 = bn_init(ks[8], 32)
    fan_in = 32 * 7 * 7
    bound = 1.0 / fan_in ** 0.5
    fc_w = jax.random.uniform(ks[9], (fan_in, 15), jnp.float32, -bound, bound)  # rows in C,H,W order
    fc_b = jax.random.uniform(ks[10], (15,), jnp.float32, -bound, bound)

    raw = dict(w1=w1, b1=b1, bn1=bn1, w2=w2, b2=b2, bn2=bn2,
               w3=w3, b3=b3, bn3=bn3, fc_w=fc_w, fc_b=fc_b)

    s1, sh1 = _fold_bn(b1, *bn1)
    s2, sh2 = _fold_bn(b2, *bn2)
    s3, sh3 = _fold_bn(b3, *bn3)

    # BN scale folded per output element (before the max) => pooling exact for any gamma sign.
    w1big = _pack_conv_pool(w1, s1, w_in=62, cout=8, k_pad=128, n_half_pad=256)   # (384, 512)
    w2big = _pack_conv_pool(w2, s2, w_in=30, cout=16, k_pad=256, n_half_pad=256)  # (1280, 512)
    w3big = _pack_conv(w3, s3, w_in=13, k_pad=256, n_pad=256)                     # (1792, 256)

    se1, so1 = _row_selectors(30)
    se2, so2 = _row_selectors(13)

    sh1r = _pad_last(jnp.tile(sh1, 30).reshape(1, 240), 256)      # lanes = ow_p*8  + c
    sh2r = _pad_last(jnp.tile(sh2, 13).reshape(1, 208), 256)      # lanes = ow_p*16 + c
    sh3r = _pad_last(jnp.tile(sh3, 7).reshape(1, 224), 256)       # lanes = ow*32   + c

    # Fold PyTorch's C,H,W flatten into a one-time row permutation of fc_w (-> H-major, lane-padded).
    fcw_hwc = fc_w.reshape(32, 7, 7, 15).transpose(1, 2, 0, 3).reshape(7, 224, 15)
    fcw_k = jnp.pad(fcw_hwc, ((0, 0), (0, 32), (0, 0))).reshape(7 * 256, 15)

    bf16 = jnp.bfloat16
    kparams = dict(
        w1=w1big.astype(bf16), sh1=sh1r, se1=se1, so1=so1,
        w2=w2big.astype(bf16), sh2=sh2r, se2=se2, so2=so2,
        w3=w3big.astype(bf16), sh3=sh3r,
        fcw=fcw_k.astype(bf16), fcb=fc_b.reshape(1, 15),
    )
    return kparams, raw


# ----------------------------------------------------------------------------- pure-JAX reference
def cnn2_reference(x_nchw, raw):
    def bn(y, b, bn_p):
        gamma, beta, mean, var = bn_p
        return gamma * (y + b - mean) / jnp.sqrt(var + _BN_EPS) + beta

    def conv(x, w):
        return jax.lax.conv_general_dilated(x, w, (1, 1), 'VALID',
                                            dimension_numbers=('NHWC', 'HWIO', 'NHWC'))

    def pool(x):
        return jax.lax.reduce_window(x, -jnp.inf, jax.lax.max,
                                     (1, 2, 2, 1), (1, 2, 2, 1), 'VALID')

    x = jnp.transpose(x_nchw, (0, 2, 3, 1))                               # NCHW -> NHWC
    x = pool(jax.nn.relu(bn(conv(x, raw['w1']), raw['b1'], raw['bn1'])))  # (N, 30, 30, 8)
    x = pool(jax.nn.relu(bn(conv(x, raw['w2']), raw['b2'], raw['bn2'])))  # (N, 13, 13, 16)
    x = jax.nn.relu(bn(conv(x, raw['w3']), raw['b3'], raw['bn3']))        # (N, 7, 7, 32)
    xf = jnp.transpose(x, (0, 3, 1, 2)).reshape(x.shape[0], -1)           # C,H,W flatten
    return xf @ raw['fc_w'] + raw['fc_b']


if __name__ == "__main__":
    root = jax.random.PRNGKey(0)
    kx, kp = jax.random.split(root)
    kparams, raw = init_params(kp)
    # Smallest valid input for CNN2: 62x62 -> conv/pool chain -> 7x7x32 before fc1.
    x = jax.random.normal(kx, (2, 1, 62, 62), jnp.float32)
    out = jax.jit(lambda a: cnn2_forward(a, kparams))(x)
    jax.block_until_ready(out)
    assert out.shape == (2, 15) and out.dtype == jnp.float32
    ref = cnn2_reference(x, raw)
    assert jnp.allclose(out, ref, rtol=5e-2, atol=5e-2)
    print("KERNEL_OK")
</pallas_src>

<mosaic_0001>
module attributes {stable_mosaic.version = 11 : i64} {
  func.func @_cnn2_kernel(%arg0: i32, %arg1: memref<1x62x128xbf16, #tpu.memory_space<vmem>>, %arg2: memref<384x512xbf16, #tpu.memory_space<vmem>>, %arg3: memref<1x256xf32, #tpu.memory_space<vmem>>, %arg4: memref<30x60xbf16, #tpu.memory_space<vmem>>, %arg5: memref<30x60xbf16, #tpu.memory_space<vmem>>, %arg6: memref<1280x512xbf16, #tpu.memory_space<vmem>>, %arg7: memref<1x256xf32, #tpu.memory_space<vmem>>, %arg8: memref<13x26xbf16, #tpu.memory_space<vmem>>, %arg9: memref<13x26xbf16, #tpu.memory_space<vmem>>, %arg10: memref<1792x256xbf16, #tpu.memory_space<vmem>>, %arg11: memref<1x256xf32, #tpu.memory_space<vmem>>, %arg12: memref<1792x15xbf16, #tpu.memory_space<vmem>>, %arg13: memref<1x15xf32, #tpu.memory_space<vmem>>, %arg14: memref<1x1x15xf32, #tpu.memory_space<vmem>>) attributes {dimension_semantics = [#tpu.dimension_semantics<parallel>], iteration_bounds = array<i64: 2>, scalar_prefetch = 0 : i64, scratch_operands = 0 : i64, tpu.core_type = #tpu.core_type<tc>, window_params = [{transform_indices = @transform_0, window_bounds = array<i64: 1, 62, 128>}, {pipeline_mode = #tpu.pipeline_mode<synchronous>, transform_indices = @transform_1, window_bounds = array<i64: 384, 512>}, {pipeline_mode = #tpu.pipeline_mode<synchronous>, transform_indices = @transform_2, window_bounds = array<i64: 1, 256>}, {pipeline_mode = #tpu.pipeline_mode<synchronous>, transform_indices = @transform_3, window_bounds = array<i64: 30, 60>}, {pipeline_mode = #tpu.pipeline_mode<synchronous>, transform_indices = @transform_4, window_bounds = array<i64: 30, 60>}, {pipeline_mode = #tpu.pipeline_mode<synchronous>, transform_indices = @transform_5, window_bounds = array<i64: 1280, 512>}, {pipeline_mode = #tpu.pipeline_mode<synchronous>, transform_indices = @transform_6, window_bounds = array<i64: 1, 256>}, {pipeline_mode = #tpu.pipeline_mode<synchronous>, transform_indices = @transform_7, window_bounds = array<i64: 13, 26>}, {pipeline_mode = #tpu.pipeline_mode<synchronous>, transform_indices = @transform_8, window_bounds = array<i64: 13, 26>}, {pipeline_mode = #tpu.pipeline_mode<synchronous>, transform_indices = @transform_9, window_bounds = array<i64: 1792, 256>}, {pipeline_mode = #tpu.pipeline_mode<synchronous>, transform_indices = @transform_10, window_bounds = array<i64: 1, 256>}, {pipeline_mode = #tpu.pipeline_mode<synchronous>, transform_indices = @transform_11, window_bounds = array<i64: 1792, 15>}, {pipeline_mode = #tpu.pipeline_mode<synchronous>, transform_indices = @transform_12, window_bounds = array<i64: 1, 15>}, {transform_indices = @transform_13, window_bounds = array<i64: 1, 1, 15>}]} {
    %c0 = arith.constant 0 : index
    %c0_0 = arith.constant 0 : index
    %c0_1 = arith.constant 0 : index
    %0 = vector.load %arg1[%c0, %c0_0, %c0_1] : memref<1x62x128xbf16, #tpu.memory_space<vmem>>, vector<1x62x128xbf16>
    %1 = vector.shape_cast %0 : vector<1x62x128xbf16> to vector<62x128xbf16>
    %2 = vector.extract_strided_slice %1 {offsets = [0, 0], sizes = [60, 128], strides = [1, 1]} : vector<62x128xbf16> to vector<60x128xbf16>
    %3 = vector.extract_strided_slice %1 {offsets = [1, 0], sizes = [60, 128], strides = [1, 1]} : vector<62x128xbf16> to vector<60x128xbf16>
    %4 = vector.extract_strided_slice %1 {offsets = [2, 0], sizes = [60, 128], strides = [1, 1]} : vector<62x128xbf16> to vector<60x128xbf16>
    %5 = tpu.concatenate %2, %3, %4 in 1 : vector<60x128xbf16>, vector<60x128xbf16>, vector<60x128xbf16> -> vector<60x384xbf16>
    %c0_2 = arith.constant 0 : index
    %c0_3 = arith.constant 0 : index
    %6 = vector.load %arg2[%c0_2, %c0_3] : memref<384x512xbf16, #tpu.memory_space<vmem>>, vector<384x512xbf16>
    %cst = arith.constant dense<0.000000e+00> : vector<60x512xf32>
    %7 = tpu.matmul %5, %6, %cst {dimension_numbers = #tpu.dot_dimension_numbers<[1], [0], [0], [1], [0, 0, 1, 1], [], []>} : vector<60x384xbf16>, vector<384x512xbf16>, vector<60x512xf32> -> vector<60x512xf32>
    %8 = vector.extract_strided_slice %7 {offsets = [0, 0], sizes = [60, 256], strides = [1, 1]} : vector<60x512xf32> to vector<60x256xf32>
    %9 = vector.extract_strided_slice %7 {offsets = [0, 256], sizes = [60, 256], strides = [1, 1]} : vector<60x512xf32> to vector<60x256xf32>
    %10 = arith.maximumf %8, %9 : vector<60x256xf32>
    %11 = arith.truncf %10 : vector<60x256xf32> to vector<60x256xbf16>
    %c0_4 = arith.constant 0 : index
    %c0_5 = arith.constant 0 : index
    %12 = vector.load %arg4[%c0_4, %c0_5] : memref<30x60xbf16, #tpu.memory_space<vmem>>, vector<30x60xbf16>
    %cst_6 = arith.constant dense<0.000000e+00> : vector<30x256xf32>
    %13 = tpu.matmul %12, %11, %cst_6 {dimension_numbers = #tpu.dot_dimension_numbers<[1], [0], [0], [1], [0, 0, 1, 1], [], []>} : vector<30x60xbf16>, vector<60x256xbf16>, vector<30x256xf32> -> vector<30x256xf32>
    %c0_7 = arith.constant 0 : index
    %c0_8 = arith.constant 0 : index
    %14 = vector.load %arg5[%c0_7, %c0_8] : memref<30x60xbf16, #tpu.memory_space<vmem>>, vector<30x60xbf16>
    %cst_9 = arith.constant dense<0.000000e+00> : vector<30x256xf32>
    %15 = tpu.matmul %14, %11, %cst_9 {dimension_numbers = #tpu.dot_dimension_numbers<[1], [0], [0], [1], [0, 0, 1, 1], [], []>} : vector<30x60xbf16>, vector<60x256xbf16>, vector<30x256xf32> -> vector<30x256xf32>
    %16 = arith.maximumf %13, %15 : vector<30x256xf32>
    %c0_10 = arith.constant 0 : index
    %c0_11 = arith.constant 0 : index
    %17 = vector.load %arg3[%c0_10, %c0_11] : memref<1x256xf32, #tpu.memory_space<vmem>>, vector<1x256xf32>
    %18 = vector.broadcast %17 : vector<1x256xf32> to vector<30x256xf32>
    %19 = arith.addf %16, %18 : vector<30x256xf32>
    %cst_12 = arith.constant 0.000000e+00 : f32
    %20 = vector.broadcast %cst_12 : f32 to vector<30x256xf32>
    %21 = arith.maximumf %19, %20 : vector<30x256xf32>
    %22 = arith.truncf %21 : vector<30x256xf32> to vector<30x256xbf16>
    %23 = vector.extract_strided_slice %22 {offsets = [0, 0], sizes = [26, 256], strides = [1, 1]} : vector<30x256xbf16> to vector<26x256xbf16>
    %24 = vector.extract_strided_slice %22 {offsets = [1, 0], sizes = [26, 256], strides = [1, 1]} : vector<30x256xbf16> to vector<26x256xbf16>
    %25 = vector.extract_strided_slice %22 {offsets = [2, 0], sizes = [26, 256], strides = [1, 1]} : vector<30x256xbf16> to vector<26x256xbf16>
    %26 = vector.extract_strided_slice %22 {offsets = [3, 0], sizes = [26, 256], strides = [1, 1]} : vector<30x256xbf16> to vector<26x256xbf16>
    %27 = vector.extract_strided_slice %22 {offsets = [4, 0], sizes = [26, 256], strides = [1, 1]} : vector<30x256xbf16> to vector<26x256xbf16>
    %28 = tpu.concatenate %23, %24, %25, %26, %27 in 1 : vector<26x256xbf16>, vector<26x256xbf16>, vector<26x256xbf16>, vector<26x256xbf16>, vector<26x256xbf16> -> vector<26x1280xbf16>
    %c0_13 = arith.constant 0 : index
    %c0_14 = arith.constant 0 : index
    %29 = vector.load %arg6[%c0_13, %c0_14] : memref<1280x512xbf16, #tpu.memory_space<vmem>>, vector<1280x512xbf16>
    %cst_15 = arith.constant dense<0.000000e+00> : vector<26x512xf32>
    %30 = tpu.matmul %28, %29, %cst_15 {dimension_numbers = #tpu.dot_dimension_numbers<[1], [0], [0], [1], [0, 0, 1, 1], [], []>} : vector<26x1280xbf16>, vector<1280x512xbf16>, vector<26x512xf32> -> vector<26x512xf32>
    %31 = vector.extract_strided_slice %30 {offsets = [0, 0], sizes = [26, 256], strides = [1, 1]} : vector<26x512xf32> to vector<26x256xf32>
    %32 = vector.extract_strided_slice %30 {offsets = [0, 256], sizes = [26, 256], strides = [1, 1]} : vector<26x512xf32> to vector<26x256xf32>
    %33 = arith.maximumf %31, %32 : vector<26x256xf32>
    %34 = arith.truncf %33 : vector<26x256xf32> to vector<26x256xbf16>
    %c0_16 = arith.constant 0 : index
    %c0_17 = arith.constant 0 : index
    %35 = vector.load %arg8[%c0_16, %c0_17] : memref<13x26xbf16, #tpu.memory_space<vmem>>, vector<13x26xbf16>
    %cst_18 = arith.constant dense<0.000000e+00> : vector<13x256xf32>
    %36 = tpu.matmul %35, %34, %cst_18 {dimension_numbers = #tpu.dot_dimension_numbers<[1], [0], [0], [1], [0, 0, 1, 1], [], []>} : vector<13x26xbf16>, vector<26x256xbf16>, vector<13x256xf32> -> vector<13x256xf32>
    %c0_19 = arith.constant 0 : index
    %c0_20 = arith.constant 0 : index
    %37 = vector.load %arg9[%c0_19, %c0_20] : memref<13x26xbf16, #tpu.memory_space<vmem>>, vector<13x26xbf16>
    %cst_21 = arith.constant dense<0.000000e+00> : vector<13x256xf32>
    %38 = tpu.matmul %37, %34, %cst_21 {dimension_numbers = #tpu.dot_dimension_numbers<[1], [0], [0], [1], [0, 0, 1, 1], [], []>} : vector<13x26xbf16>, vector<26x256xbf16>, vector<13x256xf32> -> vector<13x256xf32>
    %39 = arith.maximumf %36, %38 : vector<13x256xf32>
    %c0_22 = arith.constant 0 : index
    %c0_23 = arith.constant 0 : index
    %40 = vector.load %arg7[%c0_22, %c0_23] : memref<1x256xf32, #tpu.memory_space<vmem>>, vector<1x256xf32>
    %41 = vector.broadcast %40 : vector<1x256xf32> to vector<13x256xf32>
    %42 = arith.addf %39, %41 : vector<13x256xf32>
    %cst_24 = arith.constant 0.000000e+00 : f32
    %43 = vector.broadcast %cst_24 : f32 to vector<13x256xf32>
    %44 = arith.maximumf %42, %43 : vector<13x256xf32>
    %45 = arith.truncf %44 : vector<13x256xf32> to vector<13x256xbf16>
    %46 = vector.extract_strided_slice %45 {offsets = [0, 0], sizes = [7, 256], strides = [1, 1]} : vector<13x256xbf16> to vector<7x256xbf16>
    %47 = vector.extract_strided_slice %45 {offsets = [1, 0], sizes = [7, 256], strides = [1, 1]} : vector<13x256xbf16> to vector<7x256xbf16>
    %48 = vector.extract_strided_slice %45 {offsets = [2, 0], sizes = [7, 256], strides = [1, 1]} : vector<13x256xbf16> to vector<7x256xbf16>
    %49 = vector.extract_strided_slice %45 {offsets = [3, 0], sizes = [7, 256], strides = [1, 1]} : vector<13x256xbf16> to vector<7x256xbf16>
    %50 = vector.extract_strided_slice %45 {offsets = [4, 0], sizes = [7, 256], strides = [1, 1]} : vector<13x256xbf16> to vector<7x256xbf16>
    %51 = vector.extract_strided_slice %45 {offsets = [5, 0], sizes = [7, 256], strides = [1, 1]} : vector<13x256xbf16> to vector<7x256xbf16>
    %52 = vector.extract_strided_slice %45 {offsets = [6, 0], sizes = [7, 256], strides = [1, 1]} : vector<13x256xbf16> to vector<7x256xbf16>
    %53 = tpu.concatenate %46, %47, %48, %49, %50, %51, %52 in 1 : vector<7x256xbf16>, vector<7x256xbf16>, vector<7x256xbf16>, vector<7x256xbf16>, vector<7x256xbf16>, vector<7x256xbf16>, vector<7x256xbf16> -> vector<7x1792xbf16>
    %c0_25 = arith.constant 0 : index
    %c0_26 = arith.constant 0 : index
    %54 = vector.load %arg10[%c0_25, %c0_26] : memref<1792x256xbf16, #tpu.memory_space<vmem>>, vector<1792x256xbf16>
    %cst_27 = arith.constant dense<0.000000e+00> : vector<7x256xf32>
    %55 = tpu.matmul %53, %54, %cst_27 {dimension_numbers = #tpu.dot_dimension_numbers<[1], [0], [0], [1], [0, 0, 1, 1], [], []>} : vector<7x1792xbf16>, vector<1792x256xbf16>, vector<7x256xf32> -> vector<7x256xf32>
    %c0_28 = arith.constant 0 : index
    %c0_29 = arith.constant 0 : index
    %56 = vector.load %arg11[%c0_28, %c0_29] : memref<1x256xf32, #tpu.memory_space<vmem>>, vector<1x256xf32>
    %57 = vector.broadcast %56 : vector<1x256xf32> to vector<7x256xf32>
    %58 = arith.addf %55, %57 : vector<7x256xf32>
    %cst_30 = arith.constant 0.000000e+00 : f32
    %59 = vector.broadcast %cst_30 : f32 to vector<7x256xf32>
    %60 = arith.maximumf %58, %59 : vector<7x256xf32>
    %61 = arith.truncf %60 : vector<7x256xf32> to vector<7x256xbf16>
    %c0_31 = arith.constant 0 : index
    %c0_32 = arith.constant 0 : index
    %62 = vector.load %arg13[%c0_31, %c0_32] : memref<1x15xf32, #tpu.memory_space<vmem>>, vector<1x15xf32>
    %63 = vector.extract_strided_slice %61 {offsets = [0, 0], sizes = [1, 256], strides = [1, 1]} : vector<7x256xbf16> to vector<1x256xbf16>
    %c0_33 = arith.constant 0 : index
    %c0_34 = arith.constant 0 : index
    %64 = vector.load %arg12[%c0_33, %c0_34] : memref<1792x15xbf16, #tpu.memory_space<vmem>>, vector<256x15xbf16>
    %cst_35 = arith.constant dense<0.000000e+00> : vector<1x15xf32>
    %65 = tpu.matmul %63, %64, %cst_35 {dimension_numbers = #tpu.dot_dimension_numbers<[1], [0], [0], [1], [0, 0, 1, 1], [], []>} : vector<1x256xbf16>, vector<256x15xbf16>, vector<1x15xf32> -> vector<1x15xf32>
    %66 = arith.addf %62, %65 : vector<1x15xf32>
    %67 = vector.extract_strided_slice %61 {offsets = [1, 0], sizes = [1, 256], strides = [1, 1]} : vector<7x256xbf16> to vector<1x256xbf16>
    %c256 = arith.constant 256 : index
    %c0_36 = arith.constant 0 : index
    %68 = vector.load %arg12[%c256, %c0_36] : memref<1792x15xbf16, #tpu.memory_space<vmem>>, vector<256x15xbf16>
    %cst_37 = arith.constant dense<0.000000e+00> : vector<1x15xf32>
    %69 = tpu.matmul %67, %68, %cst_37 {dimension_numbers = #tpu.dot_dimension_numbers<[1], [0], [0], [1], [0, 0, 1, 1], [], []>} : vector<1x256xbf16>, vector<256x15xbf16>, vector<1x15xf32> -> vector<1x15xf32>
    %70 = arith.addf %66, %69 : vector<1x15xf32>
    %71 = vector.extract_strided_slice %61 {offsets = [2, 0], sizes = [1, 256], strides = [1, 1]} : vector<7x256xbf16> to vector<1x256xbf16>
    %c512 = arith.constant 512 : index
    %c0_38 = arith.constant 0 : index
    %72 = vector.load %arg12[%c512, %c0_38] : memref<1792x15xbf16, #tpu.memory_space<vmem>>, vector<256x15xbf16>
    %cst_39 = arith.constant dense<0.000000e+00> : vector<1x15xf32>
    %73 = tpu.matmul %71, %72, %cst_39 {dimension_numbers = #tpu.dot_dimension_numbers<[1], [0], [0], [1], [0, 0, 1, 1], [], []>} : vector<1x256xbf16>, vector<256x15xbf16>, vector<1x15xf32> -> vector<1x15xf32>
    %74 = arith.addf %70, %73 : vector<1x15xf32>
    %75 = vector.extract_strided_slice %61 {offsets = [3, 0], sizes = [1, 256], strides = [1, 1]} : vector<7x256xbf16> to vector<1x256xbf16>
    %c768 = arith.constant 768 : index
    %c0_40 = arith.constant 0 : index
    %76 = vector.load %arg12[%c768, %c0_40] : memref<1792x15xbf16, #tpu.memory_space<vmem>>, vector<256x15xbf16>
    %cst_41 = arith.constant dense<0.000000e+00> : vector<1x15xf32>
    %77 = tpu.matmul %75, %76, %cst_41 {dimension_numbers = #tpu.dot_dimension_numbers<[1], [0], [0], [1], [0, 0, 1, 1], [], []>} : vector<1x256xbf16>, vector<256x15xbf16>, vector<1x15xf32> -> vector<1x15xf32>
    %78 = arith.addf %74, %77 : vector<1x15xf32>
    %79 = vector.extract_strided_slice %61 {offsets = [4, 0], sizes = [1, 256], strides = [1, 1]} : vector<7x256xbf16> to vector<1x256xbf16>
    %c1024 = arith.constant 1024 : index
    %c0_42 = arith.constant 0 : index
    %80 = vector.load %arg12[%c1024, %c0_42] : memref<1792x15xbf16, #tpu.memory_space<vmem>>, vector<256x15xbf16>
    %cst_43 = arith.constant dense<0.000000e+00> : vector<1x15xf32>
    %81 = tpu.matmul %79, %80, %cst_43 {dimension_numbers = #tpu.dot_dimension_numbers<[1], [0], [0], [1], [0, 0, 1, 1], [], []>} : vector<1x256xbf16>, vector<256x15xbf16>, vector<1x15xf32> -> vector<1x15xf32>
    %82 = arith.addf %78, %81 : vector<1x15xf32>
    %83 = vector.extract_strided_slice %61 {offsets = [5, 0], sizes = [1, 256], strides = [1, 1]} : vector<7x256xbf16> to vector<1x256xbf16>
    %c1280 = arith.constant 1280 : index
    %c0_44 = arith.constant 0 : index
    %84 = vector.load %arg12[%c1280, %c0_44] : memref<1792x15xbf16, #tpu.memory_space<vmem>>, vector<256x15xbf16>
    %cst_45 = arith.constant dense<0.000000e+00> : vector<1x15xf32>
    %85 = tpu.matmul %83, %84, %cst_45 {dimension_numbers = #tpu.dot_dimension_numbers<[1], [0], [0], [1], [0, 0, 1, 1], [], []>} : vector<1x256xbf16>, vector<256x15xbf16>, vector<1x15xf32> -> vector<1x15xf32>
    %86 = arith.addf %82, %85 : vector<1x15xf32>
    %87 = vector.extract_strided_slice %61 {offsets = [6, 0], sizes = [1, 256], strides = [1, 1]} : vector<7x256xbf16> to vector<1x256xbf16>
    %c1536 = arith.constant 1536 : index
    %c0_46 = arith.constant 0 : index
    %88 = vector.load %arg12[%c1536, %c0_46] : memref<1792x15xbf16, #tpu.memory_space<vmem>>, vector<256x15xbf16>
    %cst_47 = arith.constant dense<0.000000e+00> : vector<1x15xf32>
    %89 = tpu.matmul %87, %88, %cst_47 {dimension_numbers = #tpu.dot_dimension_numbers<[1], [0], [0], [1], [0, 0, 1, 1], [], []>} : vector<1x256xbf16>, vector<256x15xbf16>, vector<1x15xf32> -> vector<1x15xf32>
    %90 = arith.addf %86, %89 : vector<1x15xf32>
    %c0_48 = arith.constant 0 : index
    %c0_49 = arith.constant 0 : index
    %c0_50 = arith.constant 0 : index
    %91 = vector.load %arg14[%c0_48, %c0_49, %c0_50] : memref<1x1x15xf32, #tpu.memory_space<vmem>>, vector<1x1x15xf32>
    %92 = vector.shape_cast %91 : vector<1x1x15xf32> to vector<1x15xf32>
    %93 = vector.shape_cast %90 : vector<1x15xf32> to vector<1x1x15xf32>
    tpu.vector_store %arg14[%c0_48, %c0_49, %c0_50], %93 {strides = array<i32>} : memref<1x1x15xf32, #tpu.memory_space<vmem>>, vector<1x1x15xf32>,
    return
  }
  func.func @transform_0(%arg0: i32) -> (i32, i32, i32) {
    %c0_i32 = arith.constant 0 : i32
    %c0_i32_0 = arith.constant 0 : i32
    %c0_i32_1 = arith.constant 0 : i32
    return %arg0, %c0_i32, %c0_i32_0 : i32, i32, i32
  }
  func.func @transform_1(%arg0: i32) -> (i32, i32) {
    %c0_i32 = arith.constant 0 : i32
    %c0_i32_0 = arith.constant 0 : i32
    %c0_i32_1 = arith.constant 0 : i32
    return %c0_i32, %c0_i32_0 : i32, i32
  }
  func.func @transform_2(%arg0: i32) -> (i32, i32) {
    %c0_i32 = arith.constant 0 : i32
    %c0_i32_0 = arith.constant 0 : i32
    %c0_i32_1 = arith.constant 0 : i32
    return %c0_i32, %c0_i32_0 : i32, i32
  }
  func.func @transform_3(%arg0: i32) -> (i32, i32) {
    %c0_i32 = arith.constant 0 : i32
    %c0_i32_0 = arith.constant 0 : i32
    %c0_i32_1 = arith.constant 0 : i32
    return %c0_i32, %c0_i32_0 : i32, i32
  }
  func.func @transform_4(%arg0: i32) -> (i32, i32) {
    %c0_i32 = arith.constant 0 : i32
    %c0_i32_0 = arith.constant 0 : i32
    %c0_i32_1 = arith.constant 0 : i32
    return %c0_i32, %c0_i32_0 : i32, i32
  }
  func.func @transform_5(%arg0: i32) -> (i32, i32) {
    %c0_i32 = arith.constant 0 : i32
    %c0_i32_0 = arith.constant 0 : i32
    %c0_i32_1 = arith.constant 0 : i32
    return %c0_i32, %c0_i32_0 : i32, i32
  }
  func.func @transform_6(%arg0: i32) -> (i32, i32) {
    %c0_i32 = arith.constant 0 : i32
    %c0_i32_0 = arith.constant 0 : i32
    %c0_i32_1 = arith.constant 0 : i32
    return %c0_i32, %c0_i32_0 : i32, i32
  }
  func.func @transform_7(%arg0: i32) -> (i32, i32) {
    %c0_i32 = arith.constant 0 : i32
    %c0_i32_0 = arith.constant 0 : i32
    %c0_i32_1 = arith.constant 0 : i32
    return %c0_i32, %c0_i32_0 : i32, i32
  }
  func.func @transform_8(%arg0: i32) -> (i32, i32) {
    %c0_i32 = arith.constant 0 : i32
    %c0_i32_0 = arith.constant 0 : i32
    %c0_i32_1 = arith.constant 0 : i32
    return %c0_i32, %c0_i32_0 : i32, i32
  }
  func.func @transform_9(%arg0: i32) -> (i32, i32) {
    %c0_i32 = arith.constant 0 : i32
    %c0_i32_0 = arith.constant 0 : i32
    %c0_i32_1 = arith.constant 0 : i32
    return %c0_i32, %c0_i32_0 : i32, i32
  }
  func.func @transform_10(%arg0: i32) -> (i32, i32) {
    %c0_i32 = arith.constant 0 : i32
    %c0_i32_0 = arith.constant 0 : i32
    %c0_i32_1 = arith.constant 0 : i32
    return %c0_i32, %c0_i32_0 : i32, i32
  }
  func.func @transform_11(%arg0: i32) -> (i32, i32) {
    %c0_i32 = arith.constant 0 : i32
    %c0_i32_0 = arith.constant 0 : i32
    %c0_i32_1 = arith.constant 0 : i32
    return %c0_i32, %c0_i32_0 : i32, i32
  }
  func.func @transform_12(%arg0: i32) -> (i32, i32) {
    %c0_i32 = arith.constant 0 : i32
    %c0_i32_0 = arith.constant 0 : i32
    %c0_i32_1 = arith.constant 0 : i32
    return %c0_i32, %c0_i32_0 : i32, i32
  }
  func.func @transform_13(%arg0: i32) -> (i32, i32, i32) {
    %c0_i32 = arith.constant 0 : i32
    %c0_i32_0 = arith.constant 0 : i32
    %c0_i32_1 = arith.constant 0 : i32
    return %arg0, %c0_i32, %c0_i32_0 : i32, i32, i32
  }
}

</mosaic_0001>

<bundles_post_ra>
// kernel: _lambda_.1
= control target key start
LH: loop header
LB: loop body
LE: loop exit
PB: predicated region body
PF: predicated region fallthrough
CT: control target
= control target key end

     0   :  { %18 = vsyncpa [#allocation3], 0  ;;  %s12254_s0 = inlined_call_operand.vmem [shape: bf16[2,62,128], index: 0, kind: input, shape index: {}]   ;;  %s12255_s1 = inlined_call_operand.vmem [shape: bf16[384,512], index: 1, kind: input, shape index: {}]   ;;  %s12256_s2 = inlined_call_operand.vmem [shape: f32[1,256], index: 2, kind: input, shape index: {}]   ;;  %s12257_s3 = inlined_call_operand.vmem [shape: bf16[30,60], index: 3, kind: input, shape index: {}]   ;;  %s12258_s4 = inlined_call_operand.vmem [shape: bf16[30,60], index: 4, kind: input, shape index: {}]   ;;  %s12259_s5 = inlined_call_operand.vmem [shape: bf16[1280,512], index: 5, kind: input, shape index: {}]   ;;  %s12260_s6 = inlined_call_operand.vmem [shape: f32[1,256], index: 6, kind: input, shape index: {}]   ;;  %s12261_s7 = inlined_call_operand.vmem [shape: bf16[13,26], index: 7, kind: input, shape index: {}]   ;;  %s12262_s8 = inlined_call_operand.vmem [shape: bf16[13,26], index: 8, kind: input, shape index: {}]   ;;  %s12263_s9 = inlined_call_operand.vmem [shape: bf16[1792,256], index: 9, kind: input, shape index: {}]   ;;  %s12264_s10 = inlined_call_operand.vmem [shape: f32[1,256], index: 10, kind: input, shape index: {}]   ;;  %s12265_s11 = inlined_call_operand.vmem [shape: bf16[1792,15], index: 11, kind: input, shape index: {}]   ;;  %s12266_s12 = inlined_call_operand.vmem [shape: f32[1,15], index: 12, kind: input, shape index: {}]   ;;  %s12267_s13 = inlined_call_operand.hbm [shape: f32[2,1,15], index: 13, kind: output, shape index: {}]  }
   0x1   :  { %20 = vsyncpa [#allocation3 + $0x1], 0  ;;  %s9582_s25 = smov 0   ;;  %s9584_s26 = smov 0  }
   0x2   :  { %s9586_s27 = smov 0   ;;  %s9588_s28 = smov 0  }
   0x3 LB: > { %12271 = sst [smem:[#allocation5_spill]] %s9504_s27  ;;  %s9603_s29 = sadd.s32 4294967295, %s9508_s28   ;;  %s9508_s28 = sphi %s9588_s28, %s12276_s28   ;;  %s9504_s27 = sphi %s9586_s27, %s12278_s27   ;;  %s9500_s26 = sphi %s9584_s26, %s12280_s26   ;;  %s9496_s25 = sphi %s9582_s25, %s12279_s25  }
   0x4   : > { %s7262_s30 = sadd.s32 4294967294, %s9508_s28   ;;  %s9607_s14 = sadd.s32 1, %s9508_s28  }
   0x5   : > { %12272 = sst [smem:[#allocation6_spill]] %s9607_s14  ;;  %s311_s15 = sadd.s32 1, %s9504_s27 }
   0x6   : > { %s308_s16 = ssub.s32 %s9508_s28, %s9607_s14  ;;  %p321_p0 = scmp.ne.s32.totalorder %s9504_s27, %s9500_s26 }
   0x7   : > { %p309_p1 = scmp.eq.s32.totalorder %s308_s16, 0  ;;  %p322_p2 = scmp.eq.s32.totalorder %s9603_s29, 1 }
   0x8   : > { %p327_p3 = scmp.ne.s32.totalorder %s9500_s26, %s9496_s25  ;;  %p328_p4 = scmp.eq.s32.totalorder %s7262_s30, 1 }
   0x9   : > { %s9618_s17 = scalar_select %p309_p1, %s9504_s27, %s311_s15  }
   0xa   : > { %p9620_p5 = por %p322_p2, %p321_p0  ;;  %p9624_p6 = por %p328_p4, %p327_p3 }
   0xb   : > { %12273 = sst [smem:[#allocation7_spill]] %s9618_s17  ;;  %p7265_p7 = scmp.ge.s32.totalorder %s9508_s28, 1 }
   0xc   : > { %p390_p8 = scmp.lt.s32.totalorder %s9508_s28, 3 }
   0xe   : > { %p391_p9 = pnand %p7265_p7, %p390_p8 }
   0xf   : > { %v8360_v0 = vld [vmem:[%s12255_s1 + $0x4] ss:$16 sps:$4 sm:$0xff] (!%p391_p9)   ;;  %v8362_v1 = vld [vmem:[%s12255_s1] ss:$16 sps:$4 sm:$0xff] (!%p391_p9)   ;;  %v9510_v2 = vmov (!%p391_p9), 0   ;;  %p433_p10 = scmp.lt.s32.totalorder (!%p391_p9), %s9603_s29, 1 }
  0x10   : > { %394 = sbr.rel (%p391_p9) target bundleno = 2428 (0x97c), region = 72  ;;  %1471 = vmatprep.mubr.bf16.mxu0 (!%p391_p9), %v9510_v2  ;;  %1095 = vmatprep.subr.bf16.mxu1 (!%p391_p9), %v8360_v0  ;;  %v8363_v3 = vld [vmem:[%s12255_s1 + $0x24] ss:$16 sps:$4 sm:$0xff] (!%p391_p9)   ;;  %v8365_v4 = vld [vmem:[%s12255_s1 + $0x20] ss:$16 sps:$4 sm:$0xff] (!%p391_p9)   ;;  %vm507_vm1 = vcmask (!%p391_p9), 1046528  }
  0x11   : > { %1096 = vmatpush1.bf16.msra.mxu1 (!%p391_p9), %v8362_v1  ;;  %v8366_v5 = vld [vmem:[%s12255_s1 + $0x44] ss:$16 sps:$4 sm:$0xff] (!%p391_p9)   ;;  %v8368_v6 = vld [vmem:[%s12255_s1 + $0x40] ss:$16 sps:$4 sm:$0xff] (!%p391_p9)   ;;  %vm471_vm0 = vsmask.f32 (!%p391_p9), 7424 }
  0x12   : > { %1097 = vmatprep.subr.bf16.mxu1 (!%p391_p9), %v8363_v3  ;;  %v8369_v7 = vld [vmem:[%s12255_s1 + $0x64] ss:$16 sps:$4 sm:$0xff] (!%p391_p9)   ;;  %v8371_v8 = vld [vmem:[%s12255_s1 + $0x60] ss:$16 sps:$4 sm:$0xff] (!%p391_p9)   ;;  %vm1432_vm2 = vcmask (!%p391_p9), 1045504   ;;  %vm1425_vm3 = vcmask (!%p391_p9), 490496  }
  0x13   : > { %v8372_v9 = vld [vmem:[%s12255_s1 + $0x84] ss:$16 sps:$4 sm:$0xff] (!%p391_p9)   ;;  %v8374_v10 = vld [vmem:[%s12255_s1 + $0x80] ss:$16 sps:$4 sm:$0xff] (!%p391_p9)   ;;  %vm1653_vm4 = vsmask.f32 (!%p391_p9), 6400 }
  0x14   : > { %v8375_v11 = vld [vmem:[%s12255_s1 + $0xa4] ss:$16 sps:$4 sm:$0xff] (!%p391_p9)   ;;  %v8377_v12 = vld [vmem:[%s12255_s1 + $0xa0] ss:$16 sps:$4 sm:$0xff] (!%p391_p9)   ;;  %vm4156_vm5 = vcmask (!%p391_p9), 1044480   ;;  %vm4152_vm6 = vcmask (!%p391_p9), 211968  }
  0x15   : > { %1098 = vmatpush1.bf16.msra.mxu1 (!%p391_p9), %v8365_v4  ;;  %v8378_v13 = vld [vmem:[%s12255_s1 + $0xc4] ss:$16 sps:$4 sm:$0xff] (!%p391_p9)   ;;  %v8380_v14 = vld [vmem:[%s12255_s1 + $0xc0] ss:$16 sps:$4 sm:$0xff] (!%p391_p9)   ;;  %s431_s30 = sand.u32 (!%p391_p9), 1, %s9500_s26   ;;  %s8040_s15 = sshll.u32 (!%p391_p9), %s9603_s29, 4 }
  0x16   : > { %1099 = vmatprep.subr.bf16.mxu1 (!%p391_p9), %v8366_v5  ;;  %v8381_v17 = vld [vmem:[%s12255_s1 + $0xe4] ss:$16 sps:$4 sm:$0xff] (!%p391_p9)   ;;  %v8383_v21 = vld [vmem:[%s12255_s1 + $0xe0] ss:$16 sps:$4 sm:$0xff] (!%p391_p9)   ;;  %s432_s21 = scalar_lea.vmem (!%p391_p9), [#allocation2], %s431_s30  ;;  %vm7192_vm7 = vcmask (!%p391_p9), 114688   ;;  %s12212_s14 = scalar_lea.hbm (!%p391_p9), %s12267_s13, %s8040_s15 }
  0x17   : > { %s434_s20 = scalar_select %p433_p10, %s9603_s29, 1  ;;  %v8384_v24 = vld [vmem:[%s12255_s1 + $0x104] ss:$16 sps:$4 sm:$0xff]   ;;  %v8386_v27 = vld [vmem:[%s12255_s1 + $0x100] ss:$16 sps:$4 sm:$0xff]  }
  0x18   : > { %v8387_v28 = vld [vmem:[%s12255_s1 + $0x124] ss:$16 sps:$4 sm:$0xff]   ;;  %v8389_v29 = vld [vmem:[%s12255_s1 + $0x120] ss:$16 sps:$4 sm:$0xff]   ;;  %s7207_s22 = sshll.u32 %s432_s21, 4  ;;  %s12214_s22 = int_to_ptr.vmem [resolvable:$true] %s7207_s22 }
  0x19   : > { %1100 = vmatpush1.bf16.msra.mxu1 %v8368_v6  ;;  %s8043_s23 = sshll.u32 %s434_s20, 5  ;;  %v8390_v30 = vld [vmem:[%s12255_s1 + $0x144] ss:$16 sps:$4 sm:$0xff]   ;;  %v8392_v31 = vld [vmem:[%s12255_s1 + $0x140] ss:$16 sps:$4 sm:$0xff]   ;;  %s7195_s20 = scalar_lea.sflag [#allocation3], %s431_s30 }
  0x1a   : > { %1101 = vmatprep.subr.bf16.mxu1 %v8369_v7  ;;  %s9672_s16 = scalar_lea.vmem %s12254_s0, %s8043_s23  ;;  %v8393_v32 = vld [vmem:[%s12255_s1 + $0x164] ss:$16 sps:$4 sm:$0xff]   ;;  %v8395_v33 = vld [vmem:[%s12255_s1 + $0x160] ss:$16 sps:$4 sm:$0xff]   ;;  %s9446_s29 = scalar_lea.vmem %s12214_s22, 16 }
  0x1b   : > { %v9681_v15 = vld [vmem:[%s9672_s16] sm:$0xff]   ;;  %v9684_v16 = vld [vmem:[%s9672_s16 + $0x8] sm:$0xff]   ;;  %v9739_v39 = vld [vmem:[%s9672_s16 + $0x10] sm:$0xff]   ;;  %p9447_p11 = scmp.ne.s32.totalorder %s12214_s22, %s9446_s29  ;;  %s9511_s23 = smov [#allocation2]  }
  0x1c   : > { %v473_v18 = vshrl.u32 %v9681_v15, 16  ;;  %v475_v19 = vshll.u32 %v9681_v15, 16  ;;  %v480_v20 = vshll.u32 %v9684_v16, 16  ;;  %v8396_v34 = vld [vmem:[%s12255_s1 + $0x184] ss:$16 sps:$4 sm:$0xff]   ;;  %v484_v42 = vshrl.u32 %v9684_v16, 16 }
  0x1d   : > { %1102 = vmatpush1.bf16.msra.mxu1 %v8371_v8  ;;  %v8398_v35 = vld [vmem:[%s12255_s1 + $0x180] ss:$16 sps:$4 sm:$0xff]   ;;  %v8399_v36 = vld [vmem:[%s12255_s1 + $0x1a4] ss:$16 sps:$4 sm:$0xff]   ;;  %v488_v43 = vshll.u32 %v9739_v39, 16  ;;  %v492_v52 = vshrl.u32 %v9739_v39, 16  ;;  %p9448_p12 = pnand %p9447_p11, %p9620_p5 }
  0x1e   : > { %1103 = vmatprep.subr.bf16.mxu1 %v8372_v9  ;;  %v477_v22 = vrot.slane %v475_v19, 1  ;;  %v482_v23 = vrot.slane %v480_v20, 1  ;;  %v8401_v37 = vld [vmem:[%s12255_s1 + $0x1a0] ss:$16 sps:$4 sm:$0xff]   ;;  %v8402_v38 = vld [vmem:[%s12255_s1 + $0x1c4] ss:$16 sps:$4 sm:$0xff]  }
  0x1f   : > { %v8404_v40 = vld [vmem:[%s12255_s1 + $0x1c0] ss:$16 sps:$4 sm:$0xff]   ;;  %v8405_v41 = vld [vmem:[%s12255_s1 + $0x1e4] ss:$16 sps:$4 sm:$0xff]   ;;  %v490_v47 = vrot.slane %v488_v43, 1  ;;  %p9449_p13 = pneg %p9448_p12  ;;  %s9450_s24 = sshll.u32 %s9511_s23, 4  ;;  %s9451_s24 = int_to_ptr.vmem [resolvable:$false] %s9450_s24 }
  0x20   : > { %v478_v25 = vor.u32 %v477_v22, %v473_v18  ;;  %v8407_v44 = vld [vmem:[%s12255_s1 + $0x1e0] ss:$16 sps:$4 sm:$0xff]   ;;  %v8412_v45 = vld [vmem:[%s12255_s1 + $0x204] ss:$16 sps:$4 sm:$0xff]   ;;  %v486_v46 = vor.u32 %v484_v42, %v482_v23  ;;  %v9756_v48 = vld [vmem:[%s9672_s16 + $0x18] sm:$0x7f]   ;;  %p9453_p0 = scmp.lt.s32.totalorder %s12214_s22, %s9451_s24 }
  0x21   : > { %1104 = vmatpush1.bf16.msra.mxu1 %v8374_v10  ;;  %v8410_v49 = vld [vmem:[%s12255_s1 + $0x200] ss:$16 sps:$4 sm:$0xff]   ;;  %v8415_v50 = vld [vmem:[%s12255_s1 + $0x224] ss:$16 sps:$4 sm:$0xff]   ;;  %v496_v53 = vshll.u32 %v9756_v48, 16  ;;  %v494_v56 = vor.u32 %v492_v52, %v490_v47  ;;  %v500_v63 = vshrl.u32 %v9756_v48, 16 }
  0x22   : > { %1105 = vmatprep.subr.bf16.mxu1 %v8375_v11  ;;  %v9699_v26 = vsel %vm471_vm0, %v478_v25, %v482_v23  ;;  %v9765_v51 = vsel %vm471_vm0, %v486_v46, %v490_v47  ;;  %v8413_v54 = vld [vmem:[%s12255_s1 + $0x220] ss:$16 sps:$4 sm:$0xff]   ;;  %v8419_v55 = vld [vmem:[%s12255_s1 + $0x244] ss:$16 sps:$4 sm:$0xff]   ;;  %v8438_v9 = vld [vmem:[%s12255_s1 + $0xc] ss:$16 sps:$4 sm:$0xff]  }
  0x23   : > { %1127 = vmatprep.mubr.bf16.mxu1 %v9699_v26  ;;  %v498_v57 = vrot.slane %v496_v53, 1  ;;  %v8417_v58 = vld [vmem:[%s12255_s1 + $0x240] ss:$16 sps:$4 sm:$0xff]   ;;  %v8422_v59 = vld [vmem:[%s12255_s1 + $0x264] ss:$16 sps:$4 sm:$0xff]   ;;  %v508_v10 = vrot.slane %v9681_v15, 1 }
  0x24   : > { %v8420_v61 = vld [vmem:[%s12255_s1 + $0x260] ss:$16 sps:$4 sm:$0xff]   ;;  %v8426_v62 = vld [vmem:[%s12255_s1 + $0x284] ss:$16 sps:$4 sm:$0xff]   ;;  %v509_v11 = vrot.slane %v9684_v16, 1  ;;  %v9863_v23 = vrot.slane %v9756_v48, 1 }
  0x25   : > { %1106 = vmatpush1.bf16.msra.mxu1 %v8377_v12  ;;  %v9784_v60 = vsel %vm471_vm0, %v494_v56, %v498_v57  ;;  %v8424_v0 = vld [vmem:[%s12255_s1 + $0x280] ss:$16 sps:$4 sm:$0xff]   ;;  %v8429_v1 = vld [vmem:[%s12255_s1 + $0x2a4] ss:$16 sps:$4 sm:$0xff]   ;;  %v9801_v3 = vor.u32 %v500_v63, %v498_v57  ;;  %v8436_v12 = vld [vmem:[%s12255_s1 + $0x8] ss:$16 sps:$4 sm:$0xff]  }
  0x26   : > { %1107 = vmatprep.subr.bf16.mxu1 %v8378_v13  ;;  %v8427_v4 = vld [vmem:[%s12255_s1 + $0x2a0] ss:$16 sps:$4 sm:$0xff]   ;;  %v8432_v5 = vld [vmem:[%s12255_s1 + $0x2c4] ss:$16 sps:$4 sm:$0xff]   ;;  %v8441_v13 = vld [vmem:[%s12255_s1 + $0x2c] ss:$16 sps:$4 sm:$0xff]  }
  0x27   : > { %v8430_v6 = vld [vmem:[%s12255_s1 + $0x2c0] ss:$16 sps:$4 sm:$0xff]   ;;  %v8435_v7 = vld [vmem:[%s12255_s1 + $0x2e4] ss:$16 sps:$4 sm:$0xff]   ;;  %v8442_v18 = vld [vmem:[%s12255_s1 + $0x48] ss:$16 sps:$4 sm:$0xff]  }
  0x28   : > { %v8433_v8 = vld [vmem:[%s12255_s1 + $0x2e0] ss:$16 sps:$4 sm:$0xff]   ;;  %v8447_v19 = vld [vmem:[%s12255_s1 + $0x6c] ss:$16 sps:$4 sm:$0xff]   ;;  %v8475_v43 = vld [vmem:[%s12255_s1 + $0x1a8] ss:$16 sps:$4 sm:$0xff]  }
  0x29   : > { %1108 = vmatpush1.bf16.msra.mxu1 %v8380_v14  ;;  %v9834_v14 = vsel %vm507_vm1, %v508_v10, %v509_v11  ;;  %v8450_v22 = vld [vmem:[%s12255_s1 + $0x8c] ss:$16 sps:$4 sm:$0xff]   ;;  %v8481_v47 = vld [vmem:[%s12255_s1 + $0x1e8] ss:$16 sps:$4 sm:$0xff]   ;;  %v9442_v53 = vld [vmem:[%s9672_s16] sm:$0xff]  }
  0x2a   : > { %1109 = vmatprep.subr.bf16.mxu1 %v8381_v17  ;;  %v511_v17 = vrot.slane %v9739_v39, 1  ;;  %v8453_v25 = vld [vmem:[%s12255_s1 + $0xac] ss:$16 sps:$4 sm:$0xff]   ;;  %v8487_v52 = vld [vmem:[%s12255_s1 + $0x228] ss:$16 sps:$4 sm:$0xff]   ;;  %v9444_v63 = vld [vmem:[%s9672_s16 + $0x10] sm:$0xff]  }
  0x2b   : > { %v8477_v42 = vld [vmem:[%s12255_s1 + $0x1ac] ss:$16 sps:$4 sm:$0xff]   ;;  %v8493_v57 = vld [vmem:[%s12255_s1 + $0x268] ss:$16 sps:$4 sm:$0xff]  }
  0x2c   : > { %v9852_v20 = vsel %vm507_vm1, %v509_v11, %v511_v17  ;;  %v8483_v46 = vld [vmem:[%s12255_s1 + $0x1ec] ss:$16 sps:$4 sm:$0xff]  }
  0x2d   : > { %1110 = vmatpush1.bf16.msra.mxu1 %v8383_v21  ;;  %v8445_v21 = vld [vmem:[%s12255_s1 + $0x68] ss:$16 sps:$4 sm:$0xff]   ;;  %v8495_v56 = vld [vmem:[%s12255_s1 + $0x26c] ss:$16 sps:$4 sm:$0xff]  }
  0x2e   : > { %1111 = vmatprep.subr.bf16.mxu1 %v8384_v24  ;;  %v8448_v24 = vld [vmem:[%s12255_s1 + $0x88] ss:$16 sps:$4 sm:$0xff]  }
  0x31   : > { %1112 = vmatpush1.bf16.msra.mxu1 %v8386_v27  ;;  %v9873_v27 = vsel %vm507_vm1, %v511_v17, %v9863_v23 }
  0x32   : > { %1113 = vmatprep.subr.bf16.mxu1 %v8387_v28  ;;  %v8451_v28 = vld [vmem:[%s12255_s1 + $0xa8] ss:$16 sps:$4 sm:$0xff]  }
  0x35   : > { %1114 = vmatpush1.bf16.msra.mxu1 %v8389_v29  ;;  %v8456_v29 = vld [vmem:[%s12255_s1 + $0xcc] ss:$16 sps:$4 sm:$0xff]  }
  0x36   : > { %1115 = vmatprep.subr.bf16.mxu1 %v8390_v30  ;;  %v8454_v30 = vld [vmem:[%s12255_s1 + $0xc8] ss:$16 sps:$4 sm:$0xff]  }
  0x39   : > { %1116 = vmatpush1.bf16.msra.mxu1 %v8392_v31  ;;  %v8459_v31 = vld [vmem:[%s12255_s1 + $0xec] ss:$16 sps:$4 sm:$0xff]  }
  0x3a   : > { %1117 = vmatprep.subr.bf16.mxu1 %v8393_v32  ;;  %v8457_v32 = vld [vmem:[%s12255_s1 + $0xe8] ss:$16 sps:$4 sm:$0xff]  }
  0x3d   : > { %1118 = vmatpush1.bf16.msra.mxu1 %v8395_v33  ;;  %v8462_v33 = vld [vmem:[%s12255_s1 + $0x10c] ss:$16 sps:$4 sm:$0xff]  }
  0x3e   : > { %1119 = vmatprep.subr.bf16.mxu1 %v8396_v34  ;;  %v8460_v34 = vld [vmem:[%s12255_s1 + $0x108] ss:$16 sps:$4 sm:$0xff]  }
  0x41   : > { %1120 = vmatpush1.bf16.msra.mxu1 %v8398_v35  ;;  %v8465_v35 = vld [vmem:[%s12255_s1 + $0x12c] ss:$16 sps:$4 sm:$0xff]  }
  0x42   : > { %1121 = vmatprep.subr.bf16.mxu1 %v8399_v36  ;;  %v8463_v36 = vld [vmem:[%s12255_s1 + $0x128] ss:$16 sps:$4 sm:$0xff]  }
  0x45   : > { %1122 = vmatpush1.bf16.msra.mxu1 %v8401_v37  ;;  %v8468_v37 = vld [vmem:[%s12255_s1 + $0x14c] ss:$16 sps:$4 sm:$0xff]  }
  0x46   : > { %1123 = vmatprep.subr.bf16.mxu1 %v8402_v38  ;;  %v8471_v38 = vld [vmem:[%s12255_s1 + $0x16c] ss:$16 sps:$4 sm:$0xff]  }
  0x49   : > { %1124 = vmatpush1.bf16.msra.mxu1 %v8404_v40  ;;  %v8474_v40 = vld [vmem:[%s12255_s1 + $0x18c] ss:$16 sps:$4 sm:$0xff]  }
  0x4a   : > { %1125 = vmatprep.subr.bf16.mxu1 %v8405_v41  ;;  %v8472_v41 = vld [vmem:[%s12255_s1 + $0x188] ss:$16 sps:$4 sm:$0xff]  }
  0x4d   : > { %1126 = vmatpush1.bf16.msra.mxu1 %v8407_v44  ;;  %v8480_v44 = vld [vmem:[%s12255_s1 + $0x1cc] ss:$16 sps:$4 sm:$0xff]  }
  0x4e   : > { %1168 = vmatprep.subr.bf16.mxu1 %v8412_v45  ;;  %v8478_v45 = vld [vmem:[%s12255_s1 + $0x1c8] ss:$16 sps:$4 sm:$0xff]  }
  0x50   : > { %1128 = vmatmul.mubr.bf16.vlgmr.msra.gmra.mrb[0].mxu1 %v9681_v15  ;;  %v8439_v15 = vld [vmem:[%s12255_s1 + $0x28] ss:$16 sps:$4 sm:$0xff]  }
  0x51   : > { %1169 = vmatpush1.bf16.msra.mxu1 %v8410_v49  ;;  %1137 = vmatprep.mubr.bf16.mxu1 %v9765_v51  ;;  %v8484_v49 = vld [vmem:[%s12255_s1 + $0x208] ss:$16 sps:$4 sm:$0xff]  }
  0x52   : > { %1170 = vmatprep.subr.bf16.mxu1 %v8415_v50  ;;  %v8489_v50 = vld [vmem:[%s12255_s1 + $0x22c] ss:$16 sps:$4 sm:$0xff]  }
  0x55   : > { %1171 = vmatpush1.bf16.msra.mxu1 %v8413_v54  ;;  %v8492_v54 = vld [vmem:[%s12255_s1 + $0x24c] ss:$16 sps:$4 sm:$0xff]  }
  0x56   : > { %1172 = vmatprep.subr.bf16.mxu1 %v8419_v55  ;;  %v8490_v55 = vld [vmem:[%s12255_s1 + $0x248] ss:$16 sps:$4 sm:$0xff]  }
  0x58   : > { %1138 = vmatmul.mubr.bf16.gmra.mrb[4].mxu1 %v9684_v16  ;;  %v8444_v16 = vld [vmem:[%s12255_s1 + $0x4c] ss:$16 sps:$4 sm:$0xff]  }
  0x59   : > { %1173 = vmatpush1.bf16.msra.mxu1 %v8417_v58  ;;  %1147 = vmatprep.mubr.bf16.mxu1 %v9784_v60  ;;  %v9443_v58 = vld [vmem:[%s9672_s16 + $0x8] sm:$0xff]  }
  0x5a   : > { %1174 = vmatprep.subr.bf16.mxu1 %v8422_v59  ;;  %v8496_v59 = vld [vmem:[%s12255_s1 + $0x288] ss:$16 sps:$4 sm:$0xff]  }
  0x5d   : > { %1175 = vmatpush1.bf16.msra.mxu1 %v8420_v61  ;;  %v8501_v61 = vld [vmem:[%s12255_s1 + $0x2ac] ss:$16 sps:$4 sm:$0xff]  }
  0x5e   : > { %1176 = vmatprep.subr.bf16.mxu1 %v8426_v62  ;;  %v8499_v62 = vld [vmem:[%s12255_s1 + $0x2a8] ss:$16 sps:$4 sm:$0xff]  }
  0x60   : > { %1148 = vmatmul.mubr.bf16.gmra.mrb[8].mxu1 %v9739_v39  ;;  %v8469_v39 = vld [vmem:[%s12255_s1 + $0x168] ss:$16 sps:$4 sm:$0xff]  }
  0x61   : > { %1177 = vmatpush1.bf16.msra.mxu1 %v8424_v0  ;;  %1157 = vmatprep.mubr.bf16.mxu1 %v9801_v3  ;;  %v8502_v0 = vld [vmem:[%s12255_s1 + $0x2c8] ss:$16 sps:$4 sm:$0xff]  }
  0x62   : > { %1178 = vmatprep.subr.bf16.mxu1 %v8429_v1  ;;  %v8507_v1 = vld [vmem:[%s12255_s1 + $0x2ec] ss:$16 sps:$4 sm:$0xff]  }
  0x65   : > { %1179 = vmatpush1.bf16.msra.mxu1 %v8427_v4  ;;  %v8505_v4 = vld [vmem:[%s12255_s1 + $0x2e8] ss:$16 sps:$4 sm:$0xff]  }
  0x66   : > { %1180 = vmatprep.subr.bf16.mxu1 %v8432_v5  ;;  %v9445_v5 = vld [vmem:[%s9672_s16 + $0x18] sm:$0x7f]   ;;  %s9452_s16 = scalar_lea.vmem %s9451_s24, 32 }
  0x67   : > { %p9454_p1 = scmp.lt.s32.totalorder %s9452_s16, %s9446_s29 }
  0x68   : > { %1158 = vmatmul.mubr.bf16.gmra.mrb[12].mxu1 %v9756_v48  ;;  %v8486_v48 = vld [vmem:[%s12255_s1 + $0x20c] ss:$16 sps:$4 sm:$0xff]  }
  0x69   : > { %1181 = vmatpush1.bf16.msra.mxu1 %v8430_v6  ;;  %1200 = vmatprep.mubr.bf16.mxu1 %v9510_v2  ;;  %p9455_p2 = por %p9454_p1, %p9453_p0 }
  0x6a   : > { %1182 = vmatprep.subr.bf16.mxu1 %v8435_v7 }
  0x6b   : > { %p9456_p3 = pnand %p9455_p2, %p9449_p13 }
  0x6d   : > { %1183 = vmatpush1.bf16.msra.mxu1 %v8433_v8 }
  0x6e   : > { %1241 = vmatprep.subr.bf16.mxu1 %v8438_v9 }
  0x70   : > { %1201 = vmatmul.mubr.bf16.vlgmr.msra.gmra.mrb[0].mxu1 %v9834_v14 }
  0x71   : > { %1242 = vmatpush1.bf16.msra.mxu1 %v8436_v12  ;;  %1210 = vmatprep.mubr.bf16.mxu1 %v9510_v2 }
  0x72   : > { %1243 = vmatprep.subr.bf16.mxu1 %v8441_v13 }
  0x75   : > { %1244 = vmatpush1.bf16.msra.mxu1 %v8439_v15 }
  0x76   : > { %1245 = vmatprep.subr.bf16.mxu1 %v8444_v16 }
  0x78   : > { %1211 = vmatmul.mubr.bf16.gmra.mrb[4].mxu1 %v9852_v20 }
  0x79   : > { %1246 = vmatpush1.bf16.msra.mxu1 %v8442_v18  ;;  %1220 = vmatprep.mubr.bf16.mxu1 %v9510_v2 }
  0x7a   : > { %1247 = vmatprep.subr.bf16.mxu1 %v8447_v19 }
  0x7d   : > { %1248 = vmatpush1.bf16.msra.mxu1 %v8445_v21 }
  0x7e   : > { %1249 = vmatprep.subr.bf16.mxu1 %v8450_v22 }
  0x80   : > { %1221 = vmatmul.mubr.bf16.gmra.mrb[8].mxu1 %v9873_v27 }
  0x81   : > { %1250 = vmatpush1.bf16.msra.mxu1 %v8448_v24  ;;  %1230 = vmatprep.mubr.bf16.mxu1 %v9510_v2 }
  0x82   : > { %1251 = vmatprep.subr.bf16.mxu1 %v8453_v25 }
  0x85   : > { %1252 = vmatpush1.bf16.msra.mxu1 %v8451_v28 }
  0x86   : > { %1253 = vmatprep.subr.bf16.mxu1 %v8456_v29 }
  0x88   : > { %1231 = vmatmul.mubr.bf16.gmra.mrb[12].mxu1 %v9863_v23 }
  0x89   : > { %1254 = vmatpush1.bf16.msra.mxu1 %v8454_v30  ;;  %1273 = vmatprep.mubr.bf16.mxu1 %v9699_v26  ;;  %v8466_v26 = vld [vmem:[%s12255_s1 + $0x148] ss:$16 sps:$4 sm:$0xff]  }
  0x8a   : > { %1255 = vmatprep.subr.bf16.mxu1 %v8459_v31 }
  0x8d   : > { %1256 = vmatpush1.bf16.msra.mxu1 %v8457_v32 }
  0x8e   : > { %1257 = vmatprep.subr.bf16.mxu1 %v8462_v33 }
  0x91   : > { %1258 = vmatpush1.bf16.msra.mxu1 %v8460_v34 }
  0x92   : > { %1259 = vmatprep.subr.bf16.mxu1 %v8465_v35 }
  0x95   : > { %1260 = vmatpush1.bf16.msra.mxu1 %v8463_v36 }
  0x96   : > { %1261 = vmatprep.subr.bf16.mxu1 %v8468_v37 }
  0x99   : > { %1262 = vmatpush1.bf16.msra.mxu1 %v8466_v26 }
  0x9a   : > { %1263 = vmatprep.subr.bf16.mxu1 %v8471_v38 }
  0x9d   : > { %1264 = vmatpush1.bf16.msra.mxu1 %v8469_v39 }
  0x9e   : > { %1265 = vmatprep.subr.bf16.mxu1 %v8474_v40 }
  0xa1   : > { %1266 = vmatpush1.bf16.msra.mxu1 %v8472_v41 }
  0xa2   : > { %1267 = vmatprep.subr.bf16.mxu1 %v8477_v42 }
  0xa5   : > { %1268 = vmatpush1.bf16.msra.mxu1 %v8475_v43 }
  0xa6   : > { %1269 = vmatprep.subr.bf16.mxu1 %v8480_v44 }
  0xa9   : > { %1270 = vmatpush1.bf16.msra.mxu1 %v8478_v45 }
  0xaa   : > { %1271 = vmatprep.subr.bf16.mxu1 %v8483_v46 }
  0xad   : > { %1272 = vmatpush1.bf16.msra.mxu1 %v8481_v47 }
  0xae   : > { %1314 = vmatprep.subr.bf16.mxu1 %v8486_v48 }
  0xb0   : > { %1274 = vmatmul.mubr.bf16.vlgmr.msra.gmra.mrb[16].mxu1 %v9442_v53 }
  0xb1   : > { %1315 = vmatpush1.bf16.msra.mxu1 %v8484_v49  ;;  %1283 = vmatprep.mubr.bf16.mxu1 %v9765_v51  ;;  %v8498_v51 = vld [vmem:[%s12255_s1 + $0x28c] ss:$16 sps:$4 sm:$0xff]  }
  0xb2   : > { %1316 = vmatprep.subr.bf16.mxu1 %v8489_v50 }
  0xb5   : > { %1317 = vmatpush1.bf16.msra.mxu1 %v8487_v52 }
  0xb6   : > { %1318 = vmatprep.subr.bf16.mxu1 %v8492_v54 }
  0xb8   : > { %1284 = vmatmul.mubr.bf16.gmra.mrb[20].mxu1 %v9443_v58 }
  0xb9   : > { %1319 = vmatpush1.bf16.msra.mxu1 %v8490_v55  ;;  %1293 = vmatprep.mubr.bf16.mxu1 %v9784_v60  ;;  %v8504_v60 = vld [vmem:[%s12255_s1 + $0x2cc] ss:$16 sps:$4 sm:$0xff]  }
  0xba   : > { %1320 = vmatprep.subr.bf16.mxu1 %v8495_v56 }
  0xbd   : > { %1321 = vmatpush1.bf16.msra.mxu1 %v8493_v57 }
  0xbe   : > { %1322 = vmatprep.subr.bf16.mxu1 %v8498_v51 }
  0xc0   : > { %1294 = vmatmul.mubr.bf16.gmra.mrb[24].mxu1 %v9444_v63  ;;  %v8517_v63 = vld [vmem:[%s12259_s5 + $0xc] ss:$16 sps:$4 sm:$0xff]  }
  0xc1   : > { %1323 = vmatpush1.bf16.msra.mxu1 %v8496_v59  ;;  %1303 = vmatprep.mubr.bf16.mxu1 %v9801_v3 }
  0xc2   : > { %1324 = vmatprep.subr.bf16.mxu1 %v8501_v61 }
  0xc5   : > { %1325 = vmatpush1.bf16.msra.mxu1 %v8499_v62  ;;  %v8514_v62 = vld [vmem:[%s12259_s5 + $0x4] ss:$16 sps:$4 sm:$0xff]  }
  0xc6   : > { %1326 = vmatprep.subr.bf16.mxu1 %v8504_v60 }
  0xc8   : > { %1304 = vmatmul.mubr.bf16.gmra.mrb[28].mxu1 %v9445_v5  ;;  %v8515_v5 = vld [vmem:[%s12259_s5 + $0x8] ss:$16 sps:$4 sm:$0xff]  }
  0xc9   : > { %1327 = vmatpush1.bf16.msra.mxu1 %v8502_v0  ;;  %1346 = vmatprep.mubr.bf16.mxu1 %v9510_v2  ;;  %v8508_v0 = vld [vmem:[%s12257_s3] sm:$0xff]  }
  0xca   : > { %1328 = vmatprep.subr.bf16.mxu1 %v8507_v1  ;;  %v8509_v1 = vld [vmem:[%s12258_s4] sm:$0xff]  }
  0xcd   : > { %1329 = vmatpush1.bf16.msra.mxu1 %v8505_v4  ;;  %v8512_v4 = vld [vmem:[%s12259_s5] ss:$16 sps:$4 sm:$0xff]  }
  0xd0   : > { %1347 = vmatmul.mubr.bf16.vlgmr.msra.gmra.mrb[16].mxu1 %v9834_v14 }
  0xd1   : > { %1356 = vmatprep.mubr.bf16.mxu1 %v9510_v2 }
  0xd8   : > { %1357 = vmatmul.mubr.bf16.gmra.mrb[20].mxu1 %v9852_v20 }
  0xd9   : > { %1366 = vmatprep.mubr.bf16.mxu1 %v9510_v2 }
  0xe0   : > { %1367 = vmatmul.mubr.bf16.gmra.mrb[24].mxu1 %v9873_v27 }
  0xe1   : > { %1376 = vmatprep.mubr.bf16.mxu1 %v9510_v2 }
  0xe8   : > { %1377 = vmatmul.mubr.bf16.gmra.mrb[28].mxu1 %v9863_v23 }
  0xe9   : > { %1544 = vmatprep.mubr.bf16.mxu1 %v9510_v2 }
 0x143   : > { %v1202_v3 = vpop.f32.mrb[0].mxu1 }
 0x144   : > { %v1204_v6 = vpop.f32.mrb[1].mxu1 }
 0x145   : > { %v1206_v7 = vpop.f32.mrb[2].mxu1 }
 0x146   : > { %v1208_v8 = vpop.f32.mrb[3].mxu1 }
 0x14b   : > { %v1212_v9 = vpop.f32.mrb[4].mxu1 }
 0x14c   : > { %v1214_v10 = vpop.f32.mrb[5].mxu1 }
 0x14d   : > { %v1216_v11 = vpop.f32.mrb[6].mxu1 }
 0x14e   : > { %v1218_v12 = vpop.f32.mrb[7].mxu1 }
 0x153   : > { %v1222_v13 = vpop.f32.mrb[8].mxu1 }
 0x154   : > { %v1224_v14 = vpop.f32.mrb[9].mxu1 }
 0x155   : > { %v1226_v15 = vpop.f32.mrb[10].mxu1 }
 0x156   : > { %v1228_v16 = vpop.f32.mrb[11].mxu1 }
 0x15b   : > { %v1232_v17 = vpop.f32.mrb[12].mxu1 }
 0x15c   : > { %v1234_v18 = vpop.f32.mrb[13].mxu1 }
 0x15d   : > { %v1236_v19 = vpop.f32.mrb[14].mxu1 }
 0x15e   : > { %v1238_v20 = vpop.f32.mrb[15].mxu1 }
 0x1a3   : > { %v1348_v21 = vpop.f32.mrb[16].mxu1 }
 0x1a4   : > { %v1387_v22 = vmax.f32 %v1202_v3, %v1348_v21  ;;  %v1350_v23 = vpop.f32.mrb[17].mxu1  ;;  %v8520_v3 = vld [vmem:[%s12259_s5 + $0x24] ss:$16 sps:$4 sm:$0xff]   ;;  %v8536_v21 = vld [vmem:[%s12259_s5 + $0x80] ss:$16 sps:$4 sm:$0xff]  }
 0x1a5   : > { %v1388_v24 = vmax.f32 %v1204_v6, %v1350_v23  ;;  %v1352_v25 = vpop.f32.mrb[18].mxu1  ;;  %v8523_v6 = vld [vmem:[%s12259_s5 + $0x2c] ss:$16 sps:$4 sm:$0xff]   ;;  %v8544_v23 = vld [vmem:[%s12259_s5 + $0xa4] ss:$16 sps:$4 sm:$0xff]  }
 0x1a6   : > { %v1389_v27 = vmax.f32 %v1206_v7, %v1352_v25  ;;  %v1354_v28 = vpop.f32.mrb[19].mxu1  ;;  %v8518_v7 = vld [vmem:[%s12259_s5 + $0x20] ss:$16 sps:$4 sm:$0xff]  }
 0x1a7   : > { %v1390_v29 = vmax.f32 %v1208_v8, %v1354_v28  ;;  %v8521_v8 = vld [vmem:[%s12259_s5 + $0x28] ss:$16 sps:$4 sm:$0xff]   ;;  %v8542_v25 = vld [vmem:[%s12259_s5 + $0xa0] ss:$16 sps:$4 sm:$0xff]   ;;  %v8550_v28 = vld [vmem:[%s12259_s5 + $0xc4] ss:$16 sps:$4 sm:$0xff]  }
 0x1a8   : > { %v1403_v30 = vpack.c.bf16 %v1389_v27, %v1387_v22  ;;  %v8539_v22 = vld [vmem:[%s12259_s5 + $0x88] ss:$16 sps:$4 sm:$0xff]  }
 0x1a9   : > { %v1404_v31 = vpack.c.bf16 %v1390_v29, %v1388_v24  ;;  %v8547_v24 = vld [vmem:[%s12259_s5 + $0xac] ss:$16 sps:$4 sm:$0xff]   ;;  %v8545_v27 = vld [vmem:[%s12259_s5 + $0xa8] ss:$16 sps:$4 sm:$0xff]  }
 0x1aa   : > { %v8553_v29 = vld [vmem:[%s12259_s5 + $0xcc] ss:$16 sps:$4 sm:$0xff]  }
 0x1ab   : > { %v1358_v32 = vpop.f32.mrb[20].mxu1  ;;  %1439 = vmatprep.subr.bf16.mxu0 %v1404_v31  ;;  %1512 = vmatprep.subr.bf16.mxu1 %v1404_v31  ;;  %v8551_v31 = vld [vmem:[%s12259_s5 + $0xc8] ss:$16 sps:$4 sm:$0xff]  }
 0x1ac   : > { %v1391_v33 = vmax.f32 %v1212_v9, %v1358_v32  ;;  %v1360_v34 = vpop.f32.mrb[21].mxu1  ;;  %1440 = vmatpush1.bf16.msra.mxu0 %v1403_v30  ;;  %1513 = vmatpush1.bf16.msra.mxu1 %v1403_v30  ;;  %v8526_v9 = vld [vmem:[%s12259_s5 + $0x44] ss:$16 sps:$4 sm:$0xff]   ;;  %v8548_v30 = vld [vmem:[%s12259_s5 + $0xc0] ss:$16 sps:$4 sm:$0xff]  }
 0x1ad   : > { %v1392_v35 = vmax.f32 %v1214_v10, %v1360_v34  ;;  %v1362_v36 = vpop.f32.mrb[22].mxu1  ;;  %v8529_v10 = vld [vmem:[%s12259_s5 + $0x4c] ss:$16 sps:$4 sm:$0xff]   ;;  %v8556_v32 = vld [vmem:[%s12259_s5 + $0xe4] ss:$16 sps:$4 sm:$0xff]  }
 0x1ae   : > { %v1393_v37 = vmax.f32 %v1216_v11, %v1362_v36  ;;  %v1364_v26 = vpop.f32.mrb[23].mxu1  ;;  %v8510_v11 = vld [vmem:[%s12257_s3 + $0x8] sm:$0x7f]   ;;  %v8554_v34 = vld [vmem:[%s12259_s5 + $0xe0] ss:$16 sps:$4 sm:$0xff]  }
 0x1af   : > { %v1394_v38 = vmax.f32 %v1218_v12, %v1364_v26  ;;  %v8511_v12 = vld [vmem:[%s12258_s4 + $0x8] sm:$0x7f]   ;;  %v8562_v36 = vld [vmem:[%s12259_s5 + $0x104] ss:$16 sps:$4 sm:$0xff]   ;;  %v8560_v26 = vld [vmem:[%s12259_s5 + $0x100] ss:$16 sps:$4 sm:$0xff]  }
 0x1b0   : > { %v1405_v39 = vpack.c.bf16 %v1393_v37, %v1391_v33  ;;  %v8559_v33 = vld [vmem:[%s12259_s5 + $0xec] ss:$16 sps:$4 sm:$0xff]  }
 0x1b1   : > { %v1406_v40 = vpack.c.bf16 %v1394_v38, %v1392_v35  ;;  %v8557_v35 = vld [vmem:[%s12259_s5 + $0xe8] ss:$16 sps:$4 sm:$0xff]   ;;  %v8565_v37 = vld [vmem:[%s12259_s5 + $0x10c] ss:$16 sps:$4 sm:$0xff]  }
 0x1b2   : > { %v8563_v38 = vld [vmem:[%s12259_s5 + $0x108] ss:$16 sps:$4 sm:$0xff]  }
 0x1b3   : > { %v1368_v41 = vpop.f32.mrb[24].mxu1  ;;  %1441 = vmatprep.subr.bf16.mxu0 %v1406_v40  ;;  %1514 = vmatprep.subr.bf16.mxu1 %v1406_v40  ;;  %v8571_v40 = vld [vmem:[%s12259_s5 + $0x12c] ss:$16 sps:$4 sm:$0xff]  }
 0x1b4   : > { %v1395_v42 = vmax.f32 %v1222_v13, %v1368_v41  ;;  %v1370_v43 = vpop.f32.mrb[25].mxu1  ;;  %1442 = vmatpush1.bf16.msra.mxu0 %v1405_v39  ;;  %1515 = vmatpush1.bf16.msra.mxu1 %v1405_v39  ;;  %v8524_v13 = vld [vmem:[%s12259_s5 + $0x40] ss:$16 sps:$4 sm:$0xff]   ;;  %v8568_v39 = vld [vmem:[%s12259_s5 + $0x124] ss:$16 sps:$4 sm:$0xff]  }
 0x1b5   : > { %v1396_v44 = vmax.f32 %v1224_v14, %v1370_v43  ;;  %v1372_v45 = vpop.f32.mrb[26].mxu1  ;;  %v8527_v14 = vld [vmem:[%s12259_s5 + $0x48] ss:$16 sps:$4 sm:$0xff]   ;;  %v8566_v41 = vld [vmem:[%s12259_s5 + $0x120] ss:$16 sps:$4 sm:$0xff]  }
 0x1b6   : > { %v1397_v46 = vmax.f32 %v1226_v15, %v1372_v45  ;;  %v1374_v47 = vpop.f32.mrb[27].mxu1  ;;  %v8532_v15 = vld [vmem:[%s12259_s5 + $0x64] ss:$16 sps:$4 sm:$0xff]   ;;  %v8572_v45 = vld [vmem:[%s12259_s5 + $0x140] ss:$16 sps:$4 sm:$0xff]  }
 0x1b7   : > { %v1398_v48 = vmax.f32 %v1228_v16, %v1374_v47  ;;  %v8535_v16 = vld [vmem:[%s12259_s5 + $0x6c] ss:$16 sps:$4 sm:$0xff]   ;;  %v8574_v43 = vld [vmem:[%s12259_s5 + $0x144] ss:$16 sps:$4 sm:$0xff]  }
 0x1b8   : > { %v1407_v49 = vpack.c.bf16 %v1397_v46, %v1395_v42  ;;  %v8569_v42 = vld [vmem:[%s12259_s5 + $0x128] ss:$16 sps:$4 sm:$0xff]   ;;  %v8580_v47 = vld [vmem:[%s12259_s5 + $0x164] ss:$16 sps:$4 sm:$0xff]  }
 0x1b9   : > { %v1408_v50 = vpack.c.bf16 %v1398_v48, %v1396_v44  ;;  %v8577_v44 = vld [vmem:[%s12259_s5 + $0x14c] ss:$16 sps:$4 sm:$0xff]   ;;  %v8575_v46 = vld [vmem:[%s12259_s5 + $0x148] ss:$16 sps:$4 sm:$0xff]  }
 0x1ba   : > { %v8583_v48 = vld [vmem:[%s12259_s5 + $0x16c] ss:$16 sps:$4 sm:$0xff]  }
 0x1bb   : > { %v1378_v52 = vpop.f32.mrb[28].mxu1  ;;  %1443 = vmatprep.subr.bf16.mxu0 %v1408_v50  ;;  %1516 = vmatprep.subr.bf16.mxu1 %v1408_v50  ;;  %v8581_v50 = vld [vmem:[%s12259_s5 + $0x168] ss:$16 sps:$4 sm:$0xff]  }
 0x1bc   : > { %v1399_v53 = vmax.f32 %v1232_v17, %v1378_v52  ;;  %v1380_v54 = vpop.f32.mrb[29].mxu1  ;;  %1444 = vmatpush1.bf16.msra.mxu0 %v1407_v49  ;;  %1517 = vmatpush1.bf16.msra.mxu1 %v1407_v49  ;;  %v8530_v17 = vld [vmem:[%s12259_s5 + $0x60] ss:$16 sps:$4 sm:$0xff]   ;;  %v8586_v52 = vld [vmem:[%s12259_s5 + $0x184] ss:$16 sps:$4 sm:$0xff]  }
 0x1bd   : > { %v1400_v55 = vmax.f32 %v1234_v18, %v1380_v54  ;;  %v1382_v56 = vpop.f32.mrb[30].mxu1  ;;  %v8533_v18 = vld [vmem:[%s12259_s5 + $0x68] ss:$16 sps:$4 sm:$0xff]   ;;  %v8578_v49 = vld [vmem:[%s12259_s5 + $0x160] ss:$16 sps:$4 sm:$0xff]  }
 0x1be   : > { %v1401_v57 = vmax.f32 %v1236_v19, %v1382_v56  ;;  %v1384_v58 = vpop.f32.mrb[31].mxu1  ;;  %v8538_v19 = vld [vmem:[%s12259_s5 + $0x84] ss:$16 sps:$4 sm:$0xff]   ;;  %v8584_v54 = vld [vmem:[%s12259_s5 + $0x180] ss:$16 sps:$4 sm:$0xff]  }
 0x1bf   : > { %v1402_v51 = vmax.f32 %v1238_v20, %v1384_v58  ;;  %v8541_v20 = vld [vmem:[%s12259_s5 + $0x8c] ss:$16 sps:$4 sm:$0xff]   ;;  %v8592_v56 = vld [vmem:[%s12259_s5 + $0x1a4] ss:$16 sps:$4 sm:$0xff]   ;;  %v8590_v58 = vld [vmem:[%s12259_s5 + $0x1a0] ss:$16 sps:$4 sm:$0xff]  }
 0x1c0   : > { %v1409_v59 = vpack.c.bf16 %v1401_v57, %v1399_v53  ;;  %v8589_v53 = vld [vmem:[%s12259_s5 + $0x18c] ss:$16 sps:$4 sm:$0xff]  }
 0x1c1   : > { %v1410_v61 = vpack.c.bf16 %v1402_v51, %v1400_v55  ;;  %v8587_v55 = vld [vmem:[%s12259_s5 + $0x188] ss:$16 sps:$4 sm:$0xff]   ;;  %v8595_v57 = vld [vmem:[%s12259_s5 + $0x1ac] ss:$16 sps:$4 sm:$0xff]  }
 0x1c2   : > { %v1434_v60 = vsel %vm1432_vm2, %v1409_v59, 0  ;;  %v8593_v51 = vld [vmem:[%s12259_s5 + $0x1a8] ss:$16 sps:$4 sm:$0xff]   ;;  %v8598_v59 = vld [vmem:[%s12259_s5 + $0x1c4] ss:$16 sps:$4 sm:$0xff]  }
 0x1c3   : > { %7370 = vmatprep.subr.msk.bf16.mxu0 %vm1432_vm2, %v1410_v61  ;;  %7375 = vmatprep.subr.msk.bf16.mxu1 %vm1432_vm2, %v1410_v61  ;;  %v8601_v61 = vld [vmem:[%s12259_s5 + $0x1cc] ss:$16 sps:$4 sm:$0xff]  }
 0x1c4   : > { %1446 = vmatpush1.bf16.msra.mxu0 %v1434_v60  ;;  %1519 = vmatpush1.bf16.msra.mxu1 %v1434_v60  ;;  %v8604_v60 = vld [vmem:[%s12259_s5 + $0x1e4] ss:$16 sps:$4 sm:$0xff]  }
 0x1c5   : > { %3603 = vmatprep.subr.bf16.mxu0 %v8514_v62  ;;  %3868 = vmatprep.subr.bf16.mxu1 %v8517_v63  ;;  %v8596_v62 = vld [vmem:[%s12259_s5 + $0x1c0] ss:$16 sps:$4 sm:$0xff]   ;;  %v8599_v63 = vld [vmem:[%s12259_s5 + $0x1c8] ss:$16 sps:$4 sm:$0xff]  }
 0x1c7   : > { %7371 = vmatmul.mubr.msk.bf16.vlgmr.msra.gmra.mrb[0].mxu0 %vm1425_vm3, %v8508_v0  ;;  %7376 = vmatmul.mubr.msk.bf16.vlgmr.msra.gmra.mrb[32].mxu1 %vm1425_vm3, %v8509_v1  ;;  %v8607_v0 = vld [vmem:[%s12259_s5 + $0x1ec] ss:$16 sps:$4 sm:$0xff]   ;;  %v8602_v1 = vld [vmem:[%s12259_s5 + $0x1e0] ss:$16 sps:$4 sm:$0xff]  }
 0x1c8   : > { %1481 = vmatprep.mubr.bf16.mxu0 %v9510_v2  ;;  %1554 = vmatprep.mubr.bf16.mxu1 %v9510_v2 }
 0x1c9   : > { %3604 = vmatpush1.bf16.msra.mxu0 %v8512_v4  ;;  %3869 = vmatpush1.bf16.msra.mxu1 %v8515_v5  ;;  %v8605_v4 = vld [vmem:[%s12259_s5 + $0x1e8] ss:$16 sps:$4 sm:$0xff]   ;;  %v8610_v5 = vld [vmem:[%s12259_s5 + $0x204] ss:$16 sps:$4 sm:$0xff]  }
 0x1ca   : > { %3605 = vmatprep.subr.bf16.mxu0 %v8520_v3  ;;  %3870 = vmatprep.subr.bf16.mxu1 %v8523_v6  ;;  %v8613_v3 = vld [vmem:[%s12259_s5 + $0x20c] ss:$16 sps:$4 sm:$0xff]   ;;  %v1575_v6 = vlaneseq }
 0x1cd   : > { %3606 = vmatpush1.bf16.msra.mxu0 %v8518_v7  ;;  %3871 = vmatpush1.bf16.msra.mxu1 %v8521_v8  ;;  %v1576_v7 = vshrl.u32 %v1575_v6, 7 }
 0x1ce   : > { %3607 = vmatprep.subr.bf16.mxu0 %v8526_v9  ;;  %3872 = vmatprep.subr.bf16.mxu1 %v8529_v10  ;;  %v1573_v9 = vld [vmem:[%s12256_s2] sm:$0x3] }
 0x1cf   : > { %7372 = vmatmul.mubr.msk.bf16.gmra.mrb[4].mxu0 %vm1425_vm3, %v8510_v11  ;;  %7377 = vmatmul.mubr.msk.bf16.gmra.mrb[36].mxu1 %vm1425_vm3, %v8511_v12  ;;  %v10225_v8 = vsub.s32 0, %v1576_v7  ;;  %v10230_v10 = vsub.s32 1, %v1576_v7 }
 0x1d1   : > { %3608 = vmatpush1.bf16.msra.mxu0 %v8524_v13  ;;  %3873 = vmatpush1.bf16.msra.mxu1 %v8527_v14  ;;  %v1578_v11 = vrot.slane %v1573_v9, %v10225_v8  ;;  %v1582_v14 = vrot.slane %v1573_v9, %v10230_v10 }
 0x1d2   : > { %3609 = vmatprep.subr.bf16.mxu0 %v8532_v15  ;;  %3874 = vmatprep.subr.bf16.mxu1 %v8535_v16 }
 0x1d5   : > { %3610 = vmatpush1.bf16.msra.mxu0 %v8530_v17  ;;  %3875 = vmatpush1.bf16.msra.mxu1 %v8533_v18 }
 0x1d6   : > { %3611 = vmatprep.subr.bf16.mxu0 %v8538_v19  ;;  %3876 = vmatprep.subr.bf16.mxu1 %v8541_v20 }
 0x1d9   : > { %3612 = vmatpush1.bf16.msra.mxu0 %v8536_v21  ;;  %3877 = vmatpush1.bf16.msra.mxu1 %v8539_v22 }
 0x1da   : > { %3613 = vmatprep.subr.bf16.mxu0 %v8544_v23  ;;  %3878 = vmatprep.subr.bf16.mxu1 %v8547_v24 }
 0x1dd   : > { %3614 = vmatpush1.bf16.msra.mxu0 %v8542_v25  ;;  %3879 = vmatpush1.bf16.msra.mxu1 %v8545_v27 }
 0x1de   : > { %3615 = vmatprep.subr.bf16.mxu0 %v8550_v28  ;;  %3880 = vmatprep.subr.bf16.mxu1 %v8553_v29 }
 0x1e1   : > { %3616 = vmatpush1.bf16.msra.mxu0 %v8548_v30  ;;  %3881 = vmatpush1.bf16.msra.mxu1 %v8551_v31 }
 0x1e2   : > { %3617 = vmatprep.subr.bf16.mxu0 %v8556_v32  ;;  %3882 = vmatprep.subr.bf16.mxu1 %v8559_v33 }
 0x1e5   : > { %3618 = vmatpush1.bf16.msra.mxu0 %v8554_v34  ;;  %3883 = vmatpush1.bf16.msra.mxu1 %v8557_v35 }
 0x1e6   : > { %3619 = vmatprep.subr.bf16.mxu0 %v8562_v36  ;;  %3884 = vmatprep.subr.bf16.mxu1 %v8565_v37 }
 0x1e9   : > { %3620 = vmatpush1.bf16.msra.mxu0 %v8560_v26  ;;  %3885 = vmatpush1.bf16.msra.mxu1 %v8563_v38 }
 0x1ea   : > { %3621 = vmatprep.subr.bf16.mxu0 %v8568_v39  ;;  %3886 = vmatprep.subr.bf16.mxu1 %v8571_v40  ;;  %v8608_v39 = vld [vmem:[%s12259_s5 + $0x200] ss:$16 sps:$4 sm:$0xff]  }
 0x1ed   : > { %3622 = vmatpush1.bf16.msra.mxu0 %v8566_v41  ;;  %3887 = vmatpush1.bf16.msra.mxu1 %v8569_v42 }
 0x1ee   : > { %3623 = vmatprep.subr.bf16.mxu0 %v8574_v43  ;;  %3888 = vmatprep.subr.bf16.mxu1 %v8577_v44  ;;  %v8611_v44 = vld [vmem:[%s12259_s5 + $0x208] ss:$16 sps:$4 sm:$0xff]  }
 0x1f1   : > { %3624 = vmatpush1.bf16.msra.mxu0 %v8572_v45  ;;  %3889 = vmatpush1.bf16.msra.mxu1 %v8575_v46  ;;  %v8616_v45 = vld [vmem:[%s12259_s5 + $0x224] ss:$16 sps:$4 sm:$0xff]  }
 0x1f2   : > { %3625 = vmatprep.subr.bf16.mxu0 %v8580_v47  ;;  %3890 = vmatprep.subr.bf16.mxu1 %v8583_v48 }
 0x1f5   : > { %3626 = vmatpush1.bf16.msra.mxu0 %v8578_v49  ;;  %3891 = vmatpush1.bf16.msra.mxu1 %v8581_v50  ;;  %v8619_v50 = vld [vmem:[%s12259_s5 + $0x22c] ss:$16 sps:$4 sm:$0xff]  }
 0x1f6   : > { %3627 = vmatprep.subr.bf16.mxu0 %v8586_v52  ;;  %3892 = vmatprep.subr.bf16.mxu1 %v8589_v53 }
 0x1f9   : > { %3628 = vmatpush1.bf16.msra.mxu0 %v8584_v54  ;;  %3893 = vmatpush1.bf16.msra.mxu1 %v8587_v55 }
 0x1fa   : > { %3629 = vmatprep.subr.bf16.mxu0 %v8592_v56  ;;  %3894 = vmatprep.subr.bf16.mxu1 %v8595_v57 }
 0x1fd   : > { %3630 = vmatpush1.bf16.msra.mxu0 %v8590_v58  ;;  %3895 = vmatpush1.bf16.msra.mxu1 %v8593_v51  ;;  %v8614_v51 = vld [vmem:[%s12259_s5 + $0x220] ss:$16 sps:$4 sm:$0xff]  }
 0x1fe   : > { %3631 = vmatprep.subr.bf16.mxu0 %v8598_v59  ;;  %3896 = vmatprep.subr.bf16.mxu1 %v8601_v61 }
 0x201   : > { %3632 = vmatpush1.bf16.msra.mxu0 %v8596_v62  ;;  %3897 = vmatpush1.bf16.msra.mxu1 %v8599_v63 }
 0x202   : > { %3633 = vmatprep.subr.bf16.mxu0 %v8604_v60  ;;  %3898 = vmatprep.subr.bf16.mxu1 %v8607_v0  ;;  %v8617_v60 = vld [vmem:[%s12259_s5 + $0x228] ss:$16 sps:$4 sm:$0xff]   ;;  %v8622_v0 = vld [vmem:[%s12259_s5 + $0x244] ss:$16 sps:$4 sm:$0xff]  }
 0x205   : > { %3634 = vmatpush1.bf16.msra.mxu0 %v8602_v1  ;;  %3899 = vmatpush1.bf16.msra.mxu1 %v8605_v4 }
 0x206   : > { %3656 = vmatprep.subr.bf16.mxu0 %v8610_v5  ;;  %3921 = vmatprep.subr.bf16.mxu1 %v8613_v3  ;;  %v8625_v5 = vld [vmem:[%s12259_s5 + $0x24c] ss:$16 sps:$4 sm:$0xff]  }
 0x29a   : > { %v1473_v12 = vpop.f32.mrb[0].mxu0  ;;  %v1546_v13 = vpop.f32.mrb[32].mxu1 }
 0x29b   : > { %v1565_v15 = vmax.f32 %v1473_v12, %v1546_v13  ;;  %v1475_v16 = vpop.f32.mrb[1].mxu0  ;;  %v1548_v17 = vpop.f32.mrb[33].mxu1  ;;  %v8620_v13 = vld [vmem:[%s12259_s5 + $0x240] ss:$16 sps:$4 sm:$0xff]  }
 0x29c   : > { %v1566_v18 = vmax.f32 %v1475_v16, %v1548_v17  ;;  %v1477_v19 = vpop.f32.mrb[2].mxu0  ;;  %v1550_v20 = vpop.f32.mrb[34].mxu1 }
 0x29d   : > { %v1585_v21 = vadd.f32 %v1578_v11, %v1565_v15  ;;  %v1567_v22 = vmax.f32 %v1477_v19, %v1550_v20  ;;  %v1479_v23 = vpop.f32.mrb[3].mxu0  ;;  %v1552_v24 = vpop.f32.mrb[35].mxu1  ;;  %v8628_v19 = vld [vmem:[%s12259_s5 + $0x264] ss:$16 sps:$4 sm:$0xff]  }
 0x29e   : > { %v1586_v25 = vadd.f32 %v1582_v14, %v1566_v18  ;;  %v1568_v27 = vmax.f32 %v1479_v23, %v1552_v24  ;;  %v8623_v18 = vld [vmem:[%s12259_s5 + $0x248] ss:$16 sps:$4 sm:$0xff]   ;;  %v8631_v23 = vld [vmem:[%s12259_s5 + $0x26c] ss:$16 sps:$4 sm:$0xff]  }
 0x29f   : > { %v1587_v28 = vadd.f32 %v1578_v11, %v1567_v22  ;;  %v1593_v30 = vmax.f32 %v1585_v21, 0.0 }
 0x2a0   : > { %v1588_v29 = vadd.f32 %v1582_v14, %v1568_v27  ;;  %v1594_v32 = vmax.f32 %v1586_v25, 0.0 }
 0x2a1   : > { %v1595_v31 = vmax.f32 %v1587_v28, 0.0 }
 0x2a2   : > { %v1596_v33 = vmax.f32 %v1588_v29, 0.0  ;;  %v1483_v34 = vpop.f32.mrb[4].mxu0  ;;  %v1556_v35 = vpop.f32.mrb[36].mxu1 }
 0x2a3   : > { %v10234_v36 = vpack.c.bf16 %v1595_v31, %v1593_v30  ;;  %v1569_v37 = vmax.f32 %v1483_v34, %v1556_v35  ;;  %v1485_v26 = vpop.f32.mrb[5].mxu0  ;;  %v1558_v38 = vpop.f32.mrb[37].mxu1 }
 0x2a4   : > { %v10239_v40 = vpack.c.bf16 %v1596_v33, %v1594_v32  ;;  %v1570_v41 = vmax.f32 %v1485_v26, %v1558_v38  ;;  %v1487_v42 = vpop.f32.mrb[6].mxu0  ;;  %v1560_v43 = vpop.f32.mrb[38].mxu1  ;;  %v8626_v26 = vld [vmem:[%s12259_s5 + $0x260] ss:$16 sps:$4 sm:$0xff]   ;;  %v8629_v38 = vld [vmem:[%s12259_s5 + $0x268] ss:$16 sps:$4 sm:$0xff]  }
 0x2a5   : > { %v1589_v46 = vadd.f32 %v1578_v11, %v1569_v37  ;;  %v1571_v47 = vmax.f32 %v1487_v42, %v1560_v43  ;;  %v1489_v48 = vpop.f32.mrb[7].mxu0  ;;  %v1562_v49 = vpop.f32.mrb[39].mxu1  ;;  %v1608_v52 = vshll.u32 %v10234_v36, 16  ;;  %v1606_v59 = vshrl.u32 %v10234_v36, 16  ;;  %v8634_v43 = vld [vmem:[%s12259_s5 + $0x284] ss:$16 sps:$4 sm:$0xff]  }
 0x2a6   : > { %v1590_v53 = vadd.f32 %v1582_v14, %v1570_v41  ;;  %v1572_v54 = vmax.f32 %v1489_v48, %v1562_v49  ;;  %3635 = vmatprep.mubr.bf16.mxu0 %v10239_v40  ;;  %3900 = vmatprep.mubr.bf16.mxu1 %v10239_v40  ;;  %v1618_v55 = vshrl.u32 %v10239_v40, 16  ;;  %v1620_v56 = vshll.u32 %v10239_v40, 16 }
 0x2a7   : > { %v1597_v57 = vmax.f32 %v1589_v46, 0.0  ;;  %v1591_v58 = vadd.f32 %v1578_v11, %v1571_v47  ;;  %3636 = vmatmul.mubr.bf16.vlgmr.msra.gmra.mrb[8].mxu0 %v10234_v36  ;;  %3901 = vmatmul.mubr.bf16.vlgmr.msra.gmra.mrb[40].mxu1 %v10234_v36  ;;  %v1610_v61 = vrot.slane %v1608_v52, 1  ;;  %v1646_v7 = vrot.slane %v10239_v40, 1 }
 0x2a8   : > { %v1598_v62 = vmax.f32 %v1590_v53, 0.0  ;;  %v1592_v63 = vadd.f32 %v1582_v14, %v1572_v54  ;;  %3657 = vmatpush1.bf16.msra.mxu0 %v8608_v39  ;;  %3922 = vmatpush1.bf16.msra.mxu1 %v8611_v44  ;;  %v1622_v1 = vrot.slane %v1620_v56, 1  ;;  %v10270_v3 = vrot.slane %v1618_v55, 1  ;;  %v8637_v44 = vld [vmem:[%s12259_s5 + $0x28c] ss:$16 sps:$4 sm:$0xff]  }
 0x2a9   : > { %v1599_v4 = vmax.f32 %v1591_v58, 0.0  ;;  %3658 = vmatprep.subr.bf16.mxu0 %v8616_v45  ;;  %3923 = vmatprep.subr.bf16.mxu1 %v8619_v50  ;;  %v1643_v9 = vrot.slane %v10234_v36, 1  ;;  %v10274_v11 = vrot.slane %v1620_v56, 2  ;;  %v1611_v14 = vor.u32 %v1610_v61, %v1606_v59  ;;  %v8632_v54 = vld [vmem:[%s12259_s5 + $0x280] ss:$16 sps:$4 sm:$0xff]  }
 0x2aa   : > { %v1600_v6 = vmax.f32 %v1592_v63, 0.0  ;;  %v1654_v15 = vrot.slane %v1606_v59, 1  ;;  %v1655_v16 = vrot.slane %v1608_v52, 2  ;;  %v1623_v20 = vor.u32 %v1622_v1, %v1618_v55  ;;  %v8635_v55 = vld [vmem:[%s12259_s5 + $0x288] ss:$16 sps:$4 sm:$0xff]  }
 0x2ab   : > { %v10276_v12 = vpack.c.bf16 %v1599_v4, %v1597_v57  ;;  %v1663_v21 = vor.u32 %v10274_v11, %v10270_v3  ;;  %v1676_v22 = vrot.slane %v10239_v40, 2  ;;  %v1673_v52 = vrot.slane %v10234_v36, 2  ;;  %v8640_v56 = vld [vmem:[%s12259_s5 + $0x2a4] ss:$16 sps:$4 sm:$0xff]   ;;  %v8643_v36 = vld [vmem:[%s12259_s5 + $0x2ac] ss:$16 sps:$4 sm:$0xff]  }
 0x2ac   : > { %v10281_v17 = vpack.c.bf16 %v1600_v6, %v1598_v62  ;;  %3659 = vmatpush1.bf16.msra.mxu0 %v8614_v51  ;;  %3924 = vmatpush1.bf16.msra.mxu1 %v8617_v60  ;;  %v1656_v28 = vor.u32 %v1655_v16, %v1654_v15  ;;  %v8638_v51 = vld [vmem:[%s12259_s5 + $0x2a0] ss:$16 sps:$4 sm:$0xff]   ;;  %v8641_v59 = vld [vmem:[%s12259_s5 + $0x2a8] ss:$16 sps:$4 sm:$0xff]   ;;  %v8646_v61 = vld [vmem:[%s12259_s5 + $0x2c4] ss:$16 sps:$4 sm:$0xff]  }
 0x2ad   : > { %3660 = vmatprep.subr.bf16.mxu0 %v8622_v0  ;;  %3925 = vmatprep.subr.bf16.mxu1 %v8625_v5  ;;  %v1613_v24 = vshll.u32 %v10276_v12, 16  ;;  %v1629_v25 = vshrl.u32 %v10276_v12, 16  ;;  %v10298_v27 = vrot.slane %v10276_v12, 1  ;;  %v10360_v53 = vrot.slane %v10276_v12, 2  ;;  %v8649_v62 = vld [vmem:[%s12259_s5 + $0x2cc] ss:$16 sps:$4 sm:$0xff]  }
 0x2ae   : > { %3645 = vmatprep.mubr.bf16.mxu0 %v10281_v17  ;;  %3910 = vmatprep.mubr.bf16.mxu1 %v10281_v17  ;;  %v1625_v29 = vshll.u32 %v10281_v17, 16  ;;  %v1632_v30 = vshrl.u32 %v10281_v17, 16  ;;  %v10305_v31 = vrot.slane %v10281_v17, 1  ;;  %v10308_v32 = vrot.slane %v10281_v17, 2  ;;  %v8644_v63 = vld [vmem:[%s12259_s5 + $0x2c0] ss:$16 sps:$4 sm:$0xff]  }
 0x2af   : > { %3646 = vmatmul.mubr.bf16.gmra.mrb[12].mxu0 %v10276_v12  ;;  %3911 = vmatmul.mubr.bf16.gmra.mrb[44].mxu1 %v10276_v12  ;;  %v10312_v33 = vrot.slane %v1613_v24, 1  ;;  %v1657_v34 = vrot.slane %v1629_v25, 1  ;;  %v1658_v35 = vrot.slane %v1613_v24, 2  ;;  %v10318_v37 = vsel %vm507_vm1, %v1643_v9, %v10298_v27  ;;  %v8647_v60 = vld [vmem:[%s12259_s5 + $0x2c8] ss:$16 sps:$4 sm:$0xff]  }
 0x2b0   : > { %3661 = vmatpush1.bf16.msra.mxu0 %v8620_v13  ;;  %3926 = vmatpush1.bf16.msra.mxu1 %v8623_v18  ;;  %v10326_v39 = vrot.slane %v1625_v29, 1  ;;  %v1664_v40 = vrot.slane %v1632_v30, 1  ;;  %v10332_v41 = vsel %vm507_vm1, %v1646_v7, %v10305_v31  ;;  %v10336_v42 = vsel %vm1432_vm2, %v1676_v22, %v10308_v32  ;;  %v8652_v0 = vld [vmem:[%s12259_s5 + $0x2e4] ss:$16 sps:$4 sm:$0xff]   ;;  %v8655_v1 = vld [vmem:[%s12259_s5 + $0x2ec] ss:$16 sps:$4 sm:$0xff]  }
 0x2b1   : > { %3662 = vmatprep.subr.bf16.mxu0 %v8628_v19  ;;  %3927 = vmatprep.subr.bf16.mxu1 %v8631_v23  ;;  %v10346_v45 = vsel %vm471_vm0, %v1611_v14, %v10312_v33  ;;  %v10348_v46 = vor.u32 %v1658_v35, %v1657_v34  ;;  %v1665_v47 = vrot.slane %v1625_v29, 2  ;;  %v10380_v58 = vsel %vm1432_vm2, %v1673_v52, %v10360_v53  ;;  %v8650_v4 = vld [vmem:[%s12259_s5 + $0x2e0] ss:$16 sps:$4 sm:$0xff]   ;;  %v8653_v5 = vld [vmem:[%s12259_s5 + $0x2e8] ss:$16 sps:$4 sm:$0xff]  }
 0x2b2   : > { %v1628_v48 = vsel %vm471_vm0, %v1623_v20, %v10326_v39  ;;  %v8658_v3 = vld [vmem:[%s12259_s5 + $0x304] ss:$16 sps:$4 sm:$0xff]   ;;  %v8661_v6 = vld [vmem:[%s12259_s5 + $0x30c] ss:$16 sps:$4 sm:$0xff]   ;;  %v8656_v7 = vld [vmem:[%s12259_s5 + $0x300] ss:$16 sps:$4 sm:$0xff]  }
 0x2b3   : > { %3688 = vmatprep.mubr.bf16.mxu0 %v1628_v48  ;;  %3953 = vmatprep.mubr.bf16.mxu1 %v1628_v48  ;;  %v10352_v49 = vor.u32 %v1665_v47, %v1664_v40  ;;  %v10356_v50 = vsel %vm1653_vm4, %v1656_v28, %v10348_v46  ;;  %v8659_v9 = vld [vmem:[%s12259_s5 + $0x308] ss:$16 sps:$4 sm:$0xff]   ;;  %v8664_v11 = vld [vmem:[%s12259_s5 + $0x324] ss:$16 sps:$4 sm:$0xff]   ;;  %v8667_v13 = vld [vmem:[%s12259_s5 + $0x32c] ss:$16 sps:$4 sm:$0xff]  }
 0x2b4   : > { %3663 = vmatpush1.bf16.msra.mxu0 %v8626_v26  ;;  %3928 = vmatpush1.bf16.msra.mxu1 %v8629_v38  ;;  %v8662_v14 = vld [vmem:[%s12259_s5 + $0x320] ss:$16 sps:$4 sm:$0xff]   ;;  %v8665_v15 = vld [vmem:[%s12259_s5 + $0x328] ss:$16 sps:$4 sm:$0xff]   ;;  %v8670_v16 = vld [vmem:[%s12259_s5 + $0x344] ss:$16 sps:$4 sm:$0xff]  }
 0x2b5   : > { %3664 = vmatprep.subr.bf16.mxu0 %v8634_v43  ;;  %3929 = vmatprep.subr.bf16.mxu1 %v8637_v44  ;;  %v10376_v57 = vsel %vm1653_vm4, %v1663_v21, %v10352_v49  ;;  %v8673_v18 = vld [vmem:[%s12259_s5 + $0x34c] ss:$16 sps:$4 sm:$0xff]   ;;  %v8668_v19 = vld [vmem:[%s12259_s5 + $0x340] ss:$16 sps:$4 sm:$0xff]   ;;  %v8671_v20 = vld [vmem:[%s12259_s5 + $0x348] ss:$16 sps:$4 sm:$0xff]  }
 0x2b6   : > { %v8676_v21 = vld [vmem:[%s12259_s5 + $0x364] ss:$16 sps:$4 sm:$0xff]   ;;  %v8679_v22 = vld [vmem:[%s12259_s5 + $0x36c] ss:$16 sps:$4 sm:$0xff]   ;;  %v8674_v23 = vld [vmem:[%s12259_s5 + $0x360] ss:$16 sps:$4 sm:$0xff]  }
 0x2b7   : > { %v8677_v24 = vld [vmem:[%s12259_s5 + $0x368] ss:$16 sps:$4 sm:$0xff]   ;;  %v8682_v28 = vld [vmem:[%s12259_s5 + $0x384] ss:$16 sps:$4 sm:$0xff]   ;;  %v8685_v29 = vld [vmem:[%s12259_s5 + $0x38c] ss:$16 sps:$4 sm:$0xff]  }
 0x2b8   : > { %3665 = vmatpush1.bf16.msra.mxu0 %v8632_v54  ;;  %3930 = vmatpush1.bf16.msra.mxu1 %v8635_v55  ;;  %v8680_v34 = vld [vmem:[%s12259_s5 + $0x380] ss:$16 sps:$4 sm:$0xff]   ;;  %v8683_v35 = vld [vmem:[%s12259_s5 + $0x388] ss:$16 sps:$4 sm:$0xff]   ;;  %v8688_v26 = vld [vmem:[%s12259_s5 + $0x3a4] ss:$16 sps:$4 sm:$0xff]  }
 0x2b9   : > { %3666 = vmatprep.subr.bf16.mxu0 %v8640_v56  ;;  %3931 = vmatprep.subr.bf16.mxu1 %v8643_v36  ;;  %v8691_v38 = vld [vmem:[%s12259_s5 + $0x3ac] ss:$16 sps:$4 sm:$0xff]   ;;  %v8686_v40 = vld [vmem:[%s12259_s5 + $0x3a0] ss:$16 sps:$4 sm:$0xff]   ;;  %v8689_v43 = vld [vmem:[%s12259_s5 + $0x3a8] ss:$16 sps:$4 sm:$0xff]  }
 0x2ba   : > { %v8694_v44 = vld [vmem:[%s12259_s5 + $0x3c4] ss:$16 sps:$4 sm:$0xff]   ;;  %v8697_v47 = vld [vmem:[%s12259_s5 + $0x3cc] ss:$16 sps:$4 sm:$0xff]   ;;  %v8692_v48 = vld [vmem:[%s12259_s5 + $0x3c0] ss:$16 sps:$4 sm:$0xff]  }
 0x2bb   : > { %v8695_v52 = vld [vmem:[%s12259_s5 + $0x3c8] ss:$16 sps:$4 sm:$0xff]   ;;  %v8700_v54 = vld [vmem:[%s12259_s5 + $0x3e4] ss:$16 sps:$4 sm:$0xff]   ;;  %v8703_v55 = vld [vmem:[%s12259_s5 + $0x3ec] ss:$16 sps:$4 sm:$0xff]  }
 0x2bc   : > { %3667 = vmatpush1.bf16.msra.mxu0 %v8638_v51  ;;  %3932 = vmatpush1.bf16.msra.mxu1 %v8641_v59  ;;  %v8698_v56 = vld [vmem:[%s12259_s5 + $0x3e0] ss:$16 sps:$4 sm:$0xff]   ;;  %v8701_v36 = vld [vmem:[%s12259_s5 + $0x3e8] ss:$16 sps:$4 sm:$0xff]   ;;  %v8706_v51 = vld [vmem:[%s12259_s5 + $0x404] ss:$16 sps:$4 sm:$0xff]  }
 0x2bd   : > { %3668 = vmatprep.subr.bf16.mxu0 %v8646_v61  ;;  %3933 = vmatprep.subr.bf16.mxu1 %v8649_v62  ;;  %v8709_v59 = vld [vmem:[%s12259_s5 + $0x40c] ss:$16 sps:$4 sm:$0xff]   ;;  %v8704_v61 = vld [vmem:[%s12259_s5 + $0x400] ss:$16 sps:$4 sm:$0xff]   ;;  %v8707_v62 = vld [vmem:[%s12259_s5 + $0x408] ss:$16 sps:$4 sm:$0xff]  }
 0x2be   : > { %v8713_v17 = vld [vmem:[%s12259_s5 + $0x428] ss:$16 sps:$4 sm:$0xff]   ;;  %v8722_v12 = vld [vmem:[%s12259_s5 + $0x460] ss:$16 sps:$4 sm:$0xff]  }
 0x2c0   : > { %3669 = vmatpush1.bf16.msra.mxu0 %v8644_v63  ;;  %3934 = vmatpush1.bf16.msra.mxu1 %v8647_v60  ;;  %v1634_v63 = vor.u32 %v1632_v30, %v10326_v39  ;;  %v8712_v60 = vld [vmem:[%s12259_s5 + $0x424] ss:$16 sps:$4 sm:$0xff]   ;;  %v8721_v39 = vld [vmem:[%s12259_s5 + $0x44c] ss:$16 sps:$4 sm:$0xff]  }
 0x2c1   : > { %3670 = vmatprep.subr.bf16.mxu0 %v8652_v0  ;;  %3935 = vmatprep.subr.bf16.mxu1 %v8655_v1  ;;  %v8715_v0 = vld [vmem:[%s12259_s5 + $0x42c] ss:$16 sps:$4 sm:$0xff]   ;;  %v8710_v1 = vld [vmem:[%s12259_s5 + $0x420] ss:$16 sps:$4 sm:$0xff]   ;;  %v8718_v30 = vld [vmem:[%s12259_s5 + $0x444] ss:$16 sps:$4 sm:$0xff]  }
 0x2c4   : > { %3671 = vmatpush1.bf16.msra.mxu0 %v8650_v4  ;;  %3936 = vmatpush1.bf16.msra.mxu1 %v8653_v5  ;;  %v1631_v4 = vor.u32 %v1629_v25, %v10312_v33  ;;  %v8719_v5 = vld [vmem:[%s12259_s5 + $0x448] ss:$16 sps:$4 sm:$0xff]   ;;  %v8730_v33 = vld [vmem:[%s12259_s5 + $0x484] ss:$16 sps:$4 sm:$0xff]  }
 0x2c5   : > { %3672 = vmatprep.subr.bf16.mxu0 %v8658_v3  ;;  %3937 = vmatprep.subr.bf16.mxu1 %v8661_v6  ;;  %v8724_v3 = vld [vmem:[%s12259_s5 + $0x464] ss:$16 sps:$4 sm:$0xff]   ;;  %v8727_v6 = vld [vmem:[%s12259_s5 + $0x46c] ss:$16 sps:$4 sm:$0xff]   ;;  %v8725_v25 = vld [vmem:[%s12259_s5 + $0x468] ss:$16 sps:$4 sm:$0xff]  }
 0x2c8   : > { %3673 = vmatpush1.bf16.msra.mxu0 %v8656_v7  ;;  %3938 = vmatpush1.bf16.msra.mxu1 %v8659_v9  ;;  %v8733_v7 = vld [vmem:[%s12259_s5 + $0x48c] ss:$16 sps:$4 sm:$0xff]   ;;  %v8728_v9 = vld [vmem:[%s12259_s5 + $0x480] ss:$16 sps:$4 sm:$0xff]  }
 0x2c9   : > { %3674 = vmatprep.subr.bf16.mxu0 %v8664_v11  ;;  %3939 = vmatprep.subr.bf16.mxu1 %v8667_v13  ;;  %v8736_v11 = vld [vmem:[%s12259_s5 + $0x4a4] ss:$16 sps:$4 sm:$0xff]   ;;  %v8739_v13 = vld [vmem:[%s12259_s5 + $0x4ac] ss:$16 sps:$4 sm:$0xff]  }
 0x2cc   : > { %3675 = vmatpush1.bf16.msra.mxu0 %v8662_v14  ;;  %3940 = vmatpush1.bf16.msra.mxu1 %v8665_v15  ;;  %v8734_v14 = vld [vmem:[%s12259_s5 + $0x4a0] ss:$16 sps:$4 sm:$0xff]   ;;  %v8737_v15 = vld [vmem:[%s12259_s5 + $0x4a8] ss:$16 sps:$4 sm:$0xff]  }
 0x2cd   : > { %3676 = vmatprep.subr.bf16.mxu0 %v8670_v16  ;;  %3941 = vmatprep.subr.bf16.mxu1 %v8673_v18  ;;  %v8742_v16 = vld [vmem:[%s12259_s5 + $0x4c4] ss:$16 sps:$4 sm:$0xff]   ;;  %v8745_v18 = vld [vmem:[%s12259_s5 + $0x4cc] ss:$16 sps:$4 sm:$0xff]  }
 0x2d0   : > { %3677 = vmatpush1.bf16.msra.mxu0 %v8668_v19  ;;  %3942 = vmatpush1.bf16.msra.mxu1 %v8671_v20  ;;  %v8740_v19 = vld [vmem:[%s12259_s5 + $0x4c0] ss:$16 sps:$4 sm:$0xff]   ;;  %v8743_v20 = vld [vmem:[%s12259_s5 + $0x4c8] ss:$16 sps:$4 sm:$0xff]  }
 0x2d1   : > { %3678 = vmatprep.subr.bf16.mxu0 %v8676_v21  ;;  %3943 = vmatprep.subr.bf16.mxu1 %v8679_v22  ;;  %v8748_v21 = vld [vmem:[%s12259_s5 + $0x4e4] ss:$16 sps:$4 sm:$0xff]   ;;  %v8751_v22 = vld [vmem:[%s12259_s5 + $0x4ec] ss:$16 sps:$4 sm:$0xff]  }
 0x2d4   : > { %3679 = vmatpush1.bf16.msra.mxu0 %v8674_v23  ;;  %3944 = vmatpush1.bf16.msra.mxu1 %v8677_v24  ;;  %v8746_v23 = vld [vmem:[%s12259_s5 + $0x4e0] ss:$16 sps:$4 sm:$0xff]   ;;  %v8749_v24 = vld [vmem:[%s12259_s5 + $0x4e8] ss:$16 sps:$4 sm:$0xff]  }
 0x2d5   : > { %3680 = vmatprep.subr.bf16.mxu0 %v8682_v28  ;;  %3945 = vmatprep.subr.bf16.mxu1 %v8685_v29  ;;  %v8754_v28 = vld [vmem:[%s12259_s5 + $0x504] ss:$16 sps:$4 sm:$0xff]   ;;  %v8757_v29 = vld [vmem:[%s12259_s5 + $0x50c] ss:$16 sps:$4 sm:$0xff]  }
 0x2d8   : > { %3681 = vmatpush1.bf16.msra.mxu0 %v8680_v34  ;;  %3946 = vmatpush1.bf16.msra.mxu1 %v8683_v35  ;;  %v8752_v34 = vld [vmem:[%s12259_s5 + $0x500] ss:$16 sps:$4 sm:$0xff]   ;;  %v8755_v35 = vld [vmem:[%s12259_s5 + $0x508] ss:$16 sps:$4 sm:$0xff]  }
 0x2d9   : > { %3682 = vmatprep.subr.bf16.mxu0 %v8688_v26  ;;  %3947 = vmatprep.subr.bf16.mxu1 %v8691_v38  ;;  %v8760_v26 = vld [vmem:[%s12259_s5 + $0x524] ss:$16 sps:$4 sm:$0xff]   ;;  %v8763_v38 = vld [vmem:[%s12259_s5 + $0x52c] ss:$16 sps:$4 sm:$0xff]  }
 0x2dc   : > { %3683 = vmatpush1.bf16.msra.mxu0 %v8686_v40  ;;  %3948 = vmatpush1.bf16.msra.mxu1 %v8689_v43  ;;  %v8758_v40 = vld [vmem:[%s12259_s5 + $0x520] ss:$16 sps:$4 sm:$0xff]   ;;  %v8761_v43 = vld [vmem:[%s12259_s5 + $0x528] ss:$16 sps:$4 sm:$0xff]  }
 0x2dd   : > { %3684 = vmatprep.subr.bf16.mxu0 %v8694_v44  ;;  %3949 = vmatprep.subr.bf16.mxu1 %v8697_v47  ;;  %v8766_v44 = vld [vmem:[%s12259_s5 + $0x544] ss:$16 sps:$4 sm:$0xff]   ;;  %v8769_v47 = vld [vmem:[%s12259_s5 + $0x54c] ss:$16 sps:$4 sm:$0xff]  }
 0x2e0   : > { %3685 = vmatpush1.bf16.msra.mxu0 %v8692_v48  ;;  %3950 = vmatpush1.bf16.msra.mxu1 %v8695_v52  ;;  %v8764_v48 = vld [vmem:[%s12259_s5 + $0x540] ss:$16 sps:$4 sm:$0xff]   ;;  %v8767_v52 = vld [vmem:[%s12259_s5 + $0x548] ss:$16 sps:$4 sm:$0xff]  }
 0x2e1   : > { %3686 = vmatprep.subr.bf16.mxu0 %v8700_v54  ;;  %3951 = vmatprep.subr.bf16.mxu1 %v8703_v55  ;;  %v8772_v54 = vld [vmem:[%s12259_s5 + $0x564] ss:$16 sps:$4 sm:$0xff]   ;;  %v8775_v55 = vld [vmem:[%s12259_s5 + $0x56c] ss:$16 sps:$4 sm:$0xff]  }
 0x2e4   : > { %3687 = vmatpush1.bf16.msra.mxu0 %v8698_v56  ;;  %3952 = vmatpush1.bf16.msra.mxu1 %v8701_v36  ;;  %v8770_v56 = vld [vmem:[%s12259_s5 + $0x560] ss:$16 sps:$4 sm:$0xff]   ;;  %v8773_v36 = vld [vmem:[%s12259_s5 + $0x568] ss:$16 sps:$4 sm:$0xff]  }
 0x2e5   : > { %3709 = vmatprep.subr.bf16.mxu0 %v8706_v51  ;;  %3974 = vmatprep.subr.bf16.mxu1 %v8709_v59  ;;  %v8778_v51 = vld [vmem:[%s12259_s5 + $0x584] ss:$16 sps:$4 sm:$0xff]   ;;  %v8781_v59 = vld [vmem:[%s12259_s5 + $0x58c] ss:$16 sps:$4 sm:$0xff]  }
 0x2e7   : > { %3689 = vmatmul.mubr.bf16.vlgmr.msra.gmra.mrb[8].mxu0 %v10346_v45  ;;  %3954 = vmatmul.mubr.bf16.vlgmr.msra.gmra.mrb[40].mxu1 %v10346_v45  ;;  %v8716_v45 = vld [vmem:[%s12259_s5 + $0x440] ss:$16 sps:$4 sm:$0xff]  }
 0x2e8   : > { %3698 = vmatprep.mubr.bf16.mxu0 %v1634_v63  ;;  %3710 = vmatpush1.bf16.msra.mxu0 %v8704_v61  ;;  %v8776_v61 = vld [vmem:[%s12259_s5 + $0x580] ss:$16 sps:$4 sm:$0xff]  }
 0x2e9   : > { %3963 = vmatprep.mubr.bf16.mxu1 %v1634_v63  ;;  %3975 = vmatpush1.bf16.msra.mxu1 %v8707_v62  ;;  %v8779_v62 = vld [vmem:[%s12259_s5 + $0x588] ss:$16 sps:$4 sm:$0xff]   ;;  %v8784_v63 = vld [vmem:[%s12259_s5 + $0x5a4] ss:$16 sps:$4 sm:$0xff]  }
 0x2ea   : > { %3711 = vmatprep.subr.bf16.mxu0 %v8712_v60  ;;  %3976 = vmatprep.subr.bf16.mxu1 %v8715_v0  ;;  %v8787_v60 = vld [vmem:[%s12259_s5 + $0x5ac] ss:$16 sps:$4 sm:$0xff]   ;;  %v8782_v0 = vld [vmem:[%s12259_s5 + $0x5a0] ss:$16 sps:$4 sm:$0xff]  }
 0x2ec   : > { %3712 = vmatpush1.bf16.msra.mxu0 %v8710_v1  ;;  %v8785_v1 = vld [vmem:[%s12259_s5 + $0x5a8] ss:$16 sps:$4 sm:$0xff]  }
 0x2ed   : > { %3977 = vmatpush1.bf16.msra.mxu1 %v8713_v17  ;;  %3713 = vmatprep.subr.bf16.mxu0 %v8718_v30  ;;  %v8790_v17 = vld [vmem:[%s12259_s5 + $0x5c4] ss:$16 sps:$4 sm:$0xff]   ;;  %v8793_v30 = vld [vmem:[%s12259_s5 + $0x5cc] ss:$16 sps:$4 sm:$0xff]  }
 0x2ee   : > { %3978 = vmatprep.subr.bf16.mxu1 %v8721_v39  ;;  %v8788_v39 = vld [vmem:[%s12259_s5 + $0x5c0] ss:$16 sps:$4 sm:$0xff]  }
 0x2ef   : > { %3699 = vmatmul.mubr.bf16.gmra.mrb[12].mxu0 %v1631_v4  ;;  %3964 = vmatmul.mubr.bf16.gmra.mrb[44].mxu1 %v1631_v4  ;;  %v8796_v4 = vld [vmem:[%s12259_s5 + $0x5e4] ss:$16 sps:$4 sm:$0xff]  }
 0x2f0   : > { %3714 = vmatpush1.bf16.msra.mxu0 %v8716_v45  ;;  %3741 = vmatprep.mubr.bf16.mxu0 %v10332_v41  ;;  %v8791_v45 = vld [vmem:[%s12259_s5 + $0x5c8] ss:$16 sps:$4 sm:$0xff]  }
 0x2f1   : > { %3979 = vmatpush1.bf16.msra.mxu1 %v8719_v5  ;;  %4006 = vmatprep.mubr.bf16.mxu1 %v10332_v41  ;;  %v8731_v41 = vld [vmem:[%s12259_s5 + $0x488] ss:$16 sps:$4 sm:$0xff]   ;;  %v8799_v5 = vld [vmem:[%s12259_s5 + $0x5ec] ss:$16 sps:$4 sm:$0xff]  }
 0x2f2   : > { %3715 = vmatprep.subr.bf16.mxu0 %v8724_v3  ;;  %3980 = vmatprep.subr.bf16.mxu1 %v8727_v6  ;;  %v8794_v3 = vld [vmem:[%s12259_s5 + $0x5e0] ss:$16 sps:$4 sm:$0xff]   ;;  %v8797_v6 = vld [vmem:[%s12259_s5 + $0x5e8] ss:$16 sps:$4 sm:$0xff]  }
 0x2f4   : > { %3716 = vmatpush1.bf16.msra.mxu0 %v8722_v12  ;;  %v8802_v12 = vld [vmem:[%s12259_s5 + $0x604] ss:$16 sps:$4 sm:$0xff]  }
 0x2f5   : > { %3981 = vmatpush1.bf16.msra.mxu1 %v8725_v25  ;;  %3717 = vmatprep.subr.bf16.mxu0 %v8730_v33  ;;  %v8805_v25 = vld [vmem:[%s12259_s5 + $0x60c] ss:$16 sps:$4 sm:$0xff]   ;;  %v8800_v33 = vld [vmem:[%s12259_s5 + $0x600] ss:$16 sps:$4 sm:$0xff]  }
 0x2f6   : > { %3982 = vmatprep.subr.bf16.mxu1 %v8733_v7  ;;  %v8803_v7 = vld [vmem:[%s12259_s5 + $0x608] ss:$16 sps:$4 sm:$0xff]  }
 0x2f8   : > { %3718 = vmatpush1.bf16.msra.mxu0 %v8728_v9  ;;  %v8808_v9 = vld [vmem:[%s12259_s5 + $0x624] ss:$16 sps:$4 sm:$0xff]  }
 0x2f9   : > { %3983 = vmatpush1.bf16.msra.mxu1 %v8731_v41  ;;  %3719 = vmatprep.subr.bf16.mxu0 %v8736_v11  ;;  %v8811_v41 = vld [vmem:[%s12259_s5 + $0x62c] ss:$16 sps:$4 sm:$0xff]   ;;  %v8806_v11 = vld [vmem:[%s12259_s5 + $0x620] ss:$16 sps:$4 sm:$0xff]  }
 0x2fa   : > { %3984 = vmatprep.subr.bf16.mxu1 %v8739_v13  ;;  %v8809_v13 = vld [vmem:[%s12259_s5 + $0x628] ss:$16 sps:$4 sm:$0xff]  }
 0x2fc   : > { %3720 = vmatpush1.bf16.msra.mxu0 %v8734_v14  ;;  %v8814_v14 = vld [vmem:[%s12259_s5 + $0x644] ss:$16 sps:$4 sm:$0xff]  }
 0x2fd   : > { %3985 = vmatpush1.bf16.msra.mxu1 %v8737_v15  ;;  %3721 = vmatprep.subr.bf16.mxu0 %v8742_v16  ;;  %v8815_v15 = vld [vmem:[%s12259_s5 + $0x648] ss:$16 sps:$4 sm:$0xff]   ;;  %v8820_v16 = vld [vmem:[%s12259_s5 + $0x664] ss:$16 sps:$4 sm:$0xff]  }
 0x2fe   : > { %3986 = vmatprep.subr.bf16.mxu1 %v8745_v18  ;;  %v8823_v18 = vld [vmem:[%s12259_s5 + $0x66c] ss:$16 sps:$4 sm:$0xff]  }
 0x300   : > { %3722 = vmatpush1.bf16.msra.mxu0 %v8740_v19  ;;  %v8818_v19 = vld [vmem:[%s12259_s5 + $0x660] ss:$16 sps:$4 sm:$0xff]  }
 0x301   : > { %3987 = vmatpush1.bf16.msra.mxu1 %v8743_v20  ;;  %3723 = vmatprep.subr.bf16.mxu0 %v8748_v21  ;;  %v8821_v20 = vld [vmem:[%s12259_s5 + $0x668] ss:$16 sps:$4 sm:$0xff]   ;;  %v8826_v21 = vld [vmem:[%s12259_s5 + $0x684] ss:$16 sps:$4 sm:$0xff]  }
 0x302   : > { %3988 = vmatprep.subr.bf16.mxu1 %v8751_v22  ;;  %v8827_v22 = vld [vmem:[%s12259_s5 + $0x688] ss:$16 sps:$4 sm:$0xff]  }
 0x304   : > { %3724 = vmatpush1.bf16.msra.mxu0 %v8746_v23  ;;  %v8832_v23 = vld [vmem:[%s12259_s5 + $0x6a4] ss:$16 sps:$4 sm:$0xff]  }
 0x305   : > { %3989 = vmatpush1.bf16.msra.mxu1 %v8749_v24  ;;  %3725 = vmatprep.subr.bf16.mxu0 %v8754_v28  ;;  %v8835_v24 = vld [vmem:[%s12259_s5 + $0x6ac] ss:$16 sps:$4 sm:$0xff]   ;;  %v8830_v28 = vld [vmem:[%s12259_s5 + $0x6a0] ss:$16 sps:$4 sm:$0xff]  }
 0x306   : > { %3990 = vmatprep.subr.bf16.mxu1 %v8757_v29  ;;  %v8833_v29 = vld [vmem:[%s12259_s5 + $0x6a8] ss:$16 sps:$4 sm:$0xff]  }
 0x308   : > { %3726 = vmatpush1.bf16.msra.mxu0 %v8752_v34  ;;  %v8838_v34 = vld [vmem:[%s12259_s5 + $0x6c4] ss:$16 sps:$4 sm:$0xff]  }
 0x309   : > { %3991 = vmatpush1.bf16.msra.mxu1 %v8755_v35  ;;  %3727 = vmatprep.subr.bf16.mxu0 %v8760_v26  ;;  %v8841_v35 = vld [vmem:[%s12259_s5 + $0x6cc] ss:$16 sps:$4 sm:$0xff]   ;;  %v8836_v26 = vld [vmem:[%s12259_s5 + $0x6c0] ss:$16 sps:$4 sm:$0xff]  }
 0x30a   : > { %3992 = vmatprep.subr.bf16.mxu1 %v8763_v38  ;;  %v8839_v38 = vld [vmem:[%s12259_s5 + $0x6c8] ss:$16 sps:$4 sm:$0xff]  }
 0x30c   : > { %3728 = vmatpush1.bf16.msra.mxu0 %v8758_v40  ;;  %v8844_v40 = vld [vmem:[%s12259_s5 + $0x6e4] ss:$16 sps:$4 sm:$0xff]  }
 0x30d   : > { %3993 = vmatpush1.bf16.msra.mxu1 %v8761_v43  ;;  %3729 = vmatprep.subr.bf16.mxu0 %v8766_v44  ;;  %v8847_v43 = vld [vmem:[%s12259_s5 + $0x6ec] ss:$16 sps:$4 sm:$0xff]   ;;  %v8842_v44 = vld [vmem:[%s12259_s5 + $0x6e0] ss:$16 sps:$4 sm:$0xff]  }
 0x30e   : > { %3994 = vmatprep.subr.bf16.mxu1 %v8769_v47  ;;  %v8845_v47 = vld [vmem:[%s12259_s5 + $0x6e8] ss:$16 sps:$4 sm:$0xff]  }
 0x310   : > { %3730 = vmatpush1.bf16.msra.mxu0 %v8764_v48  ;;  %v8850_v48 = vld [vmem:[%s12259_s5 + $0x704] ss:$16 sps:$4 sm:$0xff]  }
 0x311   : > { %3995 = vmatpush1.bf16.msra.mxu1 %v8767_v52  ;;  %3731 = vmatprep.subr.bf16.mxu0 %v8772_v54  ;;  %v8853_v52 = vld [vmem:[%s12259_s5 + $0x70c] ss:$16 sps:$4 sm:$0xff]   ;;  %v8848_v54 = vld [vmem:[%s12259_s5 + $0x700] ss:$16 sps:$4 sm:$0xff]  }
 0x312   : > { %3996 = vmatprep.subr.bf16.mxu1 %v8775_v55  ;;  %v8851_v55 = vld [vmem:[%s12259_s5 + $0x708] ss:$16 sps:$4 sm:$0xff]  }
 0x314   : > { %3732 = vmatpush1.bf16.msra.mxu0 %v8770_v56  ;;  %v8856_v56 = vld [vmem:[%s12259_s5 + $0x724] ss:$16 sps:$4 sm:$0xff]  }
 0x315   : > { %3997 = vmatpush1.bf16.msra.mxu1 %v8773_v36  ;;  %3733 = vmatprep.subr.bf16.mxu0 %v8778_v51  ;;  %v8859_v36 = vld [vmem:[%s12259_s5 + $0x72c] ss:$16 sps:$4 sm:$0xff]   ;;  %v8854_v51 = vld [vmem:[%s12259_s5 + $0x720] ss:$16 sps:$4 sm:$0xff]  }
 0x316   : > { %3998 = vmatprep.subr.bf16.mxu1 %v8781_v59  ;;  %v8857_v59 = vld [vmem:[%s12259_s5 + $0x728] ss:$16 sps:$4 sm:$0xff]  }
 0x318   : > { %3734 = vmatpush1.bf16.msra.mxu0 %v8776_v61  ;;  %v8862_v61 = vld [vmem:[%s12259_s5 + $0x744] ss:$16 sps:$4 sm:$0xff]  }
 0x319   : > { %3999 = vmatpush1.bf16.msra.mxu1 %v8779_v62  ;;  %3735 = vmatprep.subr.bf16.mxu0 %v8784_v63  ;;  %v8865_v62 = vld [vmem:[%s12259_s5 + $0x74c] ss:$16 sps:$4 sm:$0xff]   ;;  %v8860_v63 = vld [vmem:[%s12259_s5 + $0x740] ss:$16 sps:$4 sm:$0xff]  }
 0x31a   : > { %4000 = vmatprep.subr.bf16.mxu1 %v8787_v60  ;;  %v8863_v60 = vld [vmem:[%s12259_s5 + $0x748] ss:$16 sps:$4 sm:$0xff]  }
 0x31c   : > { %3736 = vmatpush1.bf16.msra.mxu0 %v8782_v0  ;;  %v8868_v0 = vld [vmem:[%s12259_s5 + $0x764] ss:$16 sps:$4 sm:$0xff]  }
 0x31d   : > { %4001 = vmatpush1.bf16.msra.mxu1 %v8785_v1  ;;  %3737 = vmatprep.subr.bf16.mxu0 %v8790_v17  ;;  %v8871_v1 = vld [vmem:[%s12259_s5 + $0x76c] ss:$16 sps:$4 sm:$0xff]   ;;  %v8866_v17 = vld [vmem:[%s12259_s5 + $0x760] ss:$16 sps:$4 sm:$0xff]  }
 0x31e   : > { %4002 = vmatprep.subr.bf16.mxu1 %v8793_v30  ;;  %v8869_v30 = vld [vmem:[%s12259_s5 + $0x768] ss:$16 sps:$4 sm:$0xff]  }
 0x320   : > { %3738 = vmatpush1.bf16.msra.mxu0 %v8788_v39  ;;  %v8874_v39 = vld [vmem:[%s12259_s5 + $0x784] ss:$16 sps:$4 sm:$0xff]  }
 0x321   : > { %4003 = vmatpush1.bf16.msra.mxu1 %v8791_v45  ;;  %3739 = vmatprep.subr.bf16.mxu0 %v8796_v4  ;;  %v8877_v45 = vld [vmem:[%s12259_s5 + $0x78c] ss:$16 sps:$4 sm:$0xff]   ;;  %v8872_v4 = vld [vmem:[%s12259_s5 + $0x780] ss:$16 sps:$4 sm:$0xff]  }
 0x322   : > { %4004 = vmatprep.subr.bf16.mxu1 %v8799_v5  ;;  %v8875_v5 = vld [vmem:[%s12259_s5 + $0x788] ss:$16 sps:$4 sm:$0xff]  }
 0x324   : > { %3740 = vmatpush1.bf16.msra.mxu0 %v8794_v3  ;;  %v8880_v3 = vld [vmem:[%s12259_s5 + $0x7a4] ss:$16 sps:$4 sm:$0xff]  }
 0x325   : > { %4005 = vmatpush1.bf16.msra.mxu1 %v8797_v6  ;;  %3762 = vmatprep.subr.bf16.mxu0 %v8802_v12  ;;  %v8883_v6 = vld [vmem:[%s12259_s5 + $0x7ac] ss:$16 sps:$4 sm:$0xff]   ;;  %v8878_v12 = vld [vmem:[%s12259_s5 + $0x7a0] ss:$16 sps:$4 sm:$0xff]  }
 0x326   : > { %4027 = vmatprep.subr.bf16.mxu1 %v8805_v25  ;;  %v8881_v25 = vld [vmem:[%s12259_s5 + $0x7a8] ss:$16 sps:$4 sm:$0xff]  }
 0x327   : > { %3742 = vmatmul.mubr.bf16.vlgmr.msra.gmra.mrb[8].mxu0 %v10318_v37 }
 0x328   : > { %4007 = vmatmul.mubr.bf16.vlgmr.msra.gmra.mrb[40].mxu1 %v10318_v37  ;;  %3751 = vmatprep.mubr.bf16.mxu0 %v10305_v31  ;;  %v8817_v37 = vld [vmem:[%s12259_s5 + $0x64c] ss:$16 sps:$4 sm:$0xff]  }
 0x329   : > { %3763 = vmatpush1.bf16.msra.mxu0 %v8800_v33  ;;  %4016 = vmatprep.mubr.bf16.mxu1 %v10305_v31  ;;  %v8812_v31 = vld [vmem:[%s12259_s5 + $0x640] ss:$16 sps:$4 sm:$0xff]   ;;  %v8886_v33 = vld [vmem:[%s12259_s5 + $0x7c4] ss:$16 sps:$4 sm:$0xff]  }
 0x32a   : > { %4028 = vmatpush1.bf16.msra.mxu1 %v8803_v7  ;;  %3764 = vmatprep.subr.bf16.mxu0 %v8808_v9  ;;  %v8889_v7 = vld [vmem:[%s12259_s5 + $0x7cc] ss:$16 sps:$4 sm:$0xff]   ;;  %v8884_v9 = vld [vmem:[%s12259_s5 + $0x7c0] ss:$16 sps:$4 sm:$0xff]  }
 0x32b   : > { %4029 = vmatprep.subr.bf16.mxu1 %v8811_v41  ;;  %v8887_v41 = vld [vmem:[%s12259_s5 + $0x7c8] ss:$16 sps:$4 sm:$0xff]  }
 0x32d   : > { %3765 = vmatpush1.bf16.msra.mxu0 %v8806_v11  ;;  %v8892_v11 = vld [vmem:[%s12259_s5 + $0x7e4] ss:$16 sps:$4 sm:$0xff]  }
 0x32e   : > { %4030 = vmatpush1.bf16.msra.mxu1 %v8809_v13  ;;  %3766 = vmatprep.subr.bf16.mxu0 %v8814_v14  ;;  %v8895_v13 = vld [vmem:[%s12259_s5 + $0x7ec] ss:$16 sps:$4 sm:$0xff]   ;;  %v8890_v14 = vld [vmem:[%s12259_s5 + $0x7e0] ss:$16 sps:$4 sm:$0xff]  }
 0x32f   : > { %3752 = vmatmul.mubr.bf16.gmra.mrb[12].mxu0 %v10298_v27  ;;  %4031 = vmatprep.subr.bf16.mxu1 %v8817_v37  ;;  %v8893_v37 = vld [vmem:[%s12259_s5 + $0x7e8] ss:$16 sps:$4 sm:$0xff]  }
 0x330   : > { %4017 = vmatmul.mubr.bf16.gmra.mrb[44].mxu1 %v10298_v27  ;;  %3794 = vmatprep.mubr.bf16.mxu0 %v10376_v57  ;;  %v8829_v27 = vld [vmem:[%s12259_s5 + $0x68c] ss:$16 sps:$4 sm:$0xff]  }
 0x331   : > { %3767 = vmatpush1.bf16.msra.mxu0 %v8812_v31  ;;  %4059 = vmatprep.mubr.bf16.mxu1 %v10376_v57  ;;  %v8824_v57 = vld [vmem:[%s12259_s5 + $0x680] ss:$16 sps:$4 sm:$0xff]   ;;  %v8898_v31 = vld [vmem:[%s12259_s5 + $0x804] ss:$16 sps:$4 sm:$0xff]  }
 0x332   : > { %4032 = vmatpush1.bf16.msra.mxu1 %v8815_v15  ;;  %3768 = vmatprep.subr.bf16.mxu0 %v8820_v16  ;;  %v8901_v15 = vld [vmem:[%s12259_s5 + $0x80c] ss:$16 sps:$4 sm:$0xff]   ;;  %v8896_v16 = vld [vmem:[%s12259_s5 + $0x800] ss:$16 sps:$4 sm:$0xff]  }
 0x333   : > { %4033 = vmatprep.subr.bf16.mxu1 %v8823_v18  ;;  %v8899_v18 = vld [vmem:[%s12259_s5 + $0x808] ss:$16 sps:$4 sm:$0xff]  }
 0x335   : > { %3769 = vmatpush1.bf16.msra.mxu0 %v8818_v19  ;;  %v8904_v19 = vld [vmem:[%s12259_s5 + $0x824] ss:$16 sps:$4 sm:$0xff]  }
 0x336   : > { %4034 = vmatpush1.bf16.msra.mxu1 %v8821_v20  ;;  %3770 = vmatprep.subr.bf16.mxu0 %v8826_v21  ;;  %v8907_v20 = vld [vmem:[%s12259_s5 + $0x82c] ss:$16 sps:$4 sm:$0xff]   ;;  %v8902_v21 = vld [vmem:[%s12259_s5 + $0x820] ss:$16 sps:$4 sm:$0xff]  }
 0x337   : > { %4035 = vmatprep.subr.bf16.mxu1 %v8829_v27  ;;  %v8905_v27 = vld [vmem:[%s12259_s5 + $0x828] ss:$16 sps:$4 sm:$0xff]  }
 0x339   : > { %3771 = vmatpush1.bf16.msra.mxu0 %v8824_v57  ;;  %v8910_v57 = vld [vmem:[%s12259_s5 + $0x844] ss:$16 sps:$4 sm:$0xff]  }
 0x33a   : > { %4036 = vmatpush1.bf16.msra.mxu1 %v8827_v22  ;;  %3772 = vmatprep.subr.bf16.mxu0 %v8832_v23  ;;  %v8911_v22 = vld [vmem:[%s12259_s5 + $0x848] ss:$16 sps:$4 sm:$0xff]   ;;  %v8916_v23 = vld [vmem:[%s12259_s5 + $0x864] ss:$16 sps:$4 sm:$0xff]  }
 0x33b   : > { %4037 = vmatprep.subr.bf16.mxu1 %v8835_v24  ;;  %v8919_v24 = vld [vmem:[%s12259_s5 + $0x86c] ss:$16 sps:$4 sm:$0xff]  }
 0x33d   : > { %3773 = vmatpush1.bf16.msra.mxu0 %v8830_v28  ;;  %v8914_v28 = vld [vmem:[%s12259_s5 + $0x860] ss:$16 sps:$4 sm:$0xff]  }
 0x33e   : > { %4038 = vmatpush1.bf16.msra.mxu1 %v8833_v29  ;;  %3774 = vmatprep.subr.bf16.mxu0 %v8838_v34  ;;  %v8917_v29 = vld [vmem:[%s12259_s5 + $0x868] ss:$16 sps:$4 sm:$0xff]   ;;  %v8922_v34 = vld [vmem:[%s12259_s5 + $0x884] ss:$16 sps:$4 sm:$0xff]  }
 0x33f   : > { %4039 = vmatprep.subr.bf16.mxu1 %v8841_v35  ;;  %v8923_v35 = vld [vmem:[%s12259_s5 + $0x888] ss:$16 sps:$4 sm:$0xff]  }
 0x341   : > { %3775 = vmatpush1.bf16.msra.mxu0 %v8836_v26  ;;  %v8928_v26 = vld [vmem:[%s12259_s5 + $0x8a4] ss:$16 sps:$4 sm:$0xff]  }
 0x342   : > { %4040 = vmatpush1.bf16.msra.mxu1 %v8839_v38  ;;  %3776 = vmatprep.subr.bf16.mxu0 %v8844_v40  ;;  %v8931_v38 = vld [vmem:[%s12259_s5 + $0x8ac] ss:$16 sps:$4 sm:$0xff]   ;;  %v8926_v40 = vld [vmem:[%s12259_s5 + $0x8a0] ss:$16 sps:$4 sm:$0xff]  }
 0x343   : > { %4041 = vmatprep.subr.bf16.mxu1 %v8847_v43  ;;  %v8929_v43 = vld [vmem:[%s12259_s5 + $0x8a8] ss:$16 sps:$4 sm:$0xff]  }
 0x345   : > { %3777 = vmatpush1.bf16.msra.mxu0 %v8842_v44  ;;  %v8934_v44 = vld [vmem:[%s12259_s5 + $0x8c4] ss:$16 sps:$4 sm:$0xff]  }
 0x346   : > { %4042 = vmatpush1.bf16.msra.mxu1 %v8845_v47  ;;  %3778 = vmatprep.subr.bf16.mxu0 %v8850_v48  ;;  %v8937_v47 = vld [vmem:[%s12259_s5 + $0x8cc] ss:$16 sps:$4 sm:$0xff]   ;;  %v8932_v48 = vld [vmem:[%s12259_s5 + $0x8c0] ss:$16 sps:$4 sm:$0xff]  }
 0x347   : > { %4043 = vmatprep.subr.bf16.mxu1 %v8853_v52  ;;  %v8935_v52 = vld [vmem:[%s12259_s5 + $0x8c8] ss:$16 sps:$4 sm:$0xff]  }
 0x349   : > { %3779 = vmatpush1.bf16.msra.mxu0 %v8848_v54  ;;  %v8940_v54 = vld [vmem:[%s12259_s5 + $0x8e4] ss:$16 sps:$4 sm:$0xff]  }
 0x34a   : > { %4044 = vmatpush1.bf16.msra.mxu1 %v8851_v55  ;;  %3780 = vmatprep.subr.bf16.mxu0 %v8856_v56  ;;  %v8943_v55 = vld [vmem:[%s12259_s5 + $0x8ec] ss:$16 sps:$4 sm:$0xff]   ;;  %v8938_v56 = vld [vmem:[%s12259_s5 + $0x8e0] ss:$16 sps:$4 sm:$0xff]  }
 0x34b   : > { %4045 = vmatprep.subr.bf16.mxu1 %v8859_v36  ;;  %v8941_v36 = vld [vmem:[%s12259_s5 + $0x8e8] ss:$16 sps:$4 sm:$0xff]  }
 0x34d   : > { %3781 = vmatpush1.bf16.msra.mxu0 %v8854_v51  ;;  %v8946_v51 = vld [vmem:[%s12259_s5 + $0x904] ss:$16 sps:$4 sm:$0xff]  }
 0x34e   : > { %4046 = vmatpush1.bf16.msra.mxu1 %v8857_v59  ;;  %3782 = vmatprep.subr.bf16.mxu0 %v8862_v61  ;;  %v8949_v59 = vld [vmem:[%s12259_s5 + $0x90c] ss:$16 sps:$4 sm:$0xff]   ;;  %v8944_v61 = vld [vmem:[%s12259_s5 + $0x900] ss:$16 sps:$4 sm:$0xff]  }
 0x34f   : > { %4047 = vmatprep.subr.bf16.mxu1 %v8865_v62  ;;  %v8947_v62 = vld [vmem:[%s12259_s5 + $0x908] ss:$16 sps:$4 sm:$0xff]  }
 0x351   : > { %3783 = vmatpush1.bf16.msra.mxu0 %v8860_v63  ;;  %v8952_v63 = vld [vmem:[%s12259_s5 + $0x924] ss:$16 sps:$4 sm:$0xff]  }
 0x352   : > { %4048 = vmatpush1.bf16.msra.mxu1 %v8863_v60  ;;  %3784 = vmatprep.subr.bf16.mxu0 %v8868_v0  ;;  %v8955_v60 = vld [vmem:[%s12259_s5 + $0x92c] ss:$16 sps:$4 sm:$0xff]   ;;  %v8950_v0 = vld [vmem:[%s12259_s5 + $0x920] ss:$16 sps:$4 sm:$0xff]  }
 0x353   : > { %4049 = vmatprep.subr.bf16.mxu1 %v8871_v1  ;;  %v8953_v1 = vld [vmem:[%s12259_s5 + $0x928] ss:$16 sps:$4 sm:$0xff]  }
 0x355   : > { %3785 = vmatpush1.bf16.msra.mxu0 %v8866_v17  ;;  %v8958_v17 = vld [vmem:[%s12259_s5 + $0x944] ss:$16 sps:$4 sm:$0xff]  }
 0x356   : > { %4050 = vmatpush1.bf16.msra.mxu1 %v8869_v30  ;;  %3786 = vmatprep.subr.bf16.mxu0 %v8874_v39  ;;  %v8961_v30 = vld [vmem:[%s12259_s5 + $0x94c] ss:$16 sps:$4 sm:$0xff]   ;;  %v8956_v39 = vld [vmem:[%s12259_s5 + $0x940] ss:$16 sps:$4 sm:$0xff]  }
 0x357   : > { %4051 = vmatprep.subr.bf16.mxu1 %v8877_v45  ;;  %v8959_v45 = vld [vmem:[%s12259_s5 + $0x948] ss:$16 sps:$4 sm:$0xff]  }
 0x359   : > { %3787 = vmatpush1.bf16.msra.mxu0 %v8872_v4  ;;  %v8964_v4 = vld [vmem:[%s12259_s5 + $0x964] ss:$16 sps:$4 sm:$0xff]  }
 0x35a   : > { %4052 = vmatpush1.bf16.msra.mxu1 %v8875_v5  ;;  %3788 = vmatprep.subr.bf16.mxu0 %v8880_v3  ;;  %v8967_v5 = vld [vmem:[%s12259_s5 + $0x96c] ss:$16 sps:$4 sm:$0xff]   ;;  %v8962_v3 = vld [vmem:[%s12259_s5 + $0x960] ss:$16 sps:$4 sm:$0xff]  }
 0x35b   : > { %4053 = vmatprep.subr.bf16.mxu1 %v8883_v6  ;;  %v8965_v6 = vld [vmem:[%s12259_s5 + $0x968] ss:$16 sps:$4 sm:$0xff]  }
 0x35d   : > { %3789 = vmatpush1.bf16.msra.mxu0 %v8878_v12  ;;  %v8970_v12 = vld [vmem:[%s12259_s5 + $0x984] ss:$16 sps:$4 sm:$0xff]  }
 0x35e   : > { %4054 = vmatpush1.bf16.msra.mxu1 %v8881_v25  ;;  %3790 = vmatprep.subr.bf16.mxu0 %v8886_v33  ;;  %v8973_v25 = vld [vmem:[%s12259_s5 + $0x98c] ss:$16 sps:$4 sm:$0xff]   ;;  %v8968_v33 = vld [vmem:[%s12259_s5 + $0x980] ss:$16 sps:$4 sm:$0xff]  }
 0x35f   : > { %4055 = vmatprep.subr.bf16.mxu1 %v8889_v7  ;;  %v8971_v7 = vld [vmem:[%s12259_s5 + $0x988] ss:$16 sps:$4 sm:$0xff]  }
 0x361   : > { %3791 = vmatpush1.bf16.msra.mxu0 %v8884_v9  ;;  %v8976_v9 = vld [vmem:[%s12259_s5 + $0x9a4] ss:$16 sps:$4 sm:$0xff]  }
 0x362   : > { %4056 = vmatpush1.bf16.msra.mxu1 %v8887_v41  ;;  %3792 = vmatprep.subr.bf16.mxu0 %v8892_v11  ;;  %v8979_v41 = vld [vmem:[%s12259_s5 + $0x9ac] ss:$16 sps:$4 sm:$0xff]   ;;  %v8974_v11 = vld [vmem:[%s12259_s5 + $0x9a0] ss:$16 sps:$4 sm:$0xff]  }
 0x363   : > { %4057 = vmatprep.subr.bf16.mxu1 %v8895_v13  ;;  %v8977_v13 = vld [vmem:[%s12259_s5 + $0x9a8] ss:$16 sps:$4 sm:$0xff]  }
 0x365   : > { %3793 = vmatpush1.bf16.msra.mxu0 %v8890_v14  ;;  %v8982_v14 = vld [vmem:[%s12259_s5 + $0x9c4] ss:$16 sps:$4 sm:$0xff]  }
 0x366   : > { %4058 = vmatpush1.bf16.msra.mxu1 %v8893_v37  ;;  %3815 = vmatprep.subr.bf16.mxu0 %v8898_v31  ;;  %v8985_v37 = vld [vmem:[%s12259_s5 + $0x9cc] ss:$16 sps:$4 sm:$0xff]   ;;  %v8980_v31 = vld [vmem:[%s12259_s5 + $0x9c0] ss:$16 sps:$4 sm:$0xff]  }
 0x367   : > { %4080 = vmatprep.subr.bf16.mxu1 %v8901_v15  ;;  %v8983_v15 = vld [vmem:[%s12259_s5 + $0x9c8] ss:$16 sps:$4 sm:$0xff]  }
 0x368   : > { %3795 = vmatmul.mubr.bf16.vlgmr.msra.gmra.mrb[8].mxu0 %v10356_v50 }
 0x369   : > { %4060 = vmatmul.mubr.bf16.vlgmr.msra.gmra.mrb[40].mxu1 %v10356_v50  ;;  %3804 = vmatprep.mubr.bf16.mxu0 %v10352_v49  ;;  %v8913_v50 = vld [vmem:[%s12259_s5 + $0x84c] ss:$16 sps:$4 sm:$0xff]  }
 0x36a   : > { %3816 = vmatpush1.bf16.msra.mxu0 %v8896_v16  ;;  %4069 = vmatprep.mubr.bf16.mxu1 %v10352_v49  ;;  %v8908_v49 = vld [vmem:[%s12259_s5 + $0x840] ss:$16 sps:$4 sm:$0xff]   ;;  %v8988_v16 = vld [vmem:[%s12259_s5 + $0x9e4] ss:$16 sps:$4 sm:$0xff]  }
 0x36b   : > { %4081 = vmatpush1.bf16.msra.mxu1 %v8899_v18  ;;  %3817 = vmatprep.subr.bf16.mxu0 %v8904_v19  ;;  %v8991_v18 = vld [vmem:[%s12259_s5 + $0x9ec] ss:$16 sps:$4 sm:$0xff]   ;;  %v8986_v19 = vld [vmem:[%s12259_s5 + $0x9e0] ss:$16 sps:$4 sm:$0xff]  }
 0x36c   : > { %4082 = vmatprep.subr.bf16.mxu1 %v8907_v20  ;;  %v8989_v20 = vld [vmem:[%s12259_s5 + $0x9e8] ss:$16 sps:$4 sm:$0xff]  }
 0x36e   : > { %3818 = vmatpush1.bf16.msra.mxu0 %v8902_v21  ;;  %v8994_v21 = vld [vmem:[%s12263_s9] ss:$8 sps:$4 sm:$0xff]  }
 0x36f   : > { %4083 = vmatpush1.bf16.msra.mxu1 %v8905_v27  ;;  %3819 = vmatprep.subr.bf16.mxu0 %v8910_v57  ;;  %v8996_v27 = vld [vmem:[%s12263_s9 + $0x4] ss:$8 sps:$4 sm:$0xff]   ;;  %v9000_v57 = vld [vmem:[%s12263_s9 + $0x20] ss:$8 sps:$4 sm:$0xff]  }
 0x370   : > { %3805 = vmatmul.mubr.bf16.gmra.mrb[12].mxu0 %v10348_v46  ;;  %4084 = vmatprep.subr.bf16.mxu1 %v8913_v50  ;;  %v9005_v50 = vld [vmem:[%s12263_s9 + $0x34] ss:$8 sps:$4 sm:$0xff]  }
 0x371   : > { %4070 = vmatmul.mubr.bf16.gmra.mrb[44].mxu1 %v10348_v46  ;;  %3847 = vmatprep.mubr.bf16.mxu0 %v10336_v42  ;;  %v8925_v46 = vld [vmem:[%s12259_s5 + $0x88c] ss:$16 sps:$4 sm:$0xff]  }
 0x372   : > { %3820 = vmatpush1.bf16.msra.mxu0 %v8908_v49  ;;  %4112 = vmatprep.mubr.bf16.mxu1 %v10336_v42  ;;  %v8920_v42 = vld [vmem:[%s12259_s5 + $0x880] ss:$16 sps:$4 sm:$0xff]  }
 0x373   : > { %4085 = vmatpush1.bf16.msra.mxu1 %v8911_v22  ;;  %3821 = vmatprep.subr.bf16.mxu0 %v8916_v23  ;;  %v9003_v49 = vld [vmem:[%s12263_s9 + $0x30] ss:$8 sps:$4 sm:$0xff]   ;;  %v9008_v22 = vld [vmem:[%s12263_s9 + $0x44] ss:$8 sps:$4 sm:$0xff]   ;;  %v9006_v23 = vld [vmem:[%s12263_s9 + $0x40] ss:$8 sps:$4 sm:$0xff]  }
 0x374   : > { %4086 = vmatprep.subr.bf16.mxu1 %v8919_v24  ;;  %v9011_v24 = vld [vmem:[%s12263_s9 + $0x54] ss:$8 sps:$4 sm:$0xff]  }
 0x376   : > { %3822 = vmatpush1.bf16.msra.mxu0 %v8914_v28  ;;  %v9009_v28 = vld [vmem:[%s12263_s9 + $0x50] ss:$8 sps:$4 sm:$0xff]  }
 0x377   : > { %4087 = vmatpush1.bf16.msra.mxu1 %v8917_v29  ;;  %3823 = vmatprep.subr.bf16.mxu0 %v8922_v34  ;;  %v9014_v29 = vld [vmem:[%s12263_s9 + $0x64] ss:$8 sps:$4 sm:$0xff]   ;;  %v9012_v34 = vld [vmem:[%s12263_s9 + $0x60] ss:$8 sps:$4 sm:$0xff]  }
 0x378   : > { %4088 = vmatprep.subr.bf16.mxu1 %v8925_v46  ;;  %v9017_v46 = vld [vmem:[%s12263_s9 + $0x74] ss:$8 sps:$4 sm:$0xff]  }
 0x37a   : > { %3824 = vmatpush1.bf16.msra.mxu0 %v8920_v42  ;;  %v9015_v42 = vld [vmem:[%s12263_s9 + $0x70] ss:$8 sps:$4 sm:$0xff]  }
 0x37b   : > { %4089 = vmatpush1.bf16.msra.mxu1 %v8923_v35  ;;  %3825 = vmatprep.subr.bf16.mxu0 %v8928_v26  ;;  %v9020_v35 = vld [vmem:[%s12263_s9 + $0x84] ss:$8 sps:$4 sm:$0xff]   ;;  %v9018_v26 = vld [vmem:[%s12263_s9 + $0x80] ss:$8 sps:$4 sm:$0xff]  }
 0x37c   : > { %4090 = vmatprep.subr.bf16.mxu1 %v8931_v38  ;;  %v9023_v38 = vld [vmem:[%s12263_s9 + $0x94] ss:$8 sps:$4 sm:$0xff]  }
 0x37e   : > { %3826 = vmatpush1.bf16.msra.mxu0 %v8926_v40  ;;  %v9021_v40 = vld [vmem:[%s12263_s9 + $0x90] ss:$8 sps:$4 sm:$0xff]  }
 0x37f   : > { %4091 = vmatpush1.bf16.msra.mxu1 %v8929_v43  ;;  %3827 = vmatprep.subr.bf16.mxu0 %v8934_v44  ;;  %v9026_v43 = vld [vmem:[%s12263_s9 + $0xa4] ss:$8 sps:$4 sm:$0xff]   ;;  %v9024_v44 = vld [vmem:[%s12263_s9 + $0xa0] ss:$8 sps:$4 sm:$0xff]  }
 0x380   : > { %4092 = vmatprep.subr.bf16.mxu1 %v8937_v47  ;;  %v9029_v47 = vld [vmem:[%s12263_s9 + $0xb4] ss:$8 sps:$4 sm:$0xff]  }
 0x382   : > { %3828 = vmatpush1.bf16.msra.mxu0 %v8932_v48  ;;  %v9027_v48 = vld [vmem:[%s12263_s9 + $0xb0] ss:$8 sps:$4 sm:$0xff]  }
 0x383   : > { %4093 = vmatpush1.bf16.msra.mxu1 %v8935_v52  ;;  %3829 = vmatprep.subr.bf16.mxu0 %v8940_v54 }
 0x384   : > { %4094 = vmatprep.subr.bf16.mxu1 %v8943_v55 }
 0x386   : > { %3830 = vmatpush1.bf16.msra.mxu0 %v8938_v56 }
 0x387   : > { %4095 = vmatpush1.bf16.msra.mxu1 %v8941_v36  ;;  %3831 = vmatprep.subr.bf16.mxu0 %v8946_v51 }
 0x388   : > { %4096 = vmatprep.subr.bf16.mxu1 %v8949_v59 }
 0x38a   : > { %3832 = vmatpush1.bf16.msra.mxu0 %v8944_v61 }
 0x38b   : > { %4097 = vmatpush1.bf16.msra.mxu1 %v8947_v62  ;;  %3833 = vmatprep.subr.bf16.mxu0 %v8952_v63 }
 0x38c   : > { %4098 = vmatprep.subr.bf16.mxu1 %v8955_v60 }
 0x38e   : > { %3834 = vmatpush1.bf16.msra.mxu0 %v8950_v0 }
 0x38f   : > { %4099 = vmatpush1.bf16.msra.mxu1 %v8953_v1  ;;  %3835 = vmatprep.subr.bf16.mxu0 %v8958_v17 }
 0x390   : > { %4100 = vmatprep.subr.bf16.mxu1 %v8961_v30 }
 0x392   : > { %3836 = vmatpush1.bf16.msra.mxu0 %v8956_v39 }
 0x393   : > { %4101 = vmatpush1.bf16.msra.mxu1 %v8959_v45  ;;  %3837 = vmatprep.subr.bf16.mxu0 %v8964_v4 }
 0x394   : > { %4102 = vmatprep.subr.bf16.mxu1 %v8967_v5 }
 0x396   : > { %3838 = vmatpush1.bf16.msra.mxu0 %v8962_v3 }
 0x397   : > { %4103 = vmatpush1.bf16.msra.mxu1 %v8965_v6  ;;  %3839 = vmatprep.subr.bf16.mxu0 %v8970_v12 }
 0x398   : > { %4104 = vmatprep.subr.bf16.mxu1 %v8973_v25 }
 0x39a   : > { %3840 = vmatpush1.bf16.msra.mxu0 %v8968_v33 }
 0x39b   : > { %4105 = vmatpush1.bf16.msra.mxu1 %v8971_v7  ;;  %3841 = vmatprep.subr.bf16.mxu0 %v8976_v9 }
 0x39c   : > { %4106 = vmatprep.subr.bf16.mxu1 %v8979_v41 }
 0x39e   : > { %3842 = vmatpush1.bf16.msra.mxu0 %v8974_v11 }
 0x39f   : > { %4107 = vmatpush1.bf16.msra.mxu1 %v8977_v13  ;;  %3843 = vmatprep.subr.bf16.mxu0 %v8982_v14  ;;  %v8992_v14 = vld [vmem:[%s12261_s7] sm:$0x7f]  }
 0x3a0   : > { %4108 = vmatprep.subr.bf16.mxu1 %v8985_v37  ;;  %v8993_v37 = vld [vmem:[%s12262_s8] sm:$0x7f]  }
 0x3a2   : > { %3844 = vmatpush1.bf16.msra.mxu0 %v8980_v31  ;;  %v9030_v31 = vld [vmem:[%s12263_s9 + $0xc0] ss:$8 sps:$4 sm:$0xff]  }
 0x3a3   : > { %4109 = vmatpush1.bf16.msra.mxu1 %v8983_v15  ;;  %3845 = vmatprep.subr.bf16.mxu0 %v8988_v16  ;;  %v9032_v15 = vld [vmem:[%s12263_s9 + $0xc4] ss:$8 sps:$4 sm:$0xff]   ;;  %v9033_v16 = vld [vmem:[%s12263_s9 + $0xd0] ss:$8 sps:$4 sm:$0xff]  }
 0x3a4   : > { %4110 = vmatprep.subr.bf16.mxu1 %v8991_v18  ;;  %v9038_v18 = vld [vmem:[%s12263_s9 + $0xe4] ss:$8 sps:$4 sm:$0xff]  }
 0x3a6   : > { %3846 = vmatpush1.bf16.msra.mxu0 %v8986_v19  ;;  %v9036_v19 = vld [vmem:[%s12263_s9 + $0xe0] ss:$8 sps:$4 sm:$0xff]  }
 0x3a7   : > { %4111 = vmatpush1.bf16.msra.mxu1 %v8989_v20  ;;  %5687 = vmatprep.subr.bf16.mxu0 %v8996_v27  ;;  %v9041_v20 = vld [vmem:[%s12263_s9 + $0xf4] ss:$8 sps:$4 sm:$0xff]   ;;  %v9044_v27 = vld [vmem:[%s12263_s9 + $0x104] ss:$8 sps:$4 sm:$0xff]  }
 0x3a9   : > { %3848 = vmatmul.mubr.bf16.vlgmr.msra.gmra.mrb[8].mxu0 %v10380_v58 }
 0x3aa   : > { %4113 = vmatmul.mubr.bf16.vlgmr.msra.gmra.mrb[40].mxu1 %v10380_v58  ;;  %3857 = vmatprep.mubr.bf16.mxu0 %v10308_v32  ;;  %v8999_v58 = vld [vmem:[%s12263_s9 + $0x14] ss:$8 sps:$4 sm:$0xff]  }
 0x3ab   : > { %4122 = vmatprep.mubr.bf16.mxu1 %v10308_v32  ;;  %5688 = vmatpush1.bf16.msra.mxu0 %v8994_v21  ;;  %v8997_v32 = vld [vmem:[%s12263_s9 + $0x10] ss:$8 sps:$4 sm:$0xff]  }
 0x3ac   : > { %5689 = vmatprep.subr.bf16.mxu0 %v8999_v58  ;;  %v9039_v21 = vld [vmem:[%s12263_s9 + $0xf0] ss:$8 sps:$4 sm:$0xff]  }
 0x3af   : > { %5690 = vmatpush1.bf16.msra.mxu0 %v8997_v32 }
 0x3b1   : > { %3858 = vmatmul.mubr.bf16.gmra.mrb[12].mxu0 %v10360_v53 }
 0x3b2   : > { %4123 = vmatmul.mubr.bf16.gmra.mrb[44].mxu1 %v10360_v53  ;;  %v9002_v53 = vld [vmem:[%s12263_s9 + $0x24] ss:$8 sps:$4 sm:$0xff]  }
 0x3b3   : > { %4195 = vmatprep.mubr.bf16.mxu1 %v9510_v2  ;;  %5691 = vmatprep.subr.bf16.mxu0 %v9002_v53 }
 0x3b4   : > { %5692 = vmatpush1.bf16.msra.mxu0 %v9000_v57 }
 0x3b5   : > { %5693 = vmatprep.subr.bf16.mxu0 %v9005_v50  ;;  %v4263_v50 = vld [vmem:[%s12260_s6] sm:$0x3] }
 0x3b8   : > { %5694 = vmatpush1.bf16.msra.mxu0 %v9003_v49  ;;  %v4268_v49 = vrot.slane %v4263_v50, %v10225_v8 }
 0x3b9   : > { %5695 = vmatprep.subr.bf16.mxu0 %v9008_v22 }
 0x3bc   : > { %5696 = vmatpush1.bf16.msra.mxu0 %v9006_v23  ;;  %v4272_v23 = vrot.slane %v4263_v50, %v10230_v10  ;;  %v9080_v50 = vld [vmem:[%s12263_s9 + $0x1c4] ss:$8 sps:$4 sm:$0xff]  }
 0x3bd   : > { %5697 = vmatprep.subr.bf16.mxu0 %v9011_v24 }
 0x3c0   : > { %5698 = vmatpush1.bf16.msra.mxu0 %v9009_v28 }
 0x3c1   : > { %5699 = vmatprep.subr.bf16.mxu0 %v9014_v29 }
 0x3c4   : > { %5700 = vmatpush1.bf16.msra.mxu0 %v9012_v34 }
 0x3c5   : > { %5701 = vmatprep.subr.bf16.mxu0 %v9017_v46 }
 0x3c8   : > { %5702 = vmatpush1.bf16.msra.mxu0 %v9015_v42 }
 0x3c9   : > { %5703 = vmatprep.subr.bf16.mxu0 %v9020_v35 }
 0x3cc   : > { %5704 = vmatpush1.bf16.msra.mxu0 %v9018_v26 }
 0x3cd   : > { %5705 = vmatprep.subr.bf16.mxu0 %v9023_v38 }
 0x3d0   : > { %5706 = vmatpush1.bf16.msra.mxu0 %v9021_v40 }
 0x3d1   : > { %5707 = vmatprep.subr.bf16.mxu0 %v9026_v43 }
 0x3d4   : > { %5708 = vmatpush1.bf16.msra.mxu0 %v9024_v44 }
 0x3d5   : > { %5709 = vmatprep.subr.bf16.mxu0 %v9029_v47 }
 0x3d8   : > { %5710 = vmatpush1.bf16.msra.mxu0 %v9027_v48 }
 0x3d9   : > { %5711 = vmatprep.subr.bf16.mxu0 %v9032_v15  ;;  %v9062_v15 = vld [vmem:[%s12263_s9 + $0x164] ss:$8 sps:$4 sm:$0xff]  }
 0x3dc   : > { %5712 = vmatpush1.bf16.msra.mxu0 %v9030_v31  ;;  %v9057_v31 = vld [vmem:[%s12263_s9 + $0x150] ss:$8 sps:$4 sm:$0xff]  }
 0x47c   : > { %v3849_v52 = vpop.f32.mrb[8].mxu0 }
 0x47d   : > { %v4114_v54 = vpop.f32.mrb[40].mxu1  ;;  %v3851_v55 = vpop.f32.mrb[9].mxu0 }
 0x47e   : > { %v4133_v56 = vmax.f32 %v3849_v52, %v4114_v54  ;;  %v4116_v36 = vpop.f32.mrb[41].mxu1  ;;  %v3853_v51 = vpop.f32.mrb[10].mxu0 }
 0x47f   : > { %v4134_v59 = vmax.f32 %v3851_v55, %v4116_v36  ;;  %v4118_v61 = vpop.f32.mrb[42].mxu1  ;;  %v3855_v62 = vpop.f32.mrb[11].mxu0  ;;  %v9047_v36 = vld [vmem:[%s12263_s9 + $0x114] ss:$8 sps:$4 sm:$0xff]  }
 0x480   : > { %v4135_v63 = vmax.f32 %v3853_v51, %v4118_v61  ;;  %v4120_v60 = vpop.f32.mrb[43].mxu1 }
 0x481   : > { %v4136_v0 = vmax.f32 %v3855_v62, %v4120_v60  ;;  %v9045_v60 = vld [vmem:[%s12263_s9 + $0x110] ss:$8 sps:$4 sm:$0xff]  }
 0x482   : > { %v4141_v1 = vpack.c.bf16 %v4135_v63, %v4133_v56  ;;  %v9042_v56 = vld [vmem:[%s12263_s9 + $0x100] ss:$8 sps:$4 sm:$0xff]  }
 0x483   : > { %v4142_v17 = vpack.c.bf16 %v4136_v0, %v4134_v59 }
 0x484   : > { %v3859_v30 = vpop.f32.mrb[12].mxu0 }
 0x485   : > { %v4124_v39 = vpop.f32.mrb[44].mxu1  ;;  %4163 = vmatprep.subr.bf16.mxu1 %v4142_v17  ;;  %v3861_v45 = vpop.f32.mrb[13].mxu0 }
 0x486   : > { %v4137_v4 = vmax.f32 %v3859_v30, %v4124_v39  ;;  %v4126_v5 = vpop.f32.mrb[45].mxu1  ;;  %4164 = vmatpush1.bf16.msra.mxu1 %v4141_v1  ;;  %v3863_v3 = vpop.f32.mrb[14].mxu0  ;;  %v9050_v39 = vld [vmem:[%s12263_s9 + $0x124] ss:$8 sps:$4 sm:$0xff]  }
 0x487   : > { %v4138_v6 = vmax.f32 %v3861_v45, %v4126_v5  ;;  %v4128_v12 = vpop.f32.mrb[46].mxu1  ;;  %v3865_v25 = vpop.f32.mrb[15].mxu0 }
 0x488   : > { %v4139_v33 = vmax.f32 %v3863_v3, %v4128_v12  ;;  %v4130_v7 = vpop.f32.mrb[47].mxu1 }
 0x489   : > { %v4140_v9 = vmax.f32 %v3865_v25, %v4130_v7  ;;  %v9048_v7 = vld [vmem:[%s12263_s9 + $0x120] ss:$8 sps:$4 sm:$0xff]  }
 0x48a   : > { %v4143_v41 = vpack.c.bf16 %v4139_v33, %v4137_v4 }
 0x48b   : > { %v4144_v11 = vpack.c.bf16 %v4140_v9, %v4138_v6 }
 0x48c   : > { %v4158_v13 = vsel %vm4156_vm5, %v4143_v41, 0  ;;  %v9053_v41 = vld [vmem:[%s12263_s9 + $0x134] ss:$8 sps:$4 sm:$0xff]  }
 0x48d   : > { %7699 = vmatprep.subr.msk.bf16.mxu1 %vm4156_vm5, %v4144_v11 }
 0x48e   : > { %4166 = vmatpush1.bf16.msra.mxu1 %v4158_v13 }
 0x48f   : > { %4216 = vmatprep.subr.bf16.mxu1 %v4142_v17 }
 0x491   : > { %7700 = vmatmul.mubr.msk.bf16.vlgmr.msra.gmra.mrb[48].mxu1 %vm4152_vm6, %v8992_v14  ;;  %v9054_v14 = vld [vmem:[%s12263_s9 + $0x140] ss:$8 sps:$4 sm:$0xff]  }
 0x492   : > { %4217 = vmatpush1.bf16.msra.mxu1 %v4141_v1  ;;  %4248 = vmatprep.mubr.bf16.mxu1 %v9510_v2  ;;  %v9035_v2 = vld [vmem:[%s12263_s9 + $0xd4] ss:$8 sps:$4 sm:$0xff]  }
 0x493   : > { %7702 = vmatprep.subr.msk.bf16.mxu1 %vm4156_vm5, %v4144_v11  ;;  %5713 = vmatprep.subr.bf16.mxu0 %v9035_v2  ;;  %v9051_v11 = vld [vmem:[%s12263_s9 + $0x130] ss:$8 sps:$4 sm:$0xff]   ;;  %v9060_v2 = vld [vmem:[%s12263_s9 + $0x160] ss:$8 sps:$4 sm:$0xff]  }
 0x494   : > { %5714 = vmatpush1.bf16.msra.mxu0 %v9033_v16  ;;  %v9065_v16 = vld [vmem:[%s12263_s9 + $0x174] ss:$8 sps:$4 sm:$0xff]  }
 0x495   : > { %5715 = vmatprep.subr.bf16.mxu0 %v9038_v18  ;;  %v9063_v18 = vld [vmem:[%s12263_s9 + $0x170] ss:$8 sps:$4 sm:$0xff]  }
 0x496   : > { %4219 = vmatpush1.bf16.msra.mxu1 %v4158_v13  ;;  %v9056_v13 = vld [vmem:[%s12263_s9 + $0x144] ss:$8 sps:$4 sm:$0xff]  }
 0x498   : > { %5716 = vmatpush1.bf16.msra.mxu0 %v9036_v19  ;;  %v9068_v19 = vld [vmem:[%s12263_s9 + $0x184] ss:$8 sps:$4 sm:$0xff]  }
 0x499   : > { %7703 = vmatmul.mubr.msk.bf16.vlgmr.msra.gmra.mrb[52].mxu1 %vm4152_vm6, %v8993_v37  ;;  %5717 = vmatprep.subr.bf16.mxu0 %v9041_v20  ;;  %v9059_v37 = vld [vmem:[%s12263_s9 + $0x154] ss:$8 sps:$4 sm:$0xff]   ;;  %v9066_v20 = vld [vmem:[%s12263_s9 + $0x180] ss:$8 sps:$4 sm:$0xff]  }
 0x49c   : > { %5718 = vmatpush1.bf16.msra.mxu0 %v9039_v21  ;;  %v9071_v21 = vld [vmem:[%s12263_s9 + $0x194] ss:$8 sps:$4 sm:$0xff]  }
 0x49d   : > { %5728 = vmatprep.subr.bf16.mxu0 %v9044_v27  ;;  %v9069_v27 = vld [vmem:[%s12263_s9 + $0x190] ss:$8 sps:$4 sm:$0xff]  }
 0x564   : > { %v4197_v58 = vpop.f32.mrb[48].mxu1 }
 0x565   : > { %v4199_v32 = vpop.f32.mrb[49].mxu1 }
 0x566   : > { %v4201_v53 = vpop.f32.mrb[50].mxu1 }
 0x567   : > { %v4203_v57 = vpop.f32.mrb[51].mxu1 }
 0x56c   : > { %v4250_v22 = vpop.f32.mrb[52].mxu1 }
 0x56d   : > { %v4259_v24 = vmax.f32 %v4197_v58, %v4250_v22  ;;  %v4252_v28 = vpop.f32.mrb[53].mxu1  ;;  %v9074_v58 = vld [vmem:[%s12263_s9 + $0x1a4] ss:$8 sps:$4 sm:$0xff]   ;;  %v9083_v22 = vld [vmem:[%s12263_s9 + $0x1d4] ss:$8 sps:$4 sm:$0xff]  }
 0x56e   : > { %v4260_v29 = vmax.f32 %v4199_v32, %v4252_v28  ;;  %v4254_v34 = vpop.f32.mrb[54].mxu1  ;;  %v9072_v32 = vld [vmem:[%s12263_s9 + $0x1a0] ss:$8 sps:$4 sm:$0xff]  }
 0x56f   : > { %v4275_v46 = vadd.f32 %v4268_v49, %v4259_v24  ;;  %v4261_v42 = vmax.f32 %v4201_v53, %v4254_v34  ;;  %v4256_v35 = vpop.f32.mrb[55].mxu1  ;;  %v9077_v53 = vld [vmem:[%s12263_s9 + $0x1b4] ss:$8 sps:$4 sm:$0xff]   ;;  %v9086_v24 = vld [vmem:[%s12263_s9 + $0x1e4] ss:$8 sps:$4 sm:$0xff]  }
 0x570   : > { %v4276_v26 = vadd.f32 %v4272_v23, %v4260_v29  ;;  %v4262_v38 = vmax.f32 %v4203_v57, %v4256_v35  ;;  %v9075_v57 = vld [vmem:[%s12263_s9 + $0x1b0] ss:$8 sps:$4 sm:$0xff]   ;;  %v9084_v28 = vld [vmem:[%s12263_s9 + $0x1e0] ss:$8 sps:$4 sm:$0xff]   ;;  %v9089_v29 = vld [vmem:[%s12263_s9 + $0x1f4] ss:$8 sps:$4 sm:$0xff]  }
 0x571   : > { %v4277_v40 = vadd.f32 %v4268_v49, %v4261_v42  ;;  %v4279_v44 = vmax.f32 %v4275_v46, 0.0  ;;  %v9078_v49 = vld [vmem:[%s12263_s9 + $0x1c0] ss:$8 sps:$4 sm:$0xff]   ;;  %v9087_v34 = vld [vmem:[%s12263_s9 + $0x1f0] ss:$8 sps:$4 sm:$0xff]  }
 0x572   : > { %v4278_v43 = vadd.f32 %v4272_v23, %v4262_v38  ;;  %v4280_v48 = vmax.f32 %v4276_v26, 0.0  ;;  %v9081_v23 = vld [vmem:[%s12263_s9 + $0x1d0] ss:$8 sps:$4 sm:$0xff]   ;;  %v9092_v42 = vld [vmem:[%s12263_s9 + $0x204] ss:$8 sps:$4 sm:$0xff]  }
 0x573   : > { %v4281_v47 = vmax.f32 %v4277_v40, 0.0  ;;  %v9090_v35 = vld [vmem:[%s12263_s9 + $0x200] ss:$8 sps:$4 sm:$0xff]   ;;  %v9095_v38 = vld [vmem:[%s12263_s9 + $0x214] ss:$8 sps:$4 sm:$0xff]  }
 0x574   : > { %v4282_v52 = vmax.f32 %v4278_v43, 0.0  ;;  %v9093_v43 = vld [vmem:[%s12263_s9 + $0x210] ss:$8 sps:$4 sm:$0xff]  }
 0x575   : > { %v11228_v54 = vpack.c.bf16 %v4281_v47, %v4279_v44  ;;  %v9098_v44 = vld [vmem:[%s12263_s9 + $0x224] ss:$8 sps:$4 sm:$0xff]   ;;  %v9096_v47 = vld [vmem:[%s12263_s9 + $0x220] ss:$8 sps:$4 sm:$0xff]  }
 0x576   : > { %v11230_v55 = vpack.c.bf16 %v4282_v52, %v4280_v48  ;;  %v9101_v48 = vld [vmem:[%s12263_s9 + $0x234] ss:$8 sps:$4 sm:$0xff]   ;;  %v9099_v52 = vld [vmem:[%s12263_s9 + $0x230] ss:$8 sps:$4 sm:$0xff]  }
 0x577   : > { %v11239_v51 = vshrl.u32 %v11228_v54, 16  ;;  %v11242_v59 = vshll.u32 %v11228_v54, 16 }
 0x578   : > { %5719 = vmatprep.mubr.bf16.mxu0 %v11230_v55  ;;  %v4293_v61 = vshrl.u32 %v11230_v55, 16  ;;  %v4295_v62 = vshll.u32 %v11230_v55, 16  ;;  %v4304_v40 = vrot.slane %v11230_v55, 1 }
 0x579   : > { %5720 = vmatmul.mubr.bf16.vlgmr.msra.gmra.mrb[16].mxu0 %v11228_v54  ;;  %v4307_v63 = vrot.slane %v11239_v51, 1  ;;  %v4308_v30 = vrot.slane %v11242_v59, 2  ;;  %v4319_v5 = vrot.slane %v11239_v51, 2  ;;  %v4320_v25 = vrot.slane %v11242_v59, 3 }
 0x57a   : > { %5729 = vmatpush1.bf16.msra.mxu0 %v9042_v56  ;;  %v4297_v0 = vrot.slane %v4295_v62, 1  ;;  %v4310_v1 = vrot.slane %v4293_v61, 1  ;;  %v4311_v17 = vrot.slane %v4295_v62, 2  ;;  %v4322_v45 = vrot.slane %v4293_v61, 2  ;;  %v9104_v56 = vld [vmem:[%s12263_s9 + $0x244] ss:$8 sps:$4 sm:$0xff]  }
 0x57b   : > { %5730 = vmatprep.subr.bf16.mxu0 %v9047_v36  ;;  %v4323_v4 = vrot.slane %v4295_v62, 3  ;;  %v11259_v12 = vor.u32 %v4308_v30, %v4307_v63  ;;  %v11267_v9 = vor.u32 %v4320_v25, %v4319_v5  ;;  %v4290_v46 = vrot.slane %v11242_v59, 1  ;;  %v9102_v36 = vld [vmem:[%s12263_s9 + $0x240] ss:$8 sps:$4 sm:$0xff]   ;;  %v9105_v59 = vld [vmem:[%s12263_s9 + $0x250] ss:$8 sps:$4 sm:$0xff]  }
 0x57c   : > { %v4298_v3 = vor.u32 %v4297_v0, %v4293_v61  ;;  %v11257_v6 = vor.u32 %v4311_v17, %v4310_v1  ;;  %v9110_v61 = vld [vmem:[%s12263_s9 + $0x264] ss:$8 sps:$4 sm:$0xff]   ;;  %v9108_v62 = vld [vmem:[%s12263_s9 + $0x260] ss:$8 sps:$4 sm:$0xff]   ;;  %v9113_v63 = vld [vmem:[%s12263_s9 + $0x274] ss:$8 sps:$4 sm:$0xff]  }
 0x57d   : > { %v11262_v33 = vor.u32 %v4323_v4, %v4322_v45  ;;  %v4291_v26 = vor.u32 %v4290_v46, %v11239_v51  ;;  %v9107_v51 = vld [vmem:[%s12263_s9 + $0x254] ss:$8 sps:$4 sm:$0xff]   ;;  %v9116_v0 = vld [vmem:[%s12263_s9 + $0x284] ss:$8 sps:$4 sm:$0xff]   ;;  %v9114_v1 = vld [vmem:[%s12263_s9 + $0x280] ss:$8 sps:$4 sm:$0xff]  }
 0x57e   : > { %5731 = vmatpush1.bf16.msra.mxu0 %v9045_v60  ;;  %5760 = vmatprep.mubr.bf16.mxu0 %v4298_v3  ;;  %v9111_v60 = vld [vmem:[%s12263_s9 + $0x270] ss:$8 sps:$4 sm:$0xff]   ;;  %v9119_v17 = vld [vmem:[%s12263_s9 + $0x294] ss:$8 sps:$4 sm:$0xff]   ;;  %v9120_v45 = vld [vmem:[%s12263_s9 + $0x2a0] ss:$8 sps:$4 sm:$0xff]  }
 0x57f   : > { %5732 = vmatprep.subr.bf16.mxu0 %v9050_v39  ;;  %v9117_v30 = vld [vmem:[%s12263_s9 + $0x290] ss:$8 sps:$4 sm:$0xff]   ;;  %v9122_v39 = vld [vmem:[%s12263_s9 + $0x2a4] ss:$8 sps:$4 sm:$0xff]   ;;  %v9125_v4 = vld [vmem:[%s12263_s9 + $0x2b4] ss:$8 sps:$4 sm:$0xff]  }
 0x580   : > { %v9123_v5 = vld [vmem:[%s12263_s9 + $0x2b0] ss:$8 sps:$4 sm:$0xff]   ;;  %v9128_v3 = vld [vmem:[%s12263_s9 + $0x2c4] ss:$8 sps:$4 sm:$0xff]   ;;  %v9126_v25 = vld [vmem:[%s12263_s9 + $0x2c0] ss:$8 sps:$4 sm:$0xff]  }
 0x581   : > { %v9168_v46 = vld [vmem:[%s12263_s9 + $0x3a0] ss:$8 sps:$4 sm:$0xff]  }
 0x582   : > { %5733 = vmatpush1.bf16.msra.mxu0 %v9048_v7  ;;  %v9131_v7 = vld [vmem:[%s12263_s9 + $0x2d4] ss:$8 sps:$4 sm:$0xff]  }
 0x583   : > { %5734 = vmatprep.subr.bf16.mxu0 %v9053_v41  ;;  %v9129_v41 = vld [vmem:[%s12263_s9 + $0x2d0] ss:$8 sps:$4 sm:$0xff]  }
 0x586   : > { %5735 = vmatpush1.bf16.msra.mxu0 %v9051_v11  ;;  %v9134_v11 = vld [vmem:[%s12263_s9 + $0x2e4] ss:$8 sps:$4 sm:$0xff]  }
 0x587   : > { %5736 = vmatprep.subr.bf16.mxu0 %v9056_v13  ;;  %v9132_v13 = vld [vmem:[%s12263_s9 + $0x2e0] ss:$8 sps:$4 sm:$0xff]  }
 0x58a   : > { %5737 = vmatpush1.bf16.msra.mxu0 %v9054_v14  ;;  %v9137_v14 = vld [vmem:[%s12263_s9 + $0x2f4] ss:$8 sps:$4 sm:$0xff]  }
 0x58b   : > { %5738 = vmatprep.subr.bf16.mxu0 %v9059_v37  ;;  %v9135_v37 = vld [vmem:[%s12263_s9 + $0x2f0] ss:$8 sps:$4 sm:$0xff]  }
 0x58e   : > { %5739 = vmatpush1.bf16.msra.mxu0 %v9057_v31  ;;  %v9140_v31 = vld [vmem:[%s12263_s9 + $0x304] ss:$8 sps:$4 sm:$0xff]  }
 0x58f   : > { %5740 = vmatprep.subr.bf16.mxu0 %v9062_v15  ;;  %v9138_v15 = vld [vmem:[%s12263_s9 + $0x300] ss:$8 sps:$4 sm:$0xff]  }
 0x592   : > { %5741 = vmatpush1.bf16.msra.mxu0 %v9060_v2  ;;  %v4303_v2 = vrot.slane %v11228_v54, 1 }
 0x593   : > { %5742 = vmatprep.subr.bf16.mxu0 %v9065_v16  ;;  %v9143_v16 = vld [vmem:[%s12263_s9 + $0x314] ss:$8 sps:$4 sm:$0xff]  }
 0x596   : > { %5743 = vmatpush1.bf16.msra.mxu0 %v9063_v18  ;;  %v9141_v18 = vld [vmem:[%s12263_s9 + $0x310] ss:$8 sps:$4 sm:$0xff]  }
 0x597   : > { %5744 = vmatprep.subr.bf16.mxu0 %v9068_v19  ;;  %v9146_v19 = vld [vmem:[%s12263_s9 + $0x324] ss:$8 sps:$4 sm:$0xff]  }
 0x59a   : > { %5745 = vmatpush1.bf16.msra.mxu0 %v9066_v20  ;;  %v9144_v20 = vld [vmem:[%s12263_s9 + $0x320] ss:$8 sps:$4 sm:$0xff]  }
 0x59b   : > { %5746 = vmatprep.subr.bf16.mxu0 %v9071_v21  ;;  %v9149_v21 = vld [vmem:[%s12263_s9 + $0x334] ss:$8 sps:$4 sm:$0xff]  }
 0x59e   : > { %5747 = vmatpush1.bf16.msra.mxu0 %v9069_v27  ;;  %v9152_v27 = vld [vmem:[%s12263_s9 + $0x344] ss:$8 sps:$4 sm:$0xff]  }
 0x59f   : > { %5748 = vmatprep.subr.bf16.mxu0 %v9074_v58  ;;  %v9150_v58 = vld [vmem:[%s12263_s9 + $0x340] ss:$8 sps:$4 sm:$0xff]  }
 0x5a2   : > { %5749 = vmatpush1.bf16.msra.mxu0 %v9072_v32  ;;  %v9155_v32 = vld [vmem:[%s12263_s9 + $0x354] ss:$8 sps:$4 sm:$0xff]  }
 0x5a3   : > { %5750 = vmatprep.subr.bf16.mxu0 %v9077_v53  ;;  %v9153_v53 = vld [vmem:[%s12263_s9 + $0x350] ss:$8 sps:$4 sm:$0xff]  }
 0x5a6   : > { %5751 = vmatpush1.bf16.msra.mxu0 %v9075_v57  ;;  %v9158_v57 = vld [vmem:[%s12263_s9 + $0x364] ss:$8 sps:$4 sm:$0xff]  }
 0x5a7   : > { %5752 = vmatprep.subr.bf16.mxu0 %v9080_v50  ;;  %v9156_v50 = vld [vmem:[%s12263_s9 + $0x360] ss:$8 sps:$4 sm:$0xff]  }
 0x5aa   : > { %5753 = vmatpush1.bf16.msra.mxu0 %v9078_v49  ;;  %v9161_v49 = vld [vmem:[%s12263_s9 + $0x374] ss:$8 sps:$4 sm:$0xff]  }
 0x5ab   : > { %5754 = vmatprep.subr.bf16.mxu0 %v9083_v22  ;;  %v9159_v22 = vld [vmem:[%s12263_s9 + $0x370] ss:$8 sps:$4 sm:$0xff]  }
 0x5ae   : > { %5755 = vmatpush1.bf16.msra.mxu0 %v9081_v23  ;;  %v9164_v23 = vld [vmem:[%s12263_s9 + $0x384] ss:$8 sps:$4 sm:$0xff]  }
 0x5af   : > { %5756 = vmatprep.subr.bf16.mxu0 %v9086_v24  ;;  %v9162_v24 = vld [vmem:[%s12263_s9 + $0x380] ss:$8 sps:$4 sm:$0xff]  }
 0x5b2   : > { %5757 = vmatpush1.bf16.msra.mxu0 %v9084_v28  ;;  %v9167_v28 = vld [vmem:[%s12263_s9 + $0x394] ss:$8 sps:$4 sm:$0xff]  }
 0x5b3   : > { %5758 = vmatprep.subr.bf16.mxu0 %v9089_v29  ;;  %v9165_v29 = vld [vmem:[%s12263_s9 + $0x390] ss:$8 sps:$4 sm:$0xff]  }
 0x5b6   : > { %5759 = vmatpush1.bf16.msra.mxu0 %v9087_v34  ;;  %v9170_v34 = vld [vmem:[%s12263_s9 + $0x3a4] ss:$8 sps:$4 sm:$0xff]  }
 0x5b7   : > { %5769 = vmatprep.subr.bf16.mxu0 %v9092_v42  ;;  %v9173_v42 = vld [vmem:[%s12263_s9 + $0x3b4] ss:$8 sps:$4 sm:$0xff]  }
 0x5b9   : > { %5761 = vmatmul.mubr.bf16.vlgmr.msra.gmra.mrb[16].mxu0 %v4291_v26  ;;  %v9176_v26 = vld [vmem:[%s12263_s9 + $0x3c4] ss:$8 sps:$4 sm:$0xff]  }
 0x5ba   : > { %5770 = vmatpush1.bf16.msra.mxu0 %v9090_v35  ;;  %5801 = vmatprep.mubr.bf16.mxu0 %v4304_v40  ;;  %v9171_v35 = vld [vmem:[%s12263_s9 + $0x3b0] ss:$8 sps:$4 sm:$0xff]   ;;  %v9179_v40 = vld [vmem:[%s12263_s9 + $0x3d4] ss:$8 sps:$4 sm:$0xff]  }
 0x5bb   : > { %5771 = vmatprep.subr.bf16.mxu0 %v9095_v38  ;;  %v9174_v38 = vld [vmem:[%s12263_s9 + $0x3c0] ss:$8 sps:$4 sm:$0xff]  }
 0x5be   : > { %5772 = vmatpush1.bf16.msra.mxu0 %v9093_v43  ;;  %v9177_v43 = vld [vmem:[%s12263_s9 + $0x3d0] ss:$8 sps:$4 sm:$0xff]  }
 0x5bf   : > { %5773 = vmatprep.subr.bf16.mxu0 %v9098_v44  ;;  %v9182_v44 = vld [vmem:[%s12263_s9 + $0x3e4] ss:$8 sps:$4 sm:$0xff]  }
 0x5c2   : > { %5774 = vmatpush1.bf16.msra.mxu0 %v9096_v47  ;;  %v9180_v47 = vld [vmem:[%s12263_s9 + $0x3e0] ss:$8 sps:$4 sm:$0xff]  }
 0x5c3   : > { %5775 = vmatprep.subr.bf16.mxu0 %v9101_v48  ;;  %v9185_v48 = vld [vmem:[%s12263_s9 + $0x3f4] ss:$8 sps:$4 sm:$0xff]  }
 0x5c6   : > { %5776 = vmatpush1.bf16.msra.mxu0 %v9099_v52  ;;  %v9183_v52 = vld [vmem:[%s12263_s9 + $0x3f0] ss:$8 sps:$4 sm:$0xff]  }
 0x5c7   : > { %5777 = vmatprep.subr.bf16.mxu0 %v9104_v56  ;;  %v9188_v56 = vld [vmem:[%s12263_s9 + $0x404] ss:$8 sps:$4 sm:$0xff]  }
 0x5ca   : > { %5778 = vmatpush1.bf16.msra.mxu0 %v9102_v36  ;;  %v9186_v36 = vld [vmem:[%s12263_s9 + $0x400] ss:$8 sps:$4 sm:$0xff]  }
 0x5cb   : > { %5779 = vmatprep.subr.bf16.mxu0 %v9107_v51  ;;  %v9191_v51 = vld [vmem:[%s12263_s9 + $0x414] ss:$8 sps:$4 sm:$0xff]  }
 0x5ce   : > { %5780 = vmatpush1.bf16.msra.mxu0 %v9105_v59  ;;  %v4316_v59 = vrot.slane %v11230_v55, 2 }
 0x5cf   : > { %5781 = vmatprep.subr.bf16.mxu0 %v9110_v61  ;;  %v9189_v61 = vld [vmem:[%s12263_s9 + $0x410] ss:$8 sps:$4 sm:$0xff]  }
 0x5d2   : > { %5782 = vmatpush1.bf16.msra.mxu0 %v9108_v62  ;;  %v9194_v62 = vld [vmem:[%s12263_s9 + $0x424] ss:$8 sps:$4 sm:$0xff]  }
 0x5d3   : > { %5783 = vmatprep.subr.bf16.mxu0 %v9113_v63  ;;  %v9192_v63 = vld [vmem:[%s12263_s9 + $0x420] ss:$8 sps:$4 sm:$0xff]  }
 0x5d6   : > { %5784 = vmatpush1.bf16.msra.mxu0 %v9111_v60  ;;  %v9195_v60 = vld [vmem:[%s12263_s9 + $0x430] ss:$8 sps:$4 sm:$0xff]  }
 0x5d7   : > { %5785 = vmatprep.subr.bf16.mxu0 %v9116_v0  ;;  %v9200_v0 = vld [vmem:[%s12263_s9 + $0x444] ss:$8 sps:$4 sm:$0xff]  }
 0x5da   : > { %5786 = vmatpush1.bf16.msra.mxu0 %v9114_v1  ;;  %v9198_v1 = vld [vmem:[%s12263_s9 + $0x440] ss:$8 sps:$4 sm:$0xff]  }
 0x5db   : > { %5787 = vmatprep.subr.bf16.mxu0 %v9119_v17  ;;  %v9203_v17 = vld [vmem:[%s12263_s9 + $0x454] ss:$8 sps:$4 sm:$0xff]  }
 0x5de   : > { %5788 = vmatpush1.bf16.msra.mxu0 %v9117_v30  ;;  %v9201_v30 = vld [vmem:[%s12263_s9 + $0x450] ss:$8 sps:$4 sm:$0xff]  }
 0x5df   : > { %5789 = vmatprep.subr.bf16.mxu0 %v9122_v39  ;;  %v9206_v39 = vld [vmem:[%s12263_s9 + $0x464] ss:$8 sps:$4 sm:$0xff]  }
 0x5e2   : > { %5790 = vmatpush1.bf16.msra.mxu0 %v9120_v45  ;;  %v9204_v45 = vld [vmem:[%s12263_s9 + $0x460] ss:$8 sps:$4 sm:$0xff]  }
 0x5e3   : > { %5791 = vmatprep.subr.bf16.mxu0 %v9125_v4  ;;  %v9209_v4 = vld [vmem:[%s12263_s9 + $0x474] ss:$8 sps:$4 sm:$0xff]  }
 0x5e6   : > { %5792 = vmatpush1.bf16.msra.mxu0 %v9123_v5  ;;  %v9207_v5 = vld [vmem:[%s12263_s9 + $0x470] ss:$8 sps:$4 sm:$0xff]  }
 0x5e7   : > { %5793 = vmatprep.subr.bf16.mxu0 %v9128_v3  ;;  %v9212_v3 = vld [vmem:[%s12263_s9 + $0x484] ss:$8 sps:$4 sm:$0xff]  }
 0x5ea   : > { %5794 = vmatpush1.bf16.msra.mxu0 %v9126_v25  ;;  %v9210_v25 = vld [vmem:[%s12263_s9 + $0x480] ss:$8 sps:$4 sm:$0xff]  }
 0x5eb   : > { %5795 = vmatprep.subr.bf16.mxu0 %v9131_v7  ;;  %v9215_v7 = vld [vmem:[%s12263_s9 + $0x494] ss:$8 sps:$4 sm:$0xff]  }
 0x5ee   : > { %5796 = vmatpush1.bf16.msra.mxu0 %v9129_v41  ;;  %v9213_v41 = vld [vmem:[%s12263_s9 + $0x490] ss:$8 sps:$4 sm:$0xff]  }
 0x5ef   : > { %5797 = vmatprep.subr.bf16.mxu0 %v9134_v11  ;;  %v9218_v11 = vld [vmem:[%s12263_s9 + $0x4a4] ss:$8 sps:$4 sm:$0xff]  }
 0x5f2   : > { %5798 = vmatpush1.bf16.msra.mxu0 %v9132_v13  ;;  %v9216_v13 = vld [vmem:[%s12263_s9 + $0x4a0] ss:$8 sps:$4 sm:$0xff]  }
 0x5f3   : > { %5799 = vmatprep.subr.bf16.mxu0 %v9137_v14  ;;  %v9221_v14 = vld [vmem:[%s12263_s9 + $0x4b4] ss:$8 sps:$4 sm:$0xff]  }
 0x5f6   : > { %5800 = vmatpush1.bf16.msra.mxu0 %v9135_v37  ;;  %v9219_v37 = vld [vmem:[%s12263_s9 + $0x4b0] ss:$8 sps:$4 sm:$0xff]  }
 0x5f7   : > { %5810 = vmatprep.subr.bf16.mxu0 %v9140_v31  ;;  %v9224_v31 = vld [vmem:[%s12263_s9 + $0x4c4] ss:$8 sps:$4 sm:$0xff]  }
 0x5f9   : > { %5802 = vmatmul.mubr.bf16.vlgmr.msra.gmra.mrb[16].mxu0 %v4303_v2  ;;  %v9227_v2 = vld [vmem:[%s12263_s9 + $0x4d4] ss:$8 sps:$4 sm:$0xff]  }
 0x5fa   : > { %5811 = vmatpush1.bf16.msra.mxu0 %v9138_v15  ;;  %5842 = vmatprep.mubr.bf16.mxu0 %v11257_v6  ;;  %v9147_v6 = vld [vmem:[%s12263_s9 + $0x330] ss:$8 sps:$4 sm:$0xff]   ;;  %v9222_v15 = vld [vmem:[%s12263_s9 + $0x4c0] ss:$8 sps:$4 sm:$0xff]  }
 0x5fb   : > { %5812 = vmatprep.subr.bf16.mxu0 %v9143_v16  ;;  %v9225_v16 = vld [vmem:[%s12263_s9 + $0x4d0] ss:$8 sps:$4 sm:$0xff]  }
 0x5fe   : > { %5813 = vmatpush1.bf16.msra.mxu0 %v9141_v18  ;;  %v9230_v18 = vld [vmem:[%s12263_s9 + $0x4e4] ss:$8 sps:$4 sm:$0xff]  }
 0x5ff   : > { %5814 = vmatprep.subr.bf16.mxu0 %v9146_v19  ;;  %v9228_v19 = vld [vmem:[%s12263_s9 + $0x4e0] ss:$8 sps:$4 sm:$0xff]  }
 0x602   : > { %5815 = vmatpush1.bf16.msra.mxu0 %v9144_v20  ;;  %v9233_v20 = vld [vmem:[%s12263_s9 + $0x4f4] ss:$8 sps:$4 sm:$0xff]  }
 0x603   : > { %5816 = vmatprep.subr.bf16.mxu0 %v9149_v21  ;;  %v9231_v21 = vld [vmem:[%s12263_s9 + $0x4f0] ss:$8 sps:$4 sm:$0xff]  }
 0x606   : > { %5817 = vmatpush1.bf16.msra.mxu0 %v9147_v6  ;;  %v9236_v6 = vld [vmem:[%s12263_s9 + $0x504] ss:$8 sps:$4 sm:$0xff]  }
 0x607   : > { %5818 = vmatprep.subr.bf16.mxu0 %v9152_v27  ;;  %v9234_v27 = vld [vmem:[%s12263_s9 + $0x500] ss:$8 sps:$4 sm:$0xff]  }
 0x60a   : > { %5819 = vmatpush1.bf16.msra.mxu0 %v9150_v58  ;;  %v4315_v58 = vrot.slane %v11228_v54, 2 }
 0x60b   : > { %5820 = vmatprep.subr.bf16.mxu0 %v9155_v32  ;;  %v9239_v32 = vld [vmem:[%s12263_s9 + $0x514] ss:$8 sps:$4 sm:$0xff]  }
 0x60e   : > { %5821 = vmatpush1.bf16.msra.mxu0 %v9153_v53  ;;  %v9330_v53 = vld [vmem:[%s12265_s11 + $0x40] sm:$0xff]  }
 0x60f   : > { %5822 = vmatprep.subr.bf16.mxu0 %v9158_v57  ;;  %v9331_v57 = vld [vmem:[%s12265_s11] sm:$0xff]   ;;  %8044 = vmatprep.subr.bf16.mxu1 %v9330_v53  ;;  %v9309_v53 = vld [vmem:[%s12263_s9 + $0x690] ss:$8 sps:$4 sm:$0xff]  }
 0x610   : > { %8045 = vmatpush3.bf16.msra.mxu1 %v9331_v57  ;;  %v9314_v57 = vld [vmem:[%s12263_s9 + $0x6a4] ss:$8 sps:$4 sm:$0xff]  }
 0x612   : > { %5823 = vmatpush1.bf16.msra.mxu0 %v9156_v50  ;;  %v9332_v50 = vld [vmem:[%s12265_s11 + $0x48] sm:$0xff]  }
 0x613   : > { %5824 = vmatprep.subr.bf16.mxu0 %v9161_v49  ;;  %v9237_v49 = vld [vmem:[%s12263_s9 + $0x510] ss:$8 sps:$4 sm:$0xff]   ;;  %8046 = vmatprep.subr.bf16.mxu1 %v9332_v50  ;;  %v9312_v50 = vld [vmem:[%s12263_s9 + $0x6a0] ss:$8 sps:$4 sm:$0xff]  }
 0x616   : > { %5825 = vmatpush1.bf16.msra.mxu0 %v9159_v22  ;;  %v9242_v22 = vld [vmem:[%s12263_s9 + $0x524] ss:$8 sps:$4 sm:$0xff]  }
 0x617   : > { %5826 = vmatprep.subr.bf16.mxu0 %v9164_v23  ;;  %v9333_v23 = vld [vmem:[%s12265_s11 + $0x8] sm:$0xff]  }
 0x618   : > { %8047 = vmatpush3.bf16.msra.mxu1 %v9333_v23  ;;  %v9320_v23 = vld [vmem:[%s12263_s9 + $0x6c4] ss:$8 sps:$4 sm:$0xff]  }
 0x61a   : > { %5827 = vmatpush1.bf16.msra.mxu0 %v9162_v24  ;;  %v9240_v24 = vld [vmem:[%s12263_s9 + $0x520] ss:$8 sps:$4 sm:$0xff]  }
 0x61b   : > { %5828 = vmatprep.subr.bf16.mxu0 %v9167_v28  ;;  %v9245_v28 = vld [vmem:[%s12263_s9 + $0x534] ss:$8 sps:$4 sm:$0xff]  }
 0x61e   : > { %5829 = vmatpush1.bf16.msra.mxu0 %v9165_v29  ;;  %v9335_v29 = vld [vmem:[%s12265_s11 + $0x10] sm:$0xff]  }
 0x61f   : > { %5830 = vmatprep.subr.bf16.mxu0 %v9170_v34  ;;  %v9336_v34 = vld [vmem:[%s12265_s11 + $0x58] sm:$0xff]  }
 0x622   : > { %5831 = vmatpush1.bf16.msra.mxu0 %v9168_v46  ;;  %v9243_v46 = vld [vmem:[%s12263_s9 + $0x530] ss:$8 sps:$4 sm:$0xff]  }
 0x623   : > { %5832 = vmatprep.subr.bf16.mxu0 %v9173_v42  ;;  %v9248_v42 = vld [vmem:[%s12263_s9 + $0x544] ss:$8 sps:$4 sm:$0xff]  }
 0x626   : > { %5833 = vmatpush1.bf16.msra.mxu0 %v9171_v35  ;;  %v9337_v35 = vld [vmem:[%s12265_s11 + $0x18] sm:$0xff]  }
 0x627   : > { %5834 = vmatprep.subr.bf16.mxu0 %v9176_v26  ;;  %v9338_v26 = vld [vmem:[%s12265_s11 + $0x60] sm:$0xff]  }
 0x62a   : > { %5835 = vmatpush1.bf16.msra.mxu0 %v9174_v38  ;;  %v9246_v38 = vld [vmem:[%s12263_s9 + $0x540] ss:$8 sps:$4 sm:$0xff]  }
 0x62b   : > { %5836 = vmatprep.subr.bf16.mxu0 %v9179_v40  ;;  %v9251_v40 = vld [vmem:[%s12263_s9 + $0x554] ss:$8 sps:$4 sm:$0xff]  }
 0x62e   : > { %5837 = vmatpush1.bf16.msra.mxu0 %v9177_v43  ;;  %v9339_v43 = vld [vmem:[%s12265_s11 + $0x20] sm:$0xff]  }
 0x62f   : > { %5838 = vmatprep.subr.bf16.mxu0 %v9182_v44  ;;  %v9340_v44 = vld [vmem:[%s12265_s11 + $0x68] sm:$0xff]  }
 0x632   : > { %5839 = vmatpush1.bf16.msra.mxu0 %v9180_v47  ;;  %v9249_v47 = vld [vmem:[%s12263_s9 + $0x550] ss:$8 sps:$4 sm:$0xff]  }
 0x633   : > { %5840 = vmatprep.subr.bf16.mxu0 %v9185_v48  ;;  %v9254_v48 = vld [vmem:[%s12263_s9 + $0x564] ss:$8 sps:$4 sm:$0xff]  }
 0x636   : > { %5841 = vmatpush1.bf16.msra.mxu0 %v9183_v52  ;;  %v9341_v52 = vld [vmem:[%s12265_s11 + $0x28] sm:$0xff]  }
 0x637   : > { %5851 = vmatprep.subr.bf16.mxu0 %v9188_v56  ;;  %v9252_v56 = vld [vmem:[%s12263_s9 + $0x560] ss:$8 sps:$4 sm:$0xff]  }
 0x639   : > { %5843 = vmatmul.mubr.bf16.vlgmr.msra.gmra.mrb[16].mxu0 %v11259_v12  ;;  %v9197_v12 = vld [vmem:[%s12263_s9 + $0x434] ss:$8 sps:$4 sm:$0xff]  }
 0x63a   : > { %5852 = vmatpush1.bf16.msra.mxu0 %v9186_v36  ;;  %5883 = vmatprep.mubr.bf16.mxu0 %v4316_v59  ;;  %v9257_v36 = vld [vmem:[%s12263_s9 + $0x574] ss:$8 sps:$4 sm:$0xff]   ;;  %v9260_v59 = vld [vmem:[%s12263_s9 + $0x584] ss:$8 sps:$4 sm:$0xff]  }
 0x63b   : > { %5853 = vmatprep.subr.bf16.mxu0 %v9191_v51  ;;  %v9255_v51 = vld [vmem:[%s12263_s9 + $0x570] ss:$8 sps:$4 sm:$0xff]  }
 0x63e   : > { %5854 = vmatpush1.bf16.msra.mxu0 %v9189_v61  ;;  %v9258_v61 = vld [vmem:[%s12263_s9 + $0x580] ss:$8 sps:$4 sm:$0xff]  }
 0x63f   : > { %5855 = vmatprep.subr.bf16.mxu0 %v9194_v62  ;;  %v9263_v62 = vld [vmem:[%s12263_s9 + $0x594] ss:$8 sps:$4 sm:$0xff]  }
 0x642   : > { %5856 = vmatpush1.bf16.msra.mxu0 %v9192_v63  ;;  %v9261_v63 = vld [vmem:[%s12263_s9 + $0x590] ss:$8 sps:$4 sm:$0xff]  }
 0x643   : > { %5857 = vmatprep.subr.bf16.mxu0 %v9197_v12  ;;  %v9266_v12 = vld [vmem:[%s12263_s9 + $0x5a4] ss:$8 sps:$4 sm:$0xff]  }
 0x646   : > { %5858 = vmatpush1.bf16.msra.mxu0 %v9195_v60  ;;  %v9264_v60 = vld [vmem:[%s12263_s9 + $0x5a0] ss:$8 sps:$4 sm:$0xff]  }
 0x647   : > { %5859 = vmatprep.subr.bf16.mxu0 %v9200_v0  ;;  %v9269_v0 = vld [vmem:[%s12263_s9 + $0x5b4] ss:$8 sps:$4 sm:$0xff]  }
 0x64a   : > { %5860 = vmatpush1.bf16.msra.mxu0 %v9198_v1  ;;  %v9267_v1 = vld [vmem:[%s12263_s9 + $0x5b0] ss:$8 sps:$4 sm:$0xff]  }
 0x64b   : > { %5861 = vmatprep.subr.bf16.mxu0 %v9203_v17  ;;  %v9272_v17 = vld [vmem:[%s12263_s9 + $0x5c4] ss:$8 sps:$4 sm:$0xff]  }
 0x64e   : > { %5862 = vmatpush1.bf16.msra.mxu0 %v9201_v30  ;;  %v9270_v30 = vld [vmem:[%s12263_s9 + $0x5c0] ss:$8 sps:$4 sm:$0xff]  }
 0x64f   : > { %5863 = vmatprep.subr.bf16.mxu0 %v9206_v39  ;;  %v9275_v39 = vld [vmem:[%s12263_s9 + $0x5d4] ss:$8 sps:$4 sm:$0xff]  }
 0x652   : > { %5864 = vmatpush1.bf16.msra.mxu0 %v9204_v45  ;;  %v9273_v45 = vld [vmem:[%s12263_s9 + $0x5d0] ss:$8 sps:$4 sm:$0xff]  }
 0x653   : > { %5865 = vmatprep.subr.bf16.mxu0 %v9209_v4  ;;  %v9278_v4 = vld [vmem:[%s12263_s9 + $0x5e4] ss:$8 sps:$4 sm:$0xff]  }
 0x656   : > { %5866 = vmatpush1.bf16.msra.mxu0 %v9207_v5  ;;  %v9276_v5 = vld [vmem:[%s12263_s9 + $0x5e0] ss:$8 sps:$4 sm:$0xff]  }
 0x657   : > { %5867 = vmatprep.subr.bf16.mxu0 %v9212_v3  ;;  %v9281_v3 = vld [vmem:[%s12263_s9 + $0x5f4] ss:$8 sps:$4 sm:$0xff]  }
 0x65a   : > { %5868 = vmatpush1.bf16.msra.mxu0 %v9210_v25  ;;  %v9279_v25 = vld [vmem:[%s12263_s9 + $0x5f0] ss:$8 sps:$4 sm:$0xff]  }
 0x65b   : > { %5869 = vmatprep.subr.bf16.mxu0 %v9215_v7  ;;  %v9284_v7 = vld [vmem:[%s12263_s9 + $0x604] ss:$8 sps:$4 sm:$0xff]  }
 0x65e   : > { %5870 = vmatpush1.bf16.msra.mxu0 %v9213_v41  ;;  %v9282_v41 = vld [vmem:[%s12263_s9 + $0x600] ss:$8 sps:$4 sm:$0xff]  }
 0x65f   : > { %5871 = vmatprep.subr.bf16.mxu0 %v9218_v11  ;;  %v9287_v11 = vld [vmem:[%s12263_s9 + $0x614] ss:$8 sps:$4 sm:$0xff]  }
 0x662   : > { %5872 = vmatpush1.bf16.msra.mxu0 %v9216_v13  ;;  %v4328_v13 = vrot.slane %v11230_v55, 3  ;;  %v9293_v55 = vld [vmem:[%s12263_s9 + $0x634] ss:$8 sps:$4 sm:$0xff]  }
 0x663   : > { %5873 = vmatprep.subr.bf16.mxu0 %v9221_v14  ;;  %v9285_v14 = vld [vmem:[%s12263_s9 + $0x610] ss:$8 sps:$4 sm:$0xff]  }
 0x666   : > { %5874 = vmatpush1.bf16.msra.mxu0 %v9219_v37  ;;  %v9290_v37 = vld [vmem:[%s12263_s9 + $0x624] ss:$8 sps:$4 sm:$0xff]  }
 0x667   : > { %5875 = vmatprep.subr.bf16.mxu0 %v9224_v31  ;;  %v9288_v31 = vld [vmem:[%s12263_s9 + $0x620] ss:$8 sps:$4 sm:$0xff]  }
 0x66a   : > { %5876 = vmatpush1.bf16.msra.mxu0 %v9222_v15  ;;  %v9296_v15 = vld [vmem:[%s12263_s9 + $0x644] ss:$8 sps:$4 sm:$0xff]  }
 0x66b   : > { %5877 = vmatprep.subr.bf16.mxu0 %v9227_v2  ;;  %v9294_v2 = vld [vmem:[%s12263_s9 + $0x640] ss:$8 sps:$4 sm:$0xff]  }
 0x66e   : > { %5878 = vmatpush1.bf16.msra.mxu0 %v9225_v16  ;;  %v9299_v16 = vld [vmem:[%s12263_s9 + $0x654] ss:$8 sps:$4 sm:$0xff]  }
 0x66f   : > { %5879 = vmatprep.subr.bf16.mxu0 %v9230_v18  ;;  %v9297_v18 = vld [vmem:[%s12263_s9 + $0x650] ss:$8 sps:$4 sm:$0xff]  }
 0x672   : > { %5880 = vmatpush1.bf16.msra.mxu0 %v9228_v19  ;;  %v9302_v19 = vld [vmem:[%s12263_s9 + $0x664] ss:$8 sps:$4 sm:$0xff]  }
 0x673   : > { %5881 = vmatprep.subr.bf16.mxu0 %v9233_v20  ;;  %v9300_v20 = vld [vmem:[%s12263_s9 + $0x660] ss:$8 sps:$4 sm:$0xff]  }
 0x676   : > { %5882 = vmatpush1.bf16.msra.mxu0 %v9231_v21  ;;  %v9305_v21 = vld [vmem:[%s12263_s9 + $0x674] ss:$8 sps:$4 sm:$0xff]  }
 0x677   : > { %5892 = vmatprep.subr.bf16.mxu0 %v9236_v6  ;;  %v9303_v6 = vld [vmem:[%s12263_s9 + $0x670] ss:$8 sps:$4 sm:$0xff]  }
 0x679   : > { %5884 = vmatmul.mubr.bf16.vlgmr.msra.gmra.mrb[16].mxu0 %v4315_v58  ;;  %v9306_v58 = vld [vmem:[%s12263_s9 + $0x680] ss:$8 sps:$4 sm:$0xff]  }
 0x67a   : > { %5893 = vmatpush1.bf16.msra.mxu0 %v9234_v27  ;;  %5924 = vmatprep.mubr.bf16.mxu0 %v11262_v33  ;;  %v9334_v33 = vld [vmem:[%s12265_s11 + $0x50] sm:$0xff]   ;;  %v9308_v27 = vld [vmem:[%s12263_s9 + $0x684] ss:$8 sps:$4 sm:$0xff]  }
 0x67b   : > { %5894 = vmatprep.subr.bf16.mxu0 %v9239_v32  ;;  %8048 = vmatprep.subr.bf16.mxu1 %v9334_v33  ;;  %v9311_v32 = vld [vmem:[%s12263_s9 + $0x694] ss:$8 sps:$4 sm:$0xff]   ;;  %v9318_v33 = vld [vmem:[%s12263_s9 + $0x6c0] ss:$8 sps:$4 sm:$0xff]  }
 0x67c   : > { %8049 = vmatpush3.bf16.msra.mxu1 %v9335_v29  ;;  %v9326_v29 = vld [vmem:[%s12263_s9 + $0x6e4] ss:$8 sps:$4 sm:$0xff]  }
 0x67d   : > { %8050 = vmatprep.subr.bf16.mxu1 %v9336_v34  ;;  %v9324_v34 = vld [vmem:[%s12263_s9 + $0x6e0] ss:$8 sps:$4 sm:$0xff]  }
 0x67e   : > { %5895 = vmatpush1.bf16.msra.mxu0 %v9237_v49  ;;  %v9317_v49 = vld [vmem:[%s12263_s9 + $0x6b4] ss:$8 sps:$4 sm:$0xff]  }
 0x67f   : > { %5896 = vmatprep.subr.bf16.mxu0 %v9242_v22  ;;  %v9315_v22 = vld [vmem:[%s12263_s9 + $0x6b0] ss:$8 sps:$4 sm:$0xff]  }
 0x680   : > { %8051 = vmatpush3.bf16.msra.mxu1 %v9337_v35  ;;  %v4327_v35 = vrot.slane %v11228_v54, 3  ;;  %v9346_v54 = vld [vmem:[%s12265_s11 + $0xc0] sm:$0xff]  }
 0x681   : > { %8052 = vmatprep.subr.bf16.mxu1 %v9338_v26  ;;  %v9342_v26 = vld [vmem:[%s12265_s11 + $0x70] sm:$0xff]  }
 0x682   : > { %5897 = vmatpush1.bf16.msra.mxu0 %v9240_v24  ;;  %v9323_v24 = vld [vmem:[%s12263_s9 + $0x6d4] ss:$8 sps:$4 sm:$0xff]  }
 0x683   : > { %5898 = vmatprep.subr.bf16.mxu0 %v9245_v28  ;;  %v9321_v28 = vld [vmem:[%s12263_s9 + $0x6d0] ss:$8 sps:$4 sm:$0xff]  }
 0x684   : > { %8053 = vmatpush3.bf16.msra.mxu1 %v9339_v43  ;;  %v9345_v43 = vld [vmem:[%s12265_s11 + $0x38] sm:$0xff]  }
 0x685   : > { %8054 = vmatprep.subr.bf16.mxu1 %v9340_v44  ;;  %v4555_v44 = vld [vmem:[%s12264_s10] sm:$0x3] }
 0x686   : > { %5899 = vmatpush1.bf16.msra.mxu0 %v9243_v46  ;;  %v9329_v46 = vld [vmem:[%s12263_s9 + $0x6f4] ss:$8 sps:$4 sm:$0xff]  }
 0x687   : > { %5900 = vmatprep.subr.bf16.mxu0 %v9248_v42  ;;  %v9327_v42 = vld [vmem:[%s12263_s9 + $0x6f0] ss:$8 sps:$4 sm:$0xff]  }
 0x688   : > { %8055 = vmatpush3.bf16.msra.mxu1 %v9341_v52 }
 0x689   : > { %8056 = vmatprep.subr.bf16.mxu1 %v9342_v26  ;;  %v9388_v26 = vld [vmem:[%s12265_s11 + $0x1e8] sm:$0xff]  }
 0x68a   : > { %5901 = vmatpush1.bf16.msra.mxu0 %v9246_v38  ;;  %v9343_v38 = vld [vmem:[%s12265_s11 + $0x30] sm:$0xff]  }
 0x68b   : > { %5902 = vmatprep.subr.bf16.mxu0 %v9251_v40  ;;  %v9344_v40 = vld [vmem:[%s12265_s11 + $0x78] sm:$0xff]  }
 0x68c   : > { %8057 = vmatpush3.bf16.msra.mxu1 %v9343_v38  ;;  %v9389_v38 = vld [vmem:[%s12265_s11 + $0x1a8] sm:$0xff]  }
 0x68d   : > { %8058 = vmatprep.subr.bf16.mxu1 %v9344_v40  ;;  %v9390_v40 = vld [vmem:[%s12265_s11 + $0x1f0] sm:$0xff]  }
 0x68e   : > { %5903 = vmatpush1.bf16.msra.mxu0 %v9249_v47  ;;  %v4560_v47 = vrot.slane %v4555_v44, %v10225_v8  ;;  %v9348_v8 = vld [vmem:[%s12265_s11 + $0xc8] sm:$0xff]  }
 0x68f   : > { %5904 = vmatprep.subr.bf16.mxu0 %v9254_v48  ;;  %v4564_v48 = vrot.slane %v4555_v44, %v10230_v10  ;;  %v9393_v44 = vld [vmem:[%s12265_s11 + $0x1b8] sm:$0xff]  }
 0x690   : > { %8059 = vmatpush3.bf16.msra.mxu1 %v9345_v43  ;;  %v9391_v43 = vld [vmem:[%s12265_s11 + $0x1b0] sm:$0xff]  }
 0x691   : > { %8066 = vmatprep.subr.bf16.mxu1 %v9346_v54  ;;  %v9392_v54 = vld [vmem:[%s12265_s11 + $0x1f8] sm:$0xff]  }
 0x692   : > { %5905 = vmatpush1.bf16.msra.mxu0 %v9252_v56 }
 0x693   : > { %5906 = vmatprep.subr.bf16.mxu0 %v9257_v36 }
 0x696   : > { %5907 = vmatpush1.bf16.msra.mxu0 %v9255_v51 }
 0x697   : > { %5908 = vmatprep.subr.bf16.mxu0 %v9260_v59 }
 0x69a   : > { %5909 = vmatpush1.bf16.msra.mxu0 %v9258_v61 }
 0x69b   : > { %5910 = vmatprep.subr.bf16.mxu0 %v9263_v62 }
 0x69e   : > { %5911 = vmatpush1.bf16.msra.mxu0 %v9261_v63 }
 0x69f   : > { %5912 = vmatprep.subr.bf16.mxu0 %v9266_v12 }
 0x6a2   : > { %5913 = vmatpush1.bf16.msra.mxu0 %v9264_v60  ;;  %v9347_v60 = vld [vmem:[%s12265_s11 + $0x80] sm:$0xff]  }
 0x6a3   : > { %5914 = vmatprep.subr.bf16.mxu0 %v9269_v0 }
 0x6a6   : > { %5915 = vmatpush1.bf16.msra.mxu0 %v9267_v1  ;;  %v9349_v1 = vld [vmem:[%s12265_s11 + $0x88] sm:$0xff]  }
 0x6a7   : > { %5916 = vmatprep.subr.bf16.mxu0 %v9272_v17  ;;  %v9350_v17 = vld [vmem:[%s12265_s11 + $0xd0] sm:$0xff]  }
 0x6aa   : > { %5917 = vmatpush1.bf16.msra.mxu0 %v9270_v30  ;;  %v9351_v30 = vld [vmem:[%s12265_s11 + $0x90] sm:$0xff]  }
 0x6ab   : > { %5918 = vmatprep.subr.bf16.mxu0 %v9275_v39  ;;  %v9352_v39 = vld [vmem:[%s12265_s11 + $0xd8] sm:$0xff]  }
 0x6ae   : > { %5919 = vmatpush1.bf16.msra.mxu0 %v9273_v45  ;;  %v9353_v45 = vld [vmem:[%s12265_s11 + $0x98] sm:$0xff]  }
 0x6af   : > { %5920 = vmatprep.subr.bf16.mxu0 %v9278_v4  ;;  %v9354_v4 = vld [vmem:[%s12265_s11 + $0xe0] sm:$0xff]  }
 0x6b2   : > { %5921 = vmatpush1.bf16.msra.mxu0 %v9276_v5  ;;  %v9355_v5 = vld [vmem:[%s12265_s11 + $0xa0] sm:$0xff]  }
 0x6b3   : > { %5922 = vmatprep.subr.bf16.mxu0 %v9281_v3  ;;  %v9356_v3 = vld [vmem:[%s12265_s11 + $0xe8] sm:$0xff]  }
 0x6b6   : > { %5923 = vmatpush1.bf16.msra.mxu0 %v9279_v25  ;;  %v9357_v25 = vld [vmem:[%s12265_s11 + $0xa8] sm:$0xff]  }
 0x6b7   : > { %5933 = vmatprep.subr.bf16.mxu0 %v9284_v7  ;;  %v9358_v7 = vld [vmem:[%s12265_s11 + $0xf0] sm:$0xff]  }
 0x6b9   : > { %5925 = vmatmul.mubr.bf16.vlgmr.msra.gmra.mrb[16].mxu0 %v11267_v9  ;;  %v9291_v9 = vld [vmem:[%s12263_s9 + $0x630] ss:$8 sps:$4 sm:$0xff]  }
 0x6ba   : > { %5934 = vmatpush1.bf16.msra.mxu0 %v9282_v41  ;;  %5965 = vmatprep.mubr.bf16.mxu0 %v4328_v13  ;;  %v9359_v41 = vld [vmem:[%s12265_s11 + $0xb0] sm:$0xff]   ;;  %v9361_v13 = vld [vmem:[%s12265_s11 + $0xb8] sm:$0xff]  }
 0x6bb   : > { %5935 = vmatprep.subr.bf16.mxu0 %v9287_v11  ;;  %v9360_v11 = vld [vmem:[%s12265_s11 + $0xf8] sm:$0xff]  }
 0x6be   : > { %5936 = vmatpush1.bf16.msra.mxu0 %v9285_v14  ;;  %v9362_v14 = vld [vmem:[%s12265_s11 + $0x140] sm:$0xff]  }
 0x6bf   : > { %5937 = vmatprep.subr.bf16.mxu0 %v9290_v37  ;;  %v9363_v37 = vld [vmem:[%s12265_s11 + $0x100] sm:$0xff]  }
 0x6c2   : > { %5938 = vmatpush1.bf16.msra.mxu0 %v9288_v31 }
 0x6c3   : > { %5939 = vmatprep.subr.bf16.mxu0 %v9293_v55  ;;  %v9364_v55 = vld [vmem:[%s12265_s11 + $0x148] sm:$0xff]  }
 0x6c6   : > { %5940 = vmatpush1.bf16.msra.mxu0 %v9291_v9 }
 0x6c7   : > { %5941 = vmatprep.subr.bf16.mxu0 %v9296_v15  ;;  %v9365_v15 = vld [vmem:[%s12265_s11 + $0x108] sm:$0xff]  }
 0x6ca   : > { %5942 = vmatpush1.bf16.msra.mxu0 %v9294_v2  ;;  %v9366_v2 = vld [vmem:[%s12265_s11 + $0x150] sm:$0xff]  }
 0x6cb   : > { %5943 = vmatprep.subr.bf16.mxu0 %v9299_v16  ;;  %v9367_v16 = vld [vmem:[%s12265_s11 + $0x110] sm:$0xff]  }
 0x6ce   : > { %5944 = vmatpush1.bf16.msra.mxu0 %v9297_v18  ;;  %v9368_v18 = vld [vmem:[%s12265_s11 + $0x158] sm:$0xff]  }
 0x6cf   : > { %5945 = vmatprep.subr.bf16.mxu0 %v9302_v19  ;;  %v9369_v19 = vld [vmem:[%s12265_s11 + $0x118] sm:$0xff]  }
 0x6d2   : > { %5946 = vmatpush1.bf16.msra.mxu0 %v9300_v20  ;;  %v9370_v20 = vld [vmem:[%s12265_s11 + $0x160] sm:$0xff]  }
 0x6d3   : > { %5947 = vmatprep.subr.bf16.mxu0 %v9305_v21  ;;  %v9371_v21 = vld [vmem:[%s12265_s11 + $0x120] sm:$0xff]  }
 0x6d6   : > { %5948 = vmatpush1.bf16.msra.mxu0 %v9303_v6  ;;  %v9372_v6 = vld [vmem:[%s12265_s11 + $0x168] sm:$0xff]  }
 0x6d7   : > { %5949 = vmatprep.subr.bf16.mxu0 %v9308_v27  ;;  %v9373_v27 = vld [vmem:[%s12265_s11 + $0x128] sm:$0xff]  }
 0x6da   : > { %5950 = vmatpush1.bf16.msra.mxu0 %v9306_v58  ;;  %v9374_v58 = vld [vmem:[%s12265_s11 + $0x170] sm:$0xff]  }
 0x6db   : > { %5951 = vmatprep.subr.bf16.mxu0 %v9311_v32  ;;  %v9375_v32 = vld [vmem:[%s12265_s11 + $0x130] sm:$0xff]  }
 0x6de   : > { %5952 = vmatpush1.bf16.msra.mxu0 %v9309_v53  ;;  %v9376_v53 = vld [vmem:[%s12265_s11 + $0x178] sm:$0xff]  }
 0x6df   : > { %5953 = vmatprep.subr.bf16.mxu0 %v9314_v57  ;;  %v9377_v57 = vld [vmem:[%s12265_s11 + $0x138] sm:$0xff]  }
 0x6e2   : > { %5954 = vmatpush1.bf16.msra.mxu0 %v9312_v50  ;;  %v9378_v50 = vld [vmem:[%s12265_s11 + $0x1c0] sm:$0xff]  }
 0x6e3   : > { %5955 = vmatprep.subr.bf16.mxu0 %v9317_v49  ;;  %v9379_v49 = vld [vmem:[%s12265_s11 + $0x180] sm:$0xff]  }
 0x6e6   : > { %5956 = vmatpush1.bf16.msra.mxu0 %v9315_v22 }
 0x6e7   : > { %5957 = vmatprep.subr.bf16.mxu0 %v9320_v23  ;;  %v9380_v23 = vld [vmem:[%s12265_s11 + $0x1c8] sm:$0xff]  }
 0x6ea   : > { %5958 = vmatpush1.bf16.msra.mxu0 %v9318_v33 }
 0x6eb   : > { %5959 = vmatprep.subr.bf16.mxu0 %v9323_v24  ;;  %v9381_v24 = vld [vmem:[%s12265_s11 + $0x188] sm:$0xff]  }
 0x6ee   : > { %5960 = vmatpush1.bf16.msra.mxu0 %v9321_v28  ;;  %v9382_v28 = vld [vmem:[%s12265_s11 + $0x1d0] sm:$0xff]  }
 0x6ef   : > { %5961 = vmatprep.subr.bf16.mxu0 %v9326_v29  ;;  %v9383_v29 = vld [vmem:[%s12265_s11 + $0x190] sm:$0xff]  }
 0x6f2   : > { %5962 = vmatpush1.bf16.msra.mxu0 %v9324_v34  ;;  %v9384_v34 = vld [vmem:[%s12265_s11 + $0x1d8] sm:$0xff]  }
 0x6f3   : > { %5963 = vmatprep.subr.bf16.mxu0 %v9329_v46  ;;  %v9385_v46 = vld [vmem:[%s12265_s11 + $0x198] sm:$0xff]  }
 0x6f6   : > { %5964 = vmatpush1.bf16.msra.mxu0 %v9327_v42  ;;  %v9386_v42 = vld [vmem:[%s12265_s11 + $0x1e0] sm:$0xff]  }
 0x6f9   : > { %5966 = vmatmul.mubr.bf16.vlgmr.msra.gmra.mrb[16].mxu0 %v4327_v35  ;;  %v9387_v35 = vld [vmem:[%s12265_s11 + $0x1a0] sm:$0xff]  }
 0x7cc   : > { %v5967_v52 = vpop.f32.mrb[16].mxu0 }
 0x7cd   : > { %v8198_v56 = vadd.f32 %v5967_v52, %v4560_v47  ;;  %v5969_v36 = vpop.f32.mrb[17].mxu0  ;;  %v9394_v47 = vld [vmem:[%s12265_s11 + $0x240] sm:$0xff]  }
 0x7ce   : > { %v8199_v51 = vadd.f32 %v5969_v36, %v4564_v48  ;;  %v5971_v59 = vpop.f32.mrb[18].mxu0  ;;  %v9395_v48 = vld [vmem:[%s12265_s11 + $0x200] sm:$0xff]  }
 0x7cf   : > { %v5974_v61 = vmax.f32 %v8198_v56, 0.0  ;;  %v5972_v62 = vpop.f32.mrb[19].mxu0  ;;  %v9396_v56 = vld [vmem:[%s12265_s11 + $0x248] sm:$0xff]   ;;  %v9398_v59 = vld [vmem:[%s12265_s11 + $0x250] sm:$0xff]  }
 0x7d0   : > { %v5975_v63 = vmax.f32 %v8199_v51, 0.0  ;;  %v9397_v51 = vld [vmem:[%s12265_s11 + $0x208] sm:$0xff]   ;;  %v9400_v62 = vld [vmem:[%s12265_s11 + $0x258] sm:$0xff]  }
 0x7d1   : > { %v11900_v0 = vpack.c.bf16 %v5974_v61, %v5974_v61  ;;  %v9399_v61 = vld [vmem:[%s12265_s11 + $0x210] sm:$0xff]  }
 0x7d2   : > { %v11895_v12 = vpack.c.bf16 %v5975_v63, %v5975_v63  ;;  %v9401_v63 = vld [vmem:[%s12265_s11 + $0x218] sm:$0xff]  }
 0x7d3   : > { %v11957_v31 = vshrl.u32 %v11900_v0, 16  ;;  %v6359_v22 = vrot.slane %v11900_v0, 1 }
 0x7d4   : > { %6139 = vmatprep.mubr.bf16.mxu1 %v11895_v12  ;;  %v11907_v10 = vshrl.u32 %v11895_v12, 16  ;;  %v6360_v9 = vrot.slane %v11895_v12, 1  ;;  %v6706_v36 = vrot.slane %v11895_v12, 2 }
 0x7d5   : > { %6140 = vmatmul.mubr.bf16.vlgmr.msra.gmra.mrb[56].mxu1 %v11900_v0  ;;  %v6532_v52 = vrot.slane %v11957_v31, 1 }
 0x7d6   : > { %8067 = vmatpush3.bf16.msra.mxu1 %v9347_v60  ;;  %6316 = vmatprep.mubr.bf16.mxu1 %v11907_v10  ;;  %v6533_v33 = vrot.slane %v11907_v10, 1  ;;  %v9402_v60 = vld [vmem:[%s12265_s11 + $0x260] sm:$0xff]  }
 0x7d7   : > { %8068 = vmatprep.subr.bf16.mxu1 %v9348_v8  ;;  %v9403_v8 = vld [vmem:[%s12265_s11 + $0x220] sm:$0xff]  }
 0x7da   : > { %8069 = vmatpush3.bf16.msra.mxu1 %v9349_v1  ;;  %v9404_v1 = vld [vmem:[%s12265_s11 + $0x268] sm:$0xff]  }
 0x7db   : > { %8070 = vmatprep.subr.bf16.mxu1 %v9350_v17  ;;  %v9405_v17 = vld [vmem:[%s12265_s11 + $0x228] sm:$0xff]  }
 0x7de   : > { %8071 = vmatpush3.bf16.msra.mxu1 %v9351_v30  ;;  %v9406_v30 = vld [vmem:[%s12265_s11 + $0x270] sm:$0xff]  }
 0x7df   : > { %8072 = vmatprep.subr.bf16.mxu1 %v9352_v39  ;;  %v9407_v39 = vld [vmem:[%s12265_s11 + $0x230] sm:$0xff]  }
 0x7e2   : > { %8073 = vmatpush3.bf16.msra.mxu1 %v9353_v45  ;;  %v9408_v45 = vld [vmem:[%s12265_s11 + $0x278] sm:$0xff]  }
 0x7e3   : > { %8074 = vmatprep.subr.bf16.mxu1 %v9354_v4  ;;  %v9409_v4 = vld [vmem:[%s12265_s11 + $0x238] sm:$0xff]  }
 0x7e6   : > { %8075 = vmatpush3.bf16.msra.mxu1 %v9355_v5  ;;  %v9410_v5 = vld [vmem:[%s12265_s11 + $0x2c0] sm:$0xff]  }
 0x7e7   : > { %8076 = vmatprep.subr.bf16.mxu1 %v9356_v3  ;;  %v9411_v3 = vld [vmem:[%s12265_s11 + $0x280] sm:$0xff]  }
 0x7ea   : > { %8077 = vmatpush3.bf16.msra.mxu1 %v9357_v25  ;;  %v6705_v25 = vrot.slane %v11900_v0, 2 }
 0x7eb   : > { %8078 = vmatprep.subr.bf16.mxu1 %v9358_v7  ;;  %v9412_v7 = vld [vmem:[%s12265_s11 + $0x2c8] sm:$0xff]  }
 0x7ee   : > { %8079 = vmatpush3.bf16.msra.mxu1 %v9359_v41  ;;  %v6879_v41 = vrot.slane %v11907_v10, 2  ;;  %v9416_v10 = vld [vmem:[%s12265_s11 + $0x2d8] sm:$0xff]  }
 0x7ef   : > { %8080 = vmatprep.subr.bf16.mxu1 %v9360_v11  ;;  %v9413_v11 = vld [vmem:[%s12265_s11 + $0x288] sm:$0xff]  }
 0x7f2   : > { %8081 = vmatpush3.bf16.msra.mxu1 %v9361_v13  ;;  %v9414_v13 = vld [vmem:[%s12265_s11 + $0x2d0] sm:$0xff]  }
 0x7f3   : > { %8088 = vmatprep.subr.bf16.mxu1 %v9362_v14  ;;  %v9415_v14 = vld [vmem:[%s12265_s11 + $0x290] sm:$0xff]  }
 0x7f5   : > { %6317 = vmatmul.mubr.bf16.vlgmr.msra.gmra.mrb[60].mxu1 %v11957_v31 }
 0x7f6   : > { %8089 = vmatpush3.bf16.msra.mxu1 %v9363_v37  ;;  %6491 = vmatprep.mubr.bf16.mxu1 %v6360_v9  ;;  %v9417_v37 = vld [vmem:[%s12265_s11 + $0x298] sm:$0xff]   ;;  %v9419_v9 = vld [vmem:[%s12265_s11 + $0x2a0] sm:$0xff]  }
 0x7f7   : > { %8090 = vmatprep.subr.bf16.mxu1 %v9364_v55  ;;  %v9418_v55 = vld [vmem:[%s12265_s11 + $0x2e0] sm:$0xff]  }
 0x7fa   : > { %8091 = vmatpush3.bf16.msra.mxu1 %v9365_v15  ;;  %v9420_v15 = vld [vmem:[%s12265_s11 + $0x2e8] sm:$0xff]  }
 0x7fb   : > { %8092 = vmatprep.subr.bf16.mxu1 %v9366_v2  ;;  %v9421_v2 = vld [vmem:[%s12265_s11 + $0x2a8] sm:$0xff]  }
 0x7fe   : > { %8093 = vmatpush3.bf16.msra.mxu1 %v9367_v16  ;;  %v9422_v16 = vld [vmem:[%s12265_s11 + $0x2f0] sm:$0xff]  }
 0x7ff   : > { %8094 = vmatprep.subr.bf16.mxu1 %v9368_v18  ;;  %v9423_v18 = vld [vmem:[%s12265_s11 + $0x2b0] sm:$0xff]  }
 0x802   : > { %8095 = vmatpush3.bf16.msra.mxu1 %v9369_v19  ;;  %v9424_v19 = vld [vmem:[%s12265_s11 + $0x2f8] sm:$0xff]  }
 0x803   : > { %8096 = vmatprep.subr.bf16.mxu1 %v9370_v20  ;;  %v9425_v20 = vld [vmem:[%s12265_s11 + $0x2b8] sm:$0xff]  }
 0x806   : > { %8097 = vmatpush3.bf16.msra.mxu1 %v9371_v21  ;;  %v9426_v21 = vld [vmem:[%s12265_s11 + $0x340] sm:$0xff]  }
 0x807   : > { %8098 = vmatprep.subr.bf16.mxu1 %v9372_v6  ;;  %v9427_v6 = vld [vmem:[%s12265_s11 + $0x300] sm:$0xff]  }
 0x80a   : > { %8099 = vmatpush3.bf16.msra.mxu1 %v9373_v27  ;;  %v6878_v27 = vrot.slane %v11957_v31, 2  ;;  %v9431_v31 = vld [vmem:[%s12265_s11 + $0x310] sm:$0xff]  }
 0x80b   : > { %8100 = vmatprep.subr.bf16.mxu1 %v9374_v58  ;;  %v9428_v58 = vld [vmem:[%s12265_s11 + $0x348] sm:$0xff]  }
 0x80e   : > { %8101 = vmatpush3.bf16.msra.mxu1 %v9375_v32  ;;  %v7052_v32 = vrot.slane %v11895_v12, 3  ;;  %v9432_v12 = vld [vmem:[%s12265_s11 + $0x358] sm:$0xff]  }
 0x80f   : > { %8102 = vmatprep.subr.bf16.mxu1 %v9376_v53  ;;  %v9429_v53 = vld [vmem:[%s12265_s11 + $0x308] sm:$0xff]  }
 0x812   : > { %8103 = vmatpush3.bf16.msra.mxu1 %v9377_v57  ;;  %v9430_v57 = vld [vmem:[%s12265_s11 + $0x350] sm:$0xff]  }
 0x813   : > { %8110 = vmatprep.subr.bf16.mxu1 %v9378_v50  ;;  %v9433_v50 = vld [vmem:[%s12265_s11 + $0x318] sm:$0xff]  }
 0x815   : > { %6492 = vmatmul.mubr.bf16.vlgmr.msra.gmra.mrb[64].mxu1 %v6359_v22  ;;  %v9435_v22 = vld [vmem:[%s12265_s11 + $0x320] sm:$0xff]  }
 0x816   : > { %8111 = vmatpush3.bf16.msra.mxu1 %v9379_v49  ;;  %6664 = vmatprep.mubr.bf16.mxu1 %v6533_v33  ;;  %v9434_v49 = vld [vmem:[%s12265_s11 + $0x360] sm:$0xff]   ;;  %v9437_v33 = vld [vmem:[%s12265_s11 + $0x328] sm:$0xff]  }
 0x817   : > { %8112 = vmatprep.subr.bf16.mxu1 %v9380_v23  ;;  %v9436_v23 = vld [vmem:[%s12265_s11 + $0x368] sm:$0xff]  }
 0x81a   : > { %8113 = vmatpush3.bf16.msra.mxu1 %v9381_v24  ;;  %v9438_v24 = vld [vmem:[%s12265_s11 + $0x370] sm:$0xff]  }
 0x81b   : > { %8114 = vmatprep.subr.bf16.mxu1 %v9382_v28  ;;  %v9439_v28 = vld [vmem:[%s12265_s11 + $0x330] sm:$0xff]  }
 0x81e   : > { %8115 = vmatpush3.bf16.msra.mxu1 %v9383_v29  ;;  %v9440_v29 = vld [vmem:[%s12265_s11 + $0x378] sm:$0xff]  }
 0x81f   : > { %8116 = vmatprep.subr.bf16.mxu1 %v9384_v34  ;;  %v9441_v34 = vld [vmem:[%s12265_s11 + $0x338] sm:$0xff]  }
 0x822   : > { %8117 = vmatpush3.bf16.msra.mxu1 %v9385_v46  ;;  %v7051_v46 = vrot.slane %v11900_v0, 3 }
 0x823   : > { %8118 = vmatprep.subr.bf16.mxu1 %v9386_v42 }
 0x826   : > { %8119 = vmatpush3.bf16.msra.mxu1 %v9387_v35 }
 0x827   : > { %8120 = vmatprep.subr.bf16.mxu1 %v9388_v26 }
 0x82a   : > { %8121 = vmatpush3.bf16.msra.mxu1 %v9389_v38 }
 0x82b   : > { %8122 = vmatprep.subr.bf16.mxu1 %v9390_v40 }
 0x82e   : > { %8123 = vmatpush3.bf16.msra.mxu1 %v9391_v43  ;;  %v5978_v43 = vld [vmem:[%s12266_s12] sm:$0x1] }
 0x82f   : > { %8124 = vmatprep.subr.bf16.mxu1 %v9392_v54 }
 0x832   : > { %8125 = vmatpush3.bf16.msra.mxu1 %v9393_v44 }
 0x833   : > { %8132 = vmatprep.subr.bf16.mxu1 %v9394_v47 }
 0x835   : > { %6665 = vmatmul.mubr.bf16.vlgmr.msra.gmra.mrb[68].mxu1 %v6532_v52 }
 0x836   : > { %8133 = vmatpush3.bf16.msra.mxu1 %v9395_v48  ;;  %6837 = vmatprep.mubr.bf16.mxu1 %v6706_v36 }
 0x837   : > { %8134 = vmatprep.subr.bf16.mxu1 %v9396_v56 }
 0x83a   : > { %8135 = vmatpush3.bf16.msra.mxu1 %v9397_v51 }
 0x83b   : > { %8136 = vmatprep.subr.bf16.mxu1 %v9398_v59 }
 0x83e   : > { %8137 = vmatpush3.bf16.msra.mxu1 %v9399_v61 }
 0x83f   : > { %8138 = vmatprep.subr.bf16.mxu1 %v9400_v62 }
 0x842   : > { %8139 = vmatpush3.bf16.msra.mxu1 %v9401_v63 }
 0x843   : > { %8140 = vmatprep.subr.bf16.mxu1 %v9402_v60 }
 0x846   : > { %8141 = vmatpush3.bf16.msra.mxu1 %v9403_v8 }
 0x847   : > { %8142 = vmatprep.subr.bf16.mxu1 %v9404_v1 }
 0x84a   : > { %8143 = vmatpush3.bf16.msra.mxu1 %v9405_v17 }
 0x84b   : > { %8144 = vmatprep.subr.bf16.mxu1 %v9406_v30 }
 0x84e   : > { %8145 = vmatpush3.bf16.msra.mxu1 %v9407_v39 }
 0x84f   : > { %8146 = vmatprep.subr.bf16.mxu1 %v9408_v45 }
 0x852   : > { %8147 = vmatpush3.bf16.msra.mxu1 %v9409_v4 }
 0x853   : > { %8154 = vmatprep.subr.bf16.mxu1 %v9410_v5 }
 0x855   : > { %6838 = vmatmul.mubr.bf16.vlgmr.msra.gmra.mrb[72].mxu1 %v6705_v25 }
 0x856   : > { %8155 = vmatpush3.bf16.msra.mxu1 %v9411_v3  ;;  %7010 = vmatprep.mubr.bf16.mxu1 %v6879_v41 }
 0x857   : > { %8156 = vmatprep.subr.bf16.mxu1 %v9412_v7 }
 0x85a   : > { %8157 = vmatpush3.bf16.msra.mxu1 %v9413_v11 }
 0x85b   : > { %8158 = vmatprep.subr.bf16.mxu1 %v9414_v13 }
 0x85e   : > { %8159 = vmatpush3.bf16.msra.mxu1 %v9415_v14 }
 0x85f   : > { %8160 = vmatprep.subr.bf16.mxu1 %v9416_v10 }
 0x862   : > { %8161 = vmatpush3.bf16.msra.mxu1 %v9417_v37 }
 0x863   : > { %8162 = vmatprep.subr.bf16.mxu1 %v9418_v55 }
 0x866   : > { %8163 = vmatpush3.bf16.msra.mxu1 %v9419_v9 }
 0x867   : > { %8164 = vmatprep.subr.bf16.mxu1 %v9420_v15 }
 0x86a   : > { %8165 = vmatpush3.bf16.msra.mxu1 %v9421_v2 }
 0x86b   : > { %8166 = vmatprep.subr.bf16.mxu1 %v9422_v16 }
 0x86e   : > { %8167 = vmatpush3.bf16.msra.mxu1 %v9423_v18 }
 0x86f   : > { %8168 = vmatprep.subr.bf16.mxu1 %v9424_v19 }
 0x872   : > { %8169 = vmatpush3.bf16.msra.mxu1 %v9425_v20 }
 0x873   : > { %8176 = vmatprep.subr.bf16.mxu1 %v9426_v21 }
 0x875   : > { %7011 = vmatmul.mubr.bf16.vlgmr.msra.gmra.mrb[76].mxu1 %v6878_v27 }
 0x876   : > { %8177 = vmatpush3.bf16.msra.mxu1 %v9427_v6  ;;  %7183 = vmatprep.mubr.bf16.mxu1 %v7052_v32 }
 0x877   : > { %8178 = vmatprep.subr.bf16.mxu1 %v9428_v58 }
 0x87a   : > { %8179 = vmatpush3.bf16.msra.mxu1 %v9429_v53 }
 0x87b   : > { %8180 = vmatprep.subr.bf16.mxu1 %v9430_v57 }
 0x87e   : > { %8181 = vmatpush3.bf16.msra.mxu1 %v9431_v31 }
 0x87f   : > { %8182 = vmatprep.subr.bf16.mxu1 %v9432_v12 }
 0x882   : > { %8183 = vmatpush3.bf16.msra.mxu1 %v9433_v50 }
 0x883   : > { %8184 = vmatprep.subr.bf16.mxu1 %v9434_v49 }
 0x886   : > { %8185 = vmatpush3.bf16.msra.mxu1 %v9435_v22 }
 0x887   : > { %8186 = vmatprep.subr.bf16.mxu1 %v9436_v23 }
 0x88a   : > { %8187 = vmatpush3.bf16.msra.mxu1 %v9437_v33 }
 0x88b   : > { %8188 = vmatprep.subr.bf16.mxu1 %v9438_v24 }
 0x88e   : > { %8189 = vmatpush3.bf16.msra.mxu1 %v9439_v28 }
 0x88f   : > { %8190 = vmatprep.subr.bf16.mxu1 %v9440_v29 }
 0x892   : > { %8191 = vmatpush3.bf16.msra.mxu1 %v9441_v34 }
 0x895   : > { %7184 = vmatmul.mubr.bf16.vlgmr.msra.gmra.mrb[80].mxu1 %v7051_v46 }
 0x8a8   : > { %v8060_v42 = vpop.f32.mrb[56].mxu1 }
 0x8a9   : > { %v8061_v35 = vpop.f32.mrb[57].mxu1 }
 0x8aa   : > { %v8062_v26 = vadd.f32 %v8061_v35, %v8060_v42  ;;  %v8063_v38 = vpop.f32.mrb[58].mxu1 }
 0x8ab   : > { %v8064_v40 = vpop.f32.mrb[59].mxu1 }
 0x8ac   : > { %v6147_v47 = vadd.f32 %v8062_v26, %v5978_v43 }
 0x8c8   : > { %v8082_v54 = vpop.f32.mrb[60].mxu1 }
 0x8c9   : > { %v8083_v44 = vpop.f32.mrb[61].mxu1 }
 0x8ca   : > { %v8084_v48 = vadd.f32 %v8083_v44, %v8082_v54  ;;  %v8085_v52 = vpop.f32.mrb[62].mxu1 }
 0x8cb   : > { %v8086_v56 = vpop.f32.mrb[63].mxu1 }
 0x8cc   : > { %v6324_v36 = vadd.f32 %v8084_v48, %v6147_v47 }
 0x8e8   : > { %v8104_v51 = vpop.f32.mrb[64].mxu1 }
 0x8e9   : > { %v8105_v59 = vpop.f32.mrb[65].mxu1 }
 0x8ea   : > { %v8106_v0 = vadd.f32 %v8105_v59, %v8104_v51  ;;  %v8107_v61 = vpop.f32.mrb[66].mxu1 }
 0x8eb   : > { %v8108_v62 = vpop.f32.mrb[67].mxu1 }
 0x8ec   : > { %v6499_v63 = vadd.f32 %v8106_v0, %v6324_v36 }
 0x908   : > { %v8126_v60 = vpop.f32.mrb[68].mxu1 }
 0x909   : > { %v8127_v8 = vpop.f32.mrb[69].mxu1 }
 0x90a   : > { %v8128_v1 = vadd.f32 %v8127_v8, %v8126_v60  ;;  %v8129_v17 = vpop.f32.mrb[70].mxu1 }
 0x90b   : > { %v8130_v30 = vpop.f32.mrb[71].mxu1 }
 0x90c   : > { %v6672_v39 = vadd.f32 %v8128_v1, %v6499_v63 }
 0x928   : > { %v8148_v45 = vpop.f32.mrb[72].mxu1 }
 0x929   : > { %v8149_v4 = vpop.f32.mrb[73].mxu1 }
 0x92a   : > { %v8150_v5 = vadd.f32 %v8149_v4, %v8148_v45  ;;  %v8151_v3 = vpop.f32.mrb[74].mxu1 }
 0x92b   : > { %v8152_v25 = vpop.f32.mrb[75].mxu1 }
 0x92c   : > { %v6845_v7 = vadd.f32 %v8150_v5, %v6672_v39 }
 0x948   : > { %v8170_v41 = vpop.f32.mrb[76].mxu1 }
 0x949   : > { %v8171_v11 = vpop.f32.mrb[77].mxu1 }
 0x94a   : > { %v8172_v13 = vadd.f32 %v8171_v11, %v8170_v41  ;;  %v8173_v14 = vpop.f32.mrb[78].mxu1 }
 0x94b   : > { %v8174_v10 = vpop.f32.mrb[79].mxu1 }
 0x94c   : > { %v7018_v37 = vadd.f32 %v8172_v13, %v6845_v7 }
 0x968   : > { %v8192_v55 = vpop.f32.mrb[80].mxu1 }
 0x969   : > { %v8193_v9 = vpop.f32.mrb[81].mxu1 }
 0x96a   : > { %v8194_v15 = vadd.f32 %v8193_v9, %v8192_v55  ;;  %v8195_v2 = vpop.f32.mrb[82].mxu1 }
 0x96b   : > { %v8196_v16 = vpop.f32.mrb[83].mxu1 }
 0x96c   : > { %v7191_v18 = vadd.f32 %v8194_v15, %v7018_v37 }
 0x96e   : > { %7193 = vst.msk [vmem:[%s432_s21] sm:$0x1] %vm7192_vm7, %v7191_v18 }
 0x96f   : > { %9459 = shalt.err (!%p9456_p3)
}
 0x970   : > { %s9460_s30 = scalar_lea.hbm %s12212_s14, 16  ;;  %s9464_s27 = scalar_lea.hbm %s12267_s13, 32 }
 0x971   : > { %p9461_p4 = scmp.ne.s32.totalorder %s12212_s14, %s9460_s30  ;;  %p9465_p9 = scmp.lt.u32.totalorder %s12212_s14, %s12267_s13 }
 0x972   : > { %p9466_p10 = scmp.lt.u32.totalorder %s9464_s27, %s9460_s30  ;;  %p9468_p12 = scmp.lt.u32.totalorder %s9460_s30, %s12212_s14 }
 0x973   : > { %p9462_p7 = pnand %p9461_p4, %p9620_p5 }
 0x974   : > { %p9467_p11 = por %p9466_p10, %p9465_p9 }
 0x975   : > { %p9463_p8 = pneg %p9462_p7 }
 0x976   : > { %p9469_p13 = por %p9468_p12, %p9467_p11 }
 0x978   : > { %p9470_p0 = pnand %p9469_p13, %p9463_p8 }
 0x97a   : > { %9473 = shalt.err (!%p9470_p0)
}
 0x97b   : > { %8320 = dma.vmem_to_hbm [thread:$0]  (%p9620_p5), %s12214_s22, 16, %s12212_s14, %s7195_s20  }
 0x97c PF: > { %p8326_p1 = scmp.ge.s32.totalorder %s9508_s28, 2  ;;  %s7219_s29 = sand.u32 1, %s9496_s25  }
 0x97d   : > { %s7220_s24 = scalar_lea.sflag [#allocation3], %s7219_s29 }
 0x97e   : > { %p8323_p2 = pnand %p8326_p1, %p9624_p6 }
 0x980   : > { %9491 = dma.done.wait (!%p8323_p2), %s7220_s24, 16  }
 0x981   : > { %9493 = vsyncadd (!%p8323_p2), %s7220_s24, 4294967280  ;;  %s12276_s28 = sld [smem:[#allocation6_spill]]  ;;  %s12277_s16 = sld [smem:[#allocation5_spill]] }
 0x982   : > { %s12278_s27 = sld [smem:[#allocation7_spill]]  ;;  %s12279_s25 = smov %s9500_s26 }
 0x987   : > { %p23_p3 = scmp.ge.s32.totalorder %s12276_s28, 4   ;;  %s12280_s26 = smov %s12277_s16 }
 0x989   :  { %25 = sbr.rel (!%p23_p3) target bundleno = 3 (0x3), region = 107 }
 0x990   :  { %7224 = vsyncpa [#allocation3], 1 }
 0x991   :  { %7226 = vsyncpa [#allocation3 + $0x1], 1 }

</bundles_post_ra>
